<compile_context>
chip_gen: v7x
topology: tpu7x:2x2x1
jax: 0.10.0
libtpu: 0.0.40
codegen_flags: <defaults>
</compile_context>

<pallas_src>
import functools
import math

import jax
import jax.numpy as jnp
from jax.experimental import pallas as pl
from jax.experimental.pallas import tpu as pltpu
from jax.scipy.special import erf as jsp_erf


def _erf(z):
    """Abramowitz & Stegun 7.1.26 erf approximation (|err| <= 1.5e-7).

    Built only from exp / mul / add / div / where so it lowers cleanly on the
    TPU VPU+EUP.  PyTorch nn.GELU() is the exact-erf formulation, so this
    keeps parity (unlike the tanh approximation used previously).
    """
    a1 = 0.254829592
    a2 = -0.284496736
    a3 = 1.421413741
    a4 = -1.453152027
    a5 = 1.061405429
    p = 0.3275911
    sign = jnp.where(z >= 0.0, 1.0, -1.0)
    az = jnp.abs(z)
    t = 1.0 / (1.0 + p * az)
    poly = ((((a5 * t + a4) * t + a3) * t + a2) * t + a1) * t
    return sign * (1.0 - poly * jnp.exp(-az * az))


def _gelu_exact(u):
    return 0.5 * u * (1.0 + _erf(u * 0.7071067811865476))


def _mlp_cnn_gating_kernel(xp_ref, w1_ref, b1_ref, w2_ref, b2_ref, o_ref, *,
                           H, W, Hf):
    """One padded image: 3x3 conv (9 shifted-slice matmuls) + GELU + fc2 +
    fused residual/tanh gating.  Nothing intermediate touches HBM."""
    Wp = W + 2                 # padded row width (pixels)
    L = H * Wp                 # output rows per image (2 junk cols per row)

    # ---- fc1: 3x3 conv as 9 shifted slices of the resident padded tile ----
    # (For larger C/Hf one would concatenate the 9 slices into a (L, 9C) slab
    #  and run a single K=9C matmul; at C=4 the kernel is HBM-bound and the
    #  9 tiny matmuls are far off the critical path.)
    acc = jnp.zeros((L, Hf), jnp.float32)
    for ky in range(3):
        for kx in range(3):
            tap = ky * 3 + kx
            lhs = xp_ref[0, pl.ds(ky * Wp + kx, L), :]          # (L, C) bf16
            acc = acc + jnp.dot(lhs, w1_ref[tap],
                                preferred_element_type=jnp.float32)
    h = _gelu_exact(acc + b1_ref[...])                          # (L, Hf) f32

    # ---- fc2 + bias (f32 accumulation) ----
    y = jnp.dot(h.astype(w2_ref.dtype), w2_ref[...],
                preferred_element_type=jnp.float32) + b2_ref[...]

    # ---- residual + tanh gating; the residual is just another shifted slice
    #      of the same padded tile, so x never needs a second HBM stream ----
    xs = xp_ref[0, pl.ds(Wp + 1, L), :].astype(jnp.float32)     # (L, C)
    o_ref[0] = ((y + xs) * jnp.tanh(y)).astype(o_ref.dtype)


def mlp_cnn_gating_v2_forward(x, w1, b1, w2, b2, *, stream_dtype=jnp.bfloat16):
    """Forward pass of Mlp_cnn_gating_v2.

    Args:
      x:  (B, T, H, W, C) activations.
      w1: (Hf, C, 3, 3) conv weight (PyTorch Conv2d layout).
      b1: (Hf,) conv bias.
      w2: (Cout, Hf) linear weight (PyTorch Linear layout); Cout must equal C.
      b2: (Cout,) linear bias.
      stream_dtype: dtype used for the streamed activation tile and weights
        (bf16 halves the dominant HBM stream; accumulation stays f32).
    """
    B, T, H, W, C = x.shape
    Hf, Cin, kh, kw = w1.shape
    Cout, Hf2 = w2.shape
    assert (Cin, kh, kw) == (C, 3, 3), "fc1 must be a 3x3 conv over C channels"
    assert Hf2 == Hf, "fc2 weight does not match hidden_features"
    assert Cout == C, "residual add requires out_features == in_features"

    N = B * T
    Wp = W + 2                      # padded row width
    L = H * Wp                      # output rows per image (incl. junk cols)
    P = (H + 3) * Wp                # padded pixels per image (1 top + 2 bottom
                                    # halo rows so every tap slice stays in-bounds)

    # Padded, pixel-flattened activations.  NOTE: this is NOT im2col — it is a
    # plain zero-pad of the native NHWC layout; it is the only streamed input
    # and it doubles as the residual source inside the kernel.
    xp = jnp.pad(x.reshape(N, H, W, C), ((0, 0), (1, 2), (1, 1), (0, 0)))
    xp = xp.reshape(N, P, C).astype(stream_dtype)

    # Conv weight (Hf, C, 3, 3) -> 9 tap matrices (C, Hf), tap index = ky*3+kx.
    w1_taps = jnp.transpose(w1, (2, 3, 1, 0)).reshape(9, C, Hf).astype(stream_dtype)
    b1_2d = b1.reshape(1, Hf).astype(jnp.float32)
    w2_mat = jnp.transpose(w2, (1, 0)).astype(stream_dtype)     # (Hf, Cout)
    b2_2d = b2.reshape(1, Cout).astype(jnp.float32)

    kernel = functools.partial(_mlp_cnn_gating_kernel, H=H, W=W, Hf=Hf)

    out = pl.pallas_call(
        kernel,
        out_shape=jax.ShapeDtypeStruct((N, L, Cout), x.dtype),
        grid=(N,),                  # one image per step; N=B*T>=2 keeps both
                                    # v7x TensorCores busy and the in/out
                                    # streams double-buffered
        in_specs=[
            pl.BlockSpec((1, P, C), lambda n: (n, 0, 0)),       # padded image
            pl.BlockSpec((9, C, Hf), lambda n: (0, 0, 0)),      # conv taps (resident)
            pl.BlockSpec((1, Hf), lambda n: (0, 0)),            # b1
            pl.BlockSpec((Hf, Cout), lambda n: (0, 0)),         # w2 (resident)
            pl.BlockSpec((1, Cout), lambda n: (0, 0)),          # b2
        ],
        out_specs=pl.BlockSpec((1, L, Cout), lambda n: (n, 0, 0)),
        compiler_params=pltpu.CompilerParams(
            dimension_semantics=("parallel",),
        ),
    )(xp, w1_taps, b1_2d, w2_mat, b2_2d)

    # Drop the 2 junk columns per image row introduced by the flattened-pixel
    # layout (pure slice; 12.5% extra output bytes, no extra kernel work).
    out = out.reshape(N, H, Wp, Cout)[:, :, :W, :]
    return out.reshape(B, T, H, W, Cout)


if __name__ == "__main__":
    key = jax.random.PRNGKey(0)
    kxk, k1, k2, k3, k4 = jax.random.split(key, 5)

    B, T, H, W, C = 2, 2, 16, 16, 4
    Hf = 32  # hidden_features
    x = jax.random.normal(kxk, (B, T, H, W, C), dtype=jnp.float32)
    w1 = jax.random.normal(k1, (Hf, C, 3, 3), dtype=jnp.float32) / math.sqrt(9 * C)
    b1 = 0.1 * jax.random.normal(k2, (Hf,), dtype=jnp.float32)
    w2 = jax.random.normal(k3, (C, Hf), dtype=jnp.float32) / math.sqrt(Hf)
    b2 = 0.1 * jax.random.normal(k4, (C,), dtype=jnp.float32)

    out = jax.block_until_ready(mlp_cnn_gating_v2_forward(x, w1, b1, w2, b2))

    # --- pure-JAX f32 reference (independent conv, exact erf-GELU) ----------
    conv = jax.lax.conv_general_dilated(
        x.reshape(B * T, H, W, C),
        jnp.transpose(w1, (2, 3, 1, 0)),              # HWIO
        window_strides=(1, 1), padding="SAME",
        dimension_numbers=("NHWC", "HWIO", "NHWC")) + b1
    h_ref = 0.5 * conv * (1.0 + jsp_erf(conv / jnp.sqrt(2.0)))
    h_ref = h_ref.reshape(B * T * H * W, Hf)
    y_ref = h_ref @ w2.T + b2
    xs_ref = x.reshape(-1, C)
    ref = ((y_ref + xs_ref) * jnp.tanh(y_ref)).reshape(B, T, H, W, C)

    assert out.shape == x.shape and out.dtype == x.dtype
    max_err = float(jnp.max(jnp.abs(out - ref)))
    # Tolerance accounts for bf16 streaming of x / w1 / w2 (f32 accumulation).
    assert jnp.allclose(out, ref, atol=5e-2, rtol=5e-2), max_err
    print("KERNEL_OK")
</pallas_src>

<mosaic_0001>
module attributes {stable_mosaic.version = 11 : i64} {
  func.func @_mlp_cnn_gating_kernel(%arg0: i32, %arg1: memref<1x342x4xbf16, #tpu.memory_space<vmem>>, %arg2: memref<9x4x32xbf16, #tpu.memory_space<vmem>>, %arg3: memref<1x32xf32, #tpu.memory_space<vmem>>, %arg4: memref<32x4xbf16, #tpu.memory_space<vmem>>, %arg5: memref<1x4xf32, #tpu.memory_space<vmem>>, %arg6: memref<1x288x4xf32, #tpu.memory_space<vmem>>) attributes {dimension_semantics = [#tpu.dimension_semantics<parallel>], iteration_bounds = array<i64: 4>, scalar_prefetch = 0 : i64, scratch_operands = 0 : i64, tpu.core_type = #tpu.core_type<tc>, window_params = [{transform_indices = @transform_0, window_bounds = array<i64: 1, 342, 4>}, {pipeline_mode = #tpu.pipeline_mode<synchronous>, transform_indices = @transform_1, window_bounds = array<i64: 9, 4, 32>}, {pipeline_mode = #tpu.pipeline_mode<synchronous>, transform_indices = @transform_2, window_bounds = array<i64: 1, 32>}, {pipeline_mode = #tpu.pipeline_mode<synchronous>, transform_indices = @transform_3, window_bounds = array<i64: 32, 4>}, {pipeline_mode = #tpu.pipeline_mode<synchronous>, transform_indices = @transform_4, window_bounds = array<i64: 1, 4>}, {transform_indices = @transform_5, window_bounds = array<i64: 1, 288, 4>}]} {
    %cst = arith.constant 0.000000e+00 : f32
    %0 = vector.broadcast %cst : f32 to vector<288x32xf32>
    %c0 = arith.constant 0 : index
    %c0_0 = arith.constant 0 : index
    %c0_1 = arith.constant 0 : index
    %1 = vector.load %arg1[%c0, %c0_0, %c0_1] : memref<1x342x4xbf16, #tpu.memory_space<vmem>>, vector<1x288x4xbf16>
    %2 = vector.shape_cast %1 : vector<1x288x4xbf16> to vector<288x4xbf16>
    %c0_2 = arith.constant 0 : index
    %c0_3 = arith.constant 0 : index
    %c0_4 = arith.constant 0 : index
    %3 = vector.load %arg2[%c0_2, %c0_3, %c0_4] : memref<9x4x32xbf16, #tpu.memory_space<vmem>>, vector<1x4x32xbf16>
    %4 = vector.shape_cast %3 : vector<1x4x32xbf16> to vector<4x32xbf16>
    %cst_5 = arith.constant dense<0.000000e+00> : vector<288x32xf32>
    %5 = tpu.matmul %2, %4, %cst_5 {dimension_numbers = #tpu.dot_dimension_numbers<[1], [0], [0], [1], [0, 0, 1, 1], [], []>} : vector<288x4xbf16>, vector<4x32xbf16>, vector<288x32xf32> -> vector<288x32xf32>
    %6 = arith.addf %0, %5 : vector<288x32xf32>
    %c0_6 = arith.constant 0 : index
    %c1 = arith.constant 1 : index
    %c0_7 = arith.constant 0 : index
    %7 = vector.load %arg1[%c0_6, %c1, %c0_7] : memref<1x342x4xbf16, #tpu.memory_space<vmem>>, vector<1x288x4xbf16>
    %8 = vector.shape_cast %7 : vector<1x288x4xbf16> to vector<288x4xbf16>
    %c1_8 = arith.constant 1 : index
    %c0_9 = arith.constant 0 : index
    %c0_10 = arith.constant 0 : index
    %9 = vector.load %arg2[%c1_8, %c0_9, %c0_10] : memref<9x4x32xbf16, #tpu.memory_space<vmem>>, vector<1x4x32xbf16>
    %10 = vector.shape_cast %9 : vector<1x4x32xbf16> to vector<4x32xbf16>
    %cst_11 = arith.constant dense<0.000000e+00> : vector<288x32xf32>
    %11 = tpu.matmul %8, %10, %cst_11 {dimension_numbers = #tpu.dot_dimension_numbers<[1], [0], [0], [1], [0, 0, 1, 1], [], []>} : vector<288x4xbf16>, vector<4x32xbf16>, vector<288x32xf32> -> vector<288x32xf32>
    %12 = arith.addf %6, %11 : vector<288x32xf32>
    %c0_12 = arith.constant 0 : index
    %c2 = arith.constant 2 : index
    %c0_13 = arith.constant 0 : index
    %13 = vector.load %arg1[%c0_12, %c2, %c0_13] : memref<1x342x4xbf16, #tpu.memory_space<vmem>>, vector<1x288x4xbf16>
    %14 = vector.shape_cast %13 : vector<1x288x4xbf16> to vector<288x4xbf16>
    %c2_14 = arith.constant 2 : index
    %c0_15 = arith.constant 0 : index
    %c0_16 = arith.constant 0 : index
    %15 = vector.load %arg2[%c2_14, %c0_15, %c0_16] : memref<9x4x32xbf16, #tpu.memory_space<vmem>>, vector<1x4x32xbf16>
    %16 = vector.shape_cast %15 : vector<1x4x32xbf16> to vector<4x32xbf16>
    %cst_17 = arith.constant dense<0.000000e+00> : vector<288x32xf32>
    %17 = tpu.matmul %14, %16, %cst_17 {dimension_numbers = #tpu.dot_dimension_numbers<[1], [0], [0], [1], [0, 0, 1, 1], [], []>} : vector<288x4xbf16>, vector<4x32xbf16>, vector<288x32xf32> -> vector<288x32xf32>
    %18 = arith.addf %12, %17 : vector<288x32xf32>
    %c0_18 = arith.constant 0 : index
    %c18 = arith.constant 18 : index
    %c0_19 = arith.constant 0 : index
    %19 = vector.load %arg1[%c0_18, %c18, %c0_19] : memref<1x342x4xbf16, #tpu.memory_space<vmem>>, vector<1x288x4xbf16>
    %20 = vector.shape_cast %19 : vector<1x288x4xbf16> to vector<288x4xbf16>
    %c3 = arith.constant 3 : index
    %c0_20 = arith.constant 0 : index
    %c0_21 = arith.constant 0 : index
    %21 = vector.load %arg2[%c3, %c0_20, %c0_21] : memref<9x4x32xbf16, #tpu.memory_space<vmem>>, vector<1x4x32xbf16>
    %22 = vector.shape_cast %21 : vector<1x4x32xbf16> to vector<4x32xbf16>
    %cst_22 = arith.constant dense<0.000000e+00> : vector<288x32xf32>
    %23 = tpu.matmul %20, %22, %cst_22 {dimension_numbers = #tpu.dot_dimension_numbers<[1], [0], [0], [1], [0, 0, 1, 1], [], []>} : vector<288x4xbf16>, vector<4x32xbf16>, vector<288x32xf32> -> vector<288x32xf32>
    %24 = arith.addf %18, %23 : vector<288x32xf32>
    %c0_23 = arith.constant 0 : index
    %c19 = arith.constant 19 : index
    %c0_24 = arith.constant 0 : index
    %25 = vector.load %arg1[%c0_23, %c19, %c0_24] : memref<1x342x4xbf16, #tpu.memory_space<vmem>>, vector<1x288x4xbf16>
    %26 = vector.shape_cast %25 : vector<1x288x4xbf16> to vector<288x4xbf16>
    %c4 = arith.constant 4 : index
    %c0_25 = arith.constant 0 : index
    %c0_26 = arith.constant 0 : index
    %27 = vector.load %arg2[%c4, %c0_25, %c0_26] : memref<9x4x32xbf16, #tpu.memory_space<vmem>>, vector<1x4x32xbf16>
    %28 = vector.shape_cast %27 : vector<1x4x32xbf16> to vector<4x32xbf16>
    %cst_27 = arith.constant dense<0.000000e+00> : vector<288x32xf32>
    %29 = tpu.matmul %26, %28, %cst_27 {dimension_numbers = #tpu.dot_dimension_numbers<[1], [0], [0], [1], [0, 0, 1, 1], [], []>} : vector<288x4xbf16>, vector<4x32xbf16>, vector<288x32xf32> -> vector<288x32xf32>
    %30 = arith.addf %24, %29 : vector<288x32xf32>
    %c0_28 = arith.constant 0 : index
    %c20 = arith.constant 20 : index
    %c0_29 = arith.constant 0 : index
    %31 = vector.load %arg1[%c0_28, %c20, %c0_29] : memref<1x342x4xbf16, #tpu.memory_space<vmem>>, vector<1x288x4xbf16>
    %32 = vector.shape_cast %31 : vector<1x288x4xbf16> to vector<288x4xbf16>
    %c5 = arith.constant 5 : index
    %c0_30 = arith.constant 0 : index
    %c0_31 = arith.constant 0 : index
    %33 = vector.load %arg2[%c5, %c0_30, %c0_31] : memref<9x4x32xbf16, #tpu.memory_space<vmem>>, vector<1x4x32xbf16>
    %34 = vector.shape_cast %33 : vector<1x4x32xbf16> to vector<4x32xbf16>
    %cst_32 = arith.constant dense<0.000000e+00> : vector<288x32xf32>
    %35 = tpu.matmul %32, %34, %cst_32 {dimension_numbers = #tpu.dot_dimension_numbers<[1], [0], [0], [1], [0, 0, 1, 1], [], []>} : vector<288x4xbf16>, vector<4x32xbf16>, vector<288x32xf32> -> vector<288x32xf32>
    %36 = arith.addf %30, %35 : vector<288x32xf32>
    %c0_33 = arith.constant 0 : index
    %c36 = arith.constant 36 : index
    %c0_34 = arith.constant 0 : index
    %37 = vector.load %arg1[%c0_33, %c36, %c0_34] : memref<1x342x4xbf16, #tpu.memory_space<vmem>>, vector<1x288x4xbf16>
    %38 = vector.shape_cast %37 : vector<1x288x4xbf16> to vector<288x4xbf16>
    %c6 = arith.constant 6 : index
    %c0_35 = arith.constant 0 : index
    %c0_36 = arith.constant 0 : index
    %39 = vector.load %arg2[%c6, %c0_35, %c0_36] : memref<9x4x32xbf16, #tpu.memory_space<vmem>>, vector<1x4x32xbf16>
    %40 = vector.shape_cast %39 : vector<1x4x32xbf16> to vector<4x32xbf16>
    %cst_37 = arith.constant dense<0.000000e+00> : vector<288x32xf32>
    %41 = tpu.matmul %38, %40, %cst_37 {dimension_numbers = #tpu.dot_dimension_numbers<[1], [0], [0], [1], [0, 0, 1, 1], [], []>} : vector<288x4xbf16>, vector<4x32xbf16>, vector<288x32xf32> -> vector<288x32xf32>
    %42 = arith.addf %36, %41 : vector<288x32xf32>
    %c0_38 = arith.constant 0 : index
    %c37 = arith.constant 37 : index
    %c0_39 = arith.constant 0 : index
    %43 = vector.load %arg1[%c0_38, %c37, %c0_39] : memref<1x342x4xbf16, #tpu.memory_space<vmem>>, vector<1x288x4xbf16>
    %44 = vector.shape_cast %43 : vector<1x288x4xbf16> to vector<288x4xbf16>
    %c7 = arith.constant 7 : index
    %c0_40 = arith.constant 0 : index
    %c0_41 = arith.constant 0 : index
    %45 = vector.load %arg2[%c7, %c0_40, %c0_41] : memref<9x4x32xbf16, #tpu.memory_space<vmem>>, vector<1x4x32xbf16>
    %46 = vector.shape_cast %45 : vector<1x4x32xbf16> to vector<4x32xbf16>
    %cst_42 = arith.constant dense<0.000000e+00> : vector<288x32xf32>
    %47 = tpu.matmul %44, %46, %cst_42 {dimension_numbers = #tpu.dot_dimension_numbers<[1], [0], [0], [1], [0, 0, 1, 1], [], []>} : vector<288x4xbf16>, vector<4x32xbf16>, vector<288x32xf32> -> vector<288x32xf32>
    %48 = arith.addf %42, %47 : vector<288x32xf32>
    %c0_43 = arith.constant 0 : index
    %c38 = arith.constant 38 : index
    %c0_44 = arith.constant 0 : index
    %49 = vector.load %arg1[%c0_43, %c38, %c0_44] : memref<1x342x4xbf16, #tpu.memory_space<vmem>>, vector<1x288x4xbf16>
    %50 = vector.shape_cast %49 : vector<1x288x4xbf16> to vector<288x4xbf16>
    %c8 = arith.constant 8 : index
    %c0_45 = arith.constant 0 : index
    %c0_46 = arith.constant 0 : index
    %51 = vector.load %arg2[%c8, %c0_45, %c0_46] : memref<9x4x32xbf16, #tpu.memory_space<vmem>>, vector<1x4x32xbf16>
    %52 = vector.shape_cast %51 : vector<1x4x32xbf16> to vector<4x32xbf16>
    %cst_47 = arith.constant dense<0.000000e+00> : vector<288x32xf32>
    %53 = tpu.matmul %50, %52, %cst_47 {dimension_numbers = #tpu.dot_dimension_numbers<[1], [0], [0], [1], [0, 0, 1, 1], [], []>} : vector<288x4xbf16>, vector<4x32xbf16>, vector<288x32xf32> -> vector<288x32xf32>
    %54 = arith.addf %48, %53 : vector<288x32xf32>
    %c0_48 = arith.constant 0 : index
    %c0_49 = arith.constant 0 : index
    %55 = vector.load %arg3[%c0_48, %c0_49] : memref<1x32xf32, #tpu.memory_space<vmem>>, vector<1x32xf32>
    %56 = vector.broadcast %55 : vector<1x32xf32> to vector<288x32xf32>
    %57 = arith.addf %54, %56 : vector<288x32xf32>
    %cst_50 = arith.constant 5.000000e-01 : f32
    %58 = vector.broadcast %cst_50 : f32 to vector<288x32xf32>
    %59 = arith.mulf %58, %57 : vector<288x32xf32>
    %cst_51 = arith.constant 0.707106769 : f32
    %60 = vector.broadcast %cst_51 : f32 to vector<288x32xf32>
    %61 = arith.mulf %57, %60 : vector<288x32xf32>
    %cst_52 = arith.constant 0.000000e+00 : f32
    %62 = vector.broadcast %cst_52 : f32 to vector<288x32xf32>
    %63 = arith.cmpf oge, %61, %62 : vector<288x32xf32>
    %cst_53 = arith.constant 1.000000e+00 : f32
    %cst_54 = arith.constant -1.000000e+00 : f32
    %64 = vector.broadcast %cst_53 : f32 to vector<288x32xf32>
    %65 = vector.broadcast %cst_54 : f32 to vector<288x32xf32>
    %66 = arith.select %63, %64, %65 : vector<288x32xi1>, vector<288x32xf32>
    %67 = math.absf %61 : vector<288x32xf32>
    %cst_55 = arith.constant 0.327591091 : f32
    %68 = vector.broadcast %cst_55 : f32 to vector<288x32xf32>
    %69 = arith.mulf %68, %67 : vector<288x32xf32>
    %cst_56 = arith.constant 1.000000e+00 : f32
    %70 = vector.broadcast %cst_56 : f32 to vector<288x32xf32>
    %71 = arith.addf %70, %69 : vector<288x32xf32>
    %cst_57 = arith.constant 1.000000e+00 : f32
    %72 = vector.broadcast %cst_57 : f32 to vector<288x32xf32>
    %73 = arith.divf %72, %71 : vector<288x32xf32>
    %cst_58 = arith.constant 1.06140542 : f32
    %74 = vector.broadcast %cst_58 : f32 to vector<288x32xf32>
    %75 = arith.mulf %74, %73 : vector<288x32xf32>
    %cst_59 = arith.constant -1.45315206 : f32
    %76 = vector.broadcast %cst_59 : f32 to vector<288x32xf32>
    %77 = arith.addf %75, %76 : vector<288x32xf32>
    %78 = arith.mulf %77, %73 : vector<288x32xf32>
    %cst_60 = arith.constant 1.42141378 : f32
    %79 = vector.broadcast %cst_60 : f32 to vector<288x32xf32>
    %80 = arith.addf %78, %79 : vector<288x32xf32>
    %81 = arith.mulf %80, %73 : vector<288x32xf32>
    %cst_61 = arith.constant -0.284496725 : f32
    %82 = vector.broadcast %cst_61 : f32 to vector<288x32xf32>
    %83 = arith.addf %81, %82 : vector<288x32xf32>
    %84 = arith.mulf %83, %73 : vector<288x32xf32>
    %cst_62 = arith.constant 0.254829586 : f32
    %85 = vector.broadcast %cst_62 : f32 to vector<288x32xf32>
    %86 = arith.addf %84, %85 : vector<288x32xf32>
    %87 = arith.mulf %86, %73 : vector<288x32xf32>
    %cst_63 = arith.constant 0.000000e+00 : f32
    %88 = vector.broadcast %cst_63 : f32 to vector<288x32xf32>
    %89 = arith.subf %88, %67 : vector<288x32xf32>
    %90 = arith.mulf %89, %67 : vector<288x32xf32>
    %91 = math.exp %90 : vector<288x32xf32>
    %92 = arith.mulf %87, %91 : vector<288x32xf32>
    %cst_64 = arith.constant 1.000000e+00 : f32
    %93 = vector.broadcast %cst_64 : f32 to vector<288x32xf32>
    %94 = arith.subf %93, %92 : vector<288x32xf32>
    %95 = arith.mulf %66, %94 : vector<288x32xf32>
    %cst_65 = arith.constant 1.000000e+00 : f32
    %96 = vector.broadcast %cst_65 : f32 to vector<288x32xf32>
    %97 = arith.addf %96, %95 : vector<288x32xf32>
    %98 = arith.mulf %59, %97 : vector<288x32xf32>
    %99 = arith.truncf %98 : vector<288x32xf32> to vector<288x32xbf16>
    %c0_66 = arith.constant 0 : index
    %c0_67 = arith.constant 0 : index
    %100 = vector.load %arg4[%c0_66, %c0_67] : memref<32x4xbf16, #tpu.memory_space<vmem>>, vector<32x4xbf16>
    %cst_68 = arith.constant dense<0.000000e+00> : vector<288x4xf32>
    %101 = tpu.matmul %99, %100, %cst_68 {dimension_numbers = #tpu.dot_dimension_numbers<[1], [0], [0], [1], [0, 0, 1, 1], [], []>} : vector<288x32xbf16>, vector<32x4xbf16>, vector<288x4xf32> -> vector<288x4xf32>
    %c0_69 = arith.constant 0 : index
    %c0_70 = arith.constant 0 : index
    %102 = vector.load %arg5[%c0_69, %c0_70] : memref<1x4xf32, #tpu.memory_space<vmem>>, vector<1x4xf32>
    %103 = vector.broadcast %102 : vector<1x4xf32> to vector<288x4xf32>
    %104 = arith.addf %101, %103 : vector<288x4xf32>
    %c0_71 = arith.constant 0 : index
    %c19_72 = arith.constant 19 : index
    %c0_73 = arith.constant 0 : index
    %105 = vector.load %arg1[%c0_71, %c19_72, %c0_73] : memref<1x342x4xbf16, #tpu.memory_space<vmem>>, vector<1x288x4xbf16>
    %106 = vector.shape_cast %105 : vector<1x288x4xbf16> to vector<288x4xbf16>
    %107 = arith.extf %106 : vector<288x4xbf16> to vector<288x4xf32>
    %108 = arith.addf %104, %107 : vector<288x4xf32>
    %109 = math.tanh %104 : vector<288x4xf32>
    %110 = arith.mulf %108, %109 : vector<288x4xf32>
    %c0_74 = arith.constant 0 : index
    %c0_75 = arith.constant 0 : index
    %c0_76 = arith.constant 0 : index
    %111 = vector.load %arg6[%c0_74, %c0_75, %c0_76] : memref<1x288x4xf32, #tpu.memory_space<vmem>>, vector<1x288x4xf32>
    %112 = vector.shape_cast %111 : vector<1x288x4xf32> to vector<288x4xf32>
    %113 = vector.shape_cast %110 : vector<288x4xf32> to vector<1x288x4xf32>
    tpu.vector_store %arg6[%c0_74, %c0_75, %c0_76], %113 {strides = array<i32>} : memref<1x288x4xf32, #tpu.memory_space<vmem>>, vector<1x288x4xf32>,
    return
  }
  func.func @transform_0(%arg0: i32) -> (i32, i32, i32) {
    %c0_i32 = arith.constant 0 : i32
    %c0_i32_0 = arith.constant 0 : i32
    %c0_i32_1 = arith.constant 0 : i32
    return %arg0, %c0_i32, %c0_i32_0 : i32, i32, i32
  }
  func.func @transform_1(%arg0: i32) -> (i32, i32, i32) {
    %c0_i32 = arith.constant 0 : i32
    %c0_i32_0 = arith.constant 0 : i32
    %c0_i32_1 = arith.constant 0 : i32
    %c0_i32_2 = arith.constant 0 : i32
    return %c0_i32, %c0_i32_0, %c0_i32_1 : i32, i32, i32
  }
  func.func @transform_2(%arg0: i32) -> (i32, i32) {
    %c0_i32 = arith.constant 0 : i32
    %c0_i32_0 = arith.constant 0 : i32
    %c0_i32_1 = arith.constant 0 : i32
    return %c0_i32, %c0_i32_0 : i32, i32
  }
  func.func @transform_3(%arg0: i32) -> (i32, i32) {
    %c0_i32 = arith.constant 0 : i32
    %c0_i32_0 = arith.constant 0 : i32
    %c0_i32_1 = arith.constant 0 : i32
    return %c0_i32, %c0_i32_0 : i32, i32
  }
  func.func @transform_4(%arg0: i32) -> (i32, i32) {
    %c0_i32 = arith.constant 0 : i32
    %c0_i32_0 = arith.constant 0 : i32
    %c0_i32_1 = arith.constant 0 : i32
    return %c0_i32, %c0_i32_0 : i32, i32
  }
  func.func @transform_5(%arg0: i32) -> (i32, i32, i32) {
    %c0_i32 = arith.constant 0 : i32
    %c0_i32_0 = arith.constant 0 : i32
    %c0_i32_1 = arith.constant 0 : i32
    return %arg0, %c0_i32, %c0_i32_0 : i32, i32, i32
  }
}

</mosaic_0001>

<bundles_post_ra>
// kernel: tpu_custom_call.1
= control target key start
LH: loop header
LB: loop body
LE: loop exit
PB: predicated region body
PF: predicated region fallthrough
CT: control target
= control target key end

     0   :  { %s6846_s18 = smov 0   ;;  %s9106_s0 = inlined_call_operand.vmem [shape: bf16[4,342,4], index: 0, kind: input, shape index: {}]   ;;  %s9107_s1 = inlined_call_operand.vmem [shape: bf16[9,4,32], index: 1, kind: input, shape index: {}]   ;;  %s9108_s2 = inlined_call_operand.vmem [shape: f32[1,32], index: 2, kind: input, shape index: {}]   ;;  %s9109_s3 = inlined_call_operand.vmem [shape: bf16[32,4], index: 3, kind: input, shape index: {}]   ;;  %s9110_s4 = inlined_call_operand.vmem [shape: f32[1,4], index: 4, kind: input, shape index: {}]   ;;  %s9111_s5 = inlined_call_operand.vmem [shape: f32[4,288,4], index: 5, kind: output, shape index: {}]  }
   0x1 LB: > { %s5345_s19 = sadd.s32 4294967295, %s6813_s18   ;;  %p5349_p0 = scmp.ge.s32.totalorder %s6813_s18, 1  ;;  %s6813_s18 = sphi %s6846_s18, %s15_s18  }
   0x2   : > { %p187_p1 = scmp.lt.s32.totalorder %s6813_s18, 5 }
   0x4   : > { %p188_p2 = pnand %p5349_p0, %p187_p1 }
   0x6   : > { %191 = sbr.rel (%p188_p2) target bundleno = 1046 (0x416), region = 40 }
   0xd   : > { %vm563_vm0 = vcmask 1041408   ;;  %v5466_v0 = vld [vmem:[%s9107_s1 + $0x8] sm:$0x3]  ;;  %v5352_v1 = vld [vmem:[%s9107_s1 + $0x2] sm:$0x3]  ;;  %p215_p3 = scmp.lt.s32.totalorder %s5345_s19, 3 }
   0xe   : > { %6473 = vmatprep.subr.msk.bf16.mxu0 %vm563_vm0, %v5466_v0  ;;  %6469 = vmatprep.subr.msk.bf16.mxu1 %vm563_vm0, %v5352_v1  ;;  %v1945_v2 = vsel %vm563_vm0, %v5466_v0, 0  ;;  %v565_v3 = vsel %vm563_vm0, %v5352_v1, 0  ;;  %v5486_v4 = vld [vmem:[%s9107_s1 + $0xa] sm:$0x3]  ;;  %v262_v5 = vld [vmem:[%s9107_s1] sm:$0x3] }
   0xf   : > { %5952 = vmatpush3.bf16.msra.mxu0 %v1945_v2  ;;  %5800 = vmatpush3.bf16.msra.mxu1 %v565_v3  ;;  %s9212_s19 = smov (!%p215_p3, %s5345_s19), 3  ;;  %vm359_vm1 = vsmask.f32 7424  ;;  %vm1719_vm2 = vsmask.f32 6400  ;;  %vm508_vm3 = vcmask 31744  }
  0x10   : > { %6474 = vmatprep.subr.msk.bf16.mxu0 %vm563_vm0, %v5486_v4  ;;  %s6478_s28 = smul.u32 172, %s9212_s19  ;;  %6470 = vmatprep.subr.msk.bf16.mxu1 %vm563_vm0, %v262_v5  ;;  %v2259_v20 = vsel %vm563_vm0, %v5486_v4, 0  ;;  %v781_v24 = vsel %vm563_vm0, %v262_v5, 0  ;;  %v6949_v59 = vld [vmem:[%s9107_s1 + $0xc] sm:$0x3]  ;;  %vm2166_vm4 = vcmask 1045504  }
  0x11   : > { %vm966_vm5 = vcmask 1046528   ;;  %vm2919_vm6 = vsmask.f32 5376  ;;  %vm3366_vm7 = vcmask 1044480   ;;  %s6479_s29 = smul.u32 288, %s9212_s19 }
  0x12   : > { %s6878_s6 = scalar_lea.vmem %s9106_s0, %s6478_s28 }
  0x13   : > { %v226_v6 = vld [vmem:[%s6878_s6] sm:$0xf]  ;;  %v6882_v7 = vld [vmem:[%s6878_s6 + $0x4] sm:$0xf]  ;;  %v6888_v9 = vld [vmem:[%s6878_s6 + $0x8] sm:$0xff]   ;;  %s8949_s8 = scalar_lea.vmem %s9111_s5, %s6479_s29 }
  0x14   : > { %v6885_v8 = vcombine.low %v226_v6, %v6882_v7  ;;  %v1274_v10 = vld [vmem:[%s6878_s6 + $0x8] sm:$0xe]  ;;  %v6892_v11 = vld [vmem:[%s6878_s6 + $0xc] sm:$0xf]  ;;  %v6895_v12 = vld [vmem:[%s6878_s6 + $0x10] sm:$0xff]   ;;  %v368_v15 = vshll.u32 %v6888_v9, 16 }
  0x15   : > { %v372_v16 = vshrl.u32 %v6888_v9, 16  ;;  %v6902_v17 = vcombine.low %v1274_v10, %v6892_v11  ;;  %v6905_v18 = vld [vmem:[%s6878_s6 + $0x10] sm:$0xff]   ;;  %v6908_v19 = vld [vmem:[%s6878_s6 + $0x18] sm:$0xff]   ;;  %v1729_v27 = vshrl.u32 %v6895_v12, 16  ;;  %v1732_v28 = vshll.u32 %v6895_v12, 16  ;;  %v6922_v33 = vld [vmem:[%s6878_s6 + $0x20] sm:$0xff]  }
  0x16   : > { %v361_v13 = vshrl.u32 %v6885_v8, 16  ;;  %v363_v14 = vshll.u32 %v6885_v8, 16  ;;  %v370_v22 = vrot.slane %v368_v15, 1  ;;  %v6912_v23 = vld [vmem:[%s6878_s6 + $0x18] sm:$0xff]   ;;  %v376_v31 = vshll.u32 %v6905_v18, 16  ;;  %v6925_v34 = vld [vmem:[%s6878_s6 + $0x20] sm:$0xff]  }
  0x17   : > { %9119 = vst [vmem:[#allocation2_spill] sm:$0xff] %v6902_v17  ;;  %v1721_v25 = vshrl.u32 %v6902_v17, 16  ;;  %v1724_v26 = vshll.u32 %v6902_v17, 16  ;;  %v1738_v32 = vshrl.u32 %v6908_v19, 16  ;;  %v1731_v37 = vrot.slane %v1729_v27, 1  ;;  %v6933_v47 = vld [vmem:[%s6878_s6 + $0x28] sm:$0xff]  }
  0x18   : > { %v365_v21 = vrot.slane %v363_v14, 1  ;;  %v374_v30 = vor.u32 %v372_v16, %v370_v22  ;;  %v1734_v38 = vrot.slane %v1732_v28, 2  ;;  %v378_v40 = vrot.slane %v376_v31, 1  ;;  %v6938_v51 = vld [vmem:[%s6878_s6 + $0x28] sm:$0xff]   ;;  %v6954_v0 = vld [vmem:[%s6878_s6 + $0x30] sm:$0xff]   ;;  %v6963_v6 = vld [vmem:[%s6878_s6 + $0x38] sm:$0xff]  }
  0x19   : > { %v1723_v35 = vrot.slane %v1721_v25, 1  ;;  %v1726_v36 = vrot.slane %v1724_v26, 2  ;;  %v1740_v41 = vrot.slane %v1738_v32, 1  ;;  %v1741_v42 = vshll.u32 %v6908_v19, 16  ;;  %v6957_v1 = vld [vmem:[%s6878_s6 + $0x30] sm:$0xff]   ;;  %v6972_v27 = vld [vmem:[%s6878_s6 + $0x38] sm:$0xff]  }
  0x1a   : > { %v366_v29 = vor.u32 %v365_v21, %v361_v13  ;;  %v1735_v44 = vor.u32 %v1734_v38, %v1731_v37  ;;  %v380_v45 = vshrl.u32 %v6905_v18, 16  ;;  %v384_v46 = vshll.u32 %v6912_v23, 16  ;;  %v6981_v31 = vld [vmem:[%s6878_s6 + $0x40] sm:$0xff]   ;;  %v7142_v17 = vld [vmem:[%s6878_s6 + $0x90] ss:$0 sps:$4 sm:$0x11]  }
  0x1b   : > { %v1727_v43 = vor.u32 %v1726_v36, %v1723_v35  ;;  %v379_v48 = vsel %vm359_vm1, %v374_v30, %v378_v40  ;;  %v1743_v49 = vrot.slane %v1741_v42, 2  ;;  %v388_v50 = vshrl.u32 %v6912_v23, 16  ;;  %v6987_v38 = vld [vmem:[%s6878_s6 + $0x40] sm:$0xff]  }
  0x1c   : > { %v371_v39 = vsel %vm359_vm1, %v366_v29, %v370_v22  ;;  %v382_v53 = vor.u32 %v380_v45, %v378_v40  ;;  %v386_v54 = vrot.slane %v384_v46, 1  ;;  %v392_v55 = vshll.u32 %v6925_v34, 16 }
  0x1d   : > { %5801 = vmatprep.mubr.msk.bf16.mxu1 %vm508_vm3, %v371_v39  ;;  %v1736_v52 = vsel %vm1719_vm2, %v1727_v43, %v1735_v44  ;;  %v1744_v56 = vor.u32 %v1743_v49, %v1740_v41  ;;  %v1747_v57 = vshrl.u32 %v6922_v33, 16  ;;  %v1750_v58 = vshll.u32 %v6922_v33, 16  ;;  %v6993_v43 = vld [vmem:[%s6878_s6 + $0x48] sm:$0xff]  }
  0x1e   : > { %5802 = vmatmul.mubr.msk.bf16.vlgmr.msra.gmra.mrb[0].mxu1 %vm508_vm3, %v379_v48  ;;  %5953 = vmatprep.mubr.msk.bf16.mxu0 %vm508_vm3, %v1736_v52  ;;  %v387_v60 = vsel %vm359_vm1, %v382_v53, %v386_v54  ;;  %v390_v61 = vor.u32 %v388_v50, %v386_v54  ;;  %v394_v62 = vrot.slane %v392_v55, 1  ;;  %v396_v63 = vshrl.u32 %v6925_v34, 16 }
  0x1f   : > { %5838 = vmatpush3.bf16.msra.mxu1 %v781_v24  ;;  %v1745_v2 = vsel %vm1719_vm2, %v1735_v44, %v1744_v56  ;;  %5805 = vmatprep.mubr.msk.bf16.mxu1 %vm508_vm3, %v387_v60  ;;  %v1749_v3 = vrot.slane %v1747_v57, 1  ;;  %v1752_v4 = vrot.slane %v1750_v58, 2  ;;  %v1756_v5 = vshrl.u32 %v6933_v47, 16 }
  0x20   : > { %5954 = vmatmul.mubr.msk.bf16.vlgmr.msra.gmra.mrb[0].mxu0 %vm508_vm3, %v1745_v2  ;;  %v395_v10 = vsel %vm359_vm1, %v390_v61, %v394_v62  ;;  %v1759_v13 = vshll.u32 %v6933_v47, 16  ;;  %v398_v14 = vor.u32 %v396_v63, %v394_v62  ;;  %v400_v15 = vshll.u32 %v6938_v51, 16  ;;  %v7011_v2 = vld [vmem:[%s6878_s6 + $0x50] sm:$0xff]  }
  0x21   : > { %5990 = vmatpush3.bf16.msra.mxu0 %v2259_v20  ;;  %v1753_v16 = vor.u32 %v1752_v4, %v1749_v3  ;;  %v1758_v21 = vrot.slane %v1756_v5, 1  ;;  %v404_v22 = vshrl.u32 %v6938_v51, 16  ;;  %v408_v26 = vshll.u32 %v6957_v1, 16 }
  0x22   : > { %v1761_v24 = vrot.slane %v1759_v13, 2  ;;  %v402_v25 = vrot.slane %v400_v15, 1  ;;  %6475 = vmatprep.subr.msk.bf16.mxu0 %vm563_vm0, %v6949_v59  ;;  %v1765_v29 = vshrl.u32 %v6954_v0, 16  ;;  %v1768_v20 = vshll.u32 %v6954_v0, 16  ;;  %v7015_v13 = vld [vmem:[%s6878_s6 + $0x58] sm:$0xff]  }
  0x23   : > { %v1754_v28 = vsel %vm1719_vm2, %v1744_v56, %v1753_v16  ;;  %v412_v30 = vshrl.u32 %v6957_v1, 16  ;;  %v410_v37 = vrot.slane %v408_v26, 1  ;;  %v1774_v41 = vshrl.u32 %v6963_v6, 16  ;;  %v7002_v56 = vld [vmem:[%s6878_s6 + $0x48] sm:$0xff]  }
  0x24   : > { %5957 = vmatprep.mubr.msk.bf16.mxu0 %vm508_vm3, %v1754_v28  ;;  %v1762_v32 = vor.u32 %v1761_v24, %v1758_v21  ;;  %v403_v35 = vsel %vm359_vm1, %v398_v14, %v402_v25  ;;  %v406_v36 = vor.u32 %v404_v22, %v402_v25  ;;  %v1767_v39 = vrot.slane %v1765_v29, 1  ;;  %v7022_v22 = vld [vmem:[%s6878_s6 + $0x50] sm:$0xff]  }
  0x25   : > { %v1770_v40 = vrot.slane %v1768_v20, 2  ;;  %v1777_v42 = vshll.u32 %v6963_v6, 16  ;;  %v414_v46 = vor.u32 %v412_v30, %v410_v37  ;;  %v416_v48 = vshll.u32 %v6972_v27, 16  ;;  %v7026_v20 = vld [vmem:[%s6878_s6 + $0x58] sm:$0xff]  }
  0x26   : > { %5806 = vmatmul.mubr.msk.bf16.gmra.mrb[4].mxu1 %vm508_vm3, %v395_v10  ;;  %v1763_v44 = vsel %vm1719_vm2, %v1753_v16, %v1762_v32  ;;  %v411_v45 = vsel %vm359_vm1, %v406_v36, %v410_v37  ;;  %v1776_v50 = vrot.slane %v1774_v41, 1  ;;  %v420_v54 = vshrl.u32 %v6972_v27, 16  ;;  %v7037_v41 = vld [vmem:[%s6878_s6 + $0x60] sm:$0xff]  }
  0x27   : > { %5809 = vmatprep.mubr.msk.bf16.mxu1 %vm508_vm3, %v403_v35  ;;  %v1771_v49 = vor.u32 %v1770_v40, %v1767_v39  ;;  %v1779_v52 = vrot.slane %v1777_v42, 2  ;;  %v418_v53 = vrot.slane %v416_v48, 1  ;;  %v424_v55 = vshll.u32 %v6987_v38, 16  ;;  %v7042_v42 = vld [vmem:[%s9107_s1 + $0x4] sm:$0x3] }
  0x28   : > { %5958 = vmatmul.mubr.msk.bf16.gmra.mrb[4].mxu0 %vm508_vm3, %v1763_v44  ;;  %v1783_v60 = vshrl.u32 %v6981_v31, 16  ;;  %v1786_v61 = vshll.u32 %v6981_v31, 16  ;;  %v1792_v63 = vshrl.u32 %v6993_v43, 16  ;;  %v1795_v10 = vshll.u32 %v6993_v43, 16  ;;  %6471 = vmatprep.subr.msk.bf16.mxu1 %vm563_vm0, %v7042_v42 }
  0x29   : > { %v1772_v57 = vsel %vm1719_vm2, %v1762_v32, %v1771_v49  ;;  %v1780_v58 = vor.u32 %v1779_v52, %v1776_v50  ;;  %v419_v62 = vsel %vm359_vm1, %v414_v46, %v418_v53  ;;  %v422_v5 = vor.u32 %v420_v54, %v418_v53 }
  0x2a   : > { %5961 = vmatprep.mubr.msk.bf16.mxu0 %vm508_vm3, %v1772_v57  ;;  %v1785_v3 = vrot.slane %v1783_v60, 1  ;;  %v1788_v4 = vrot.slane %v1786_v61, 2  ;;  %v426_v15 = vrot.slane %v424_v55, 1  ;;  %v428_v16 = vshrl.u32 %v6987_v38, 16  ;;  %v7055_v57 = vld [vmem:[%s6878_s6 + $0x60] sm:$0xff]  }
  0x2b   : > { %v1781_v14 = vsel %vm1719_vm2, %v1771_v49, %v1780_v58  ;;  %v432_v21 = vshll.u32 %v7002_v56, 16  ;;  %v1794_v25 = vrot.slane %v1792_v63, 1  ;;  %v1797_v26 = vrot.slane %v1795_v10, 2  ;;  %v7047_v49 = vld [vmem:[%s6878_s6 + $0x68] sm:$0xff]  }
  0x2c   : > { %v1789_v24 = vor.u32 %v1788_v4, %v1785_v3  ;;  %v430_v28 = vor.u32 %v428_v16, %v426_v15  ;;  %v1801_v32 = vshrl.u32 %v7011_v2, 16  ;;  %v1804_v35 = vshll.u32 %v7011_v2, 16 }
  0x2d   : > { %v434_v29 = vrot.slane %v432_v21, 1  ;;  %v436_v36 = vshrl.u32 %v7002_v56, 16  ;;  %v427_v37 = vsel %vm359_vm1, %v422_v5, %v426_v15  ;;  %v440_v39 = vshll.u32 %v7022_v22, 16  ;;  %v7067_v15 = vld [vmem:[%s6878_s6 + $0x70] sm:$0xff]  }
  0x2e   : > { %5810 = vmatmul.mubr.msk.bf16.gmra.mrb[8].mxu1 %vm508_vm3, %v411_v45  ;;  %v1790_v30 = vsel %vm1719_vm2, %v1780_v58, %v1789_v24  ;;  %v1810_v40 = vshrl.u32 %v7015_v13, 16  ;;  %v1798_v44 = vor.u32 %v1797_v26, %v1794_v25  ;;  %v1803_v45 = vrot.slane %v1801_v32, 1 }
  0x2f   : > { %5813 = vmatprep.mubr.msk.bf16.mxu1 %vm508_vm3, %v419_v62  ;;  %v1806_v46 = vrot.slane %v1804_v35, 2  ;;  %v1813_v48 = vshll.u32 %v7015_v13, 16  ;;  %v435_v50 = vsel %vm359_vm1, %v430_v28, %v434_v29  ;;  %v444_v52 = vshrl.u32 %v7022_v22, 16  ;;  %v7059_v62 = vld [vmem:[%s6878_s6 + $0x68] sm:$0xff]  }
  0x30   : > { %5962 = vmatmul.mubr.msk.bf16.gmra.mrb[8].mxu0 %vm508_vm3, %v1781_v14  ;;  %v448_v53 = vshll.u32 %v7026_v20, 16  ;;  %v438_v55 = vor.u32 %v436_v36, %v434_v29  ;;  %v442_v58 = vrot.slane %v440_v39, 1  ;;  %v1812_v60 = vrot.slane %v1810_v40, 1  ;;  %v7075_v29 = vld [vmem:[%s6878_s6 + $0x78] sm:$0xff]  }
  0x31   : > { %5965 = vmatprep.mubr.msk.bf16.mxu0 %vm508_vm3, %v1790_v30  ;;  %v1807_v54 = vor.u32 %v1806_v46, %v1803_v45  ;;  %v1815_v61 = vrot.slane %v1813_v48, 2  ;;  %v1799_v63 = vsel %vm1719_vm2, %v1789_v24, %v1798_v44  ;;  %v1819_v3 = vshrl.u32 %v7037_v41, 16  ;;  %v7085_v46 = vld [vmem:[%s6878_s6 + $0x70] sm:$0xff]  }
  0x32   : > { %v1822_v4 = vshll.u32 %v7037_v41, 16  ;;  %v446_v10 = vor.u32 %v444_v52, %v442_v58  ;;  %v450_v14 = vrot.slane %v448_v53, 1  ;;  %v456_v25 = vshll.u32 %v7055_v57, 16 }
  0x33   : > { %v1808_v5 = vsel %vm1719_vm2, %v1798_v44, %v1807_v54  ;;  %v1821_v16 = vrot.slane %v1819_v3, 1  ;;  %v443_v24 = vsel %vm359_vm1, %v438_v55, %v442_v58  ;;  %v452_v26 = vshrl.u32 %v7026_v20, 16 }
  0x34   : > { %v1824_v21 = vrot.slane %v1822_v4, 2  ;;  %v1828_v28 = vshrl.u32 %v7047_v49, 16  ;;  %v1816_v30 = vor.u32 %v1815_v61, %v1812_v60  ;;  %v1831_v32 = vshll.u32 %v7047_v49, 16  ;;  %v7094_v60 = vld [vmem:[%s6878_s6 + $0x78] sm:$0xff]  }
  0x35   : > { %v460_v35 = vshrl.u32 %v7055_v57, 16  ;;  %v451_v36 = vsel %vm359_vm1, %v446_v10, %v450_v14  ;;  %v464_v39 = vshll.u32 %v7059_v62, 16  ;;  %v458_v40 = vrot.slane %v456_v25, 1  ;;  %9120 = vst [vmem:[#allocation3_spill] sm:$0xff] %v7094_v60 }
  0x36   : > { %5814 = vmatmul.mubr.msk.bf16.gmra.mrb[12].mxu1 %vm508_vm3, %v427_v37  ;;  %v1825_v37 = vor.u32 %v1824_v21, %v1821_v16  ;;  %v1837_v44 = vshrl.u32 %v7067_v15, 16  ;;  %v1840_v45 = vshll.u32 %v7067_v15, 16  ;;  %v454_v48 = vor.u32 %v452_v26, %v450_v14  ;;  %v7103_v16 = vld [vmem:[%s6878_s6 + $0x88] sm:$0xff]  }
  0x37   : > { %5817 = vmatprep.mubr.msk.bf16.mxu1 %vm508_vm3, %v435_v50  ;;  %v7089_v50 = vld [vmem:[%s6878_s6 + $0x80] sm:$0xff]   ;;  %v1817_v52 = vsel %vm1719_vm2, %v1807_v54, %v1816_v30  ;;  %v1830_v53 = vrot.slane %v1828_v28, 1  ;;  %v1833_v55 = vrot.slane %v1831_v32, 2  ;;  %v462_v58 = vor.u32 %v460_v35, %v458_v40 }
  0x38   : > { %5966 = vmatmul.mubr.msk.bf16.gmra.mrb[12].mxu0 %vm508_vm3, %v1799_v63  ;;  %v1826_v61 = vsel %vm1719_vm2, %v1816_v30, %v1825_v37  ;;  %v466_v63 = vrot.slane %v464_v39, 1  ;;  %v1839_v3 = vrot.slane %v1837_v44, 1  ;;  %v1842_v4 = vrot.slane %v1840_v45, 2  ;;  %v7113_v39 = vld [vmem:[%s6878_s6 + $0x80] sm:$0xff]   ;;  %v7116_v44 = vld [vmem:[%s6878_s6 + $0x90] sm:$0xff]  }
  0x39   : > { %5969 = vmatprep.mubr.msk.bf16.mxu0 %vm508_vm3, %v1808_v5  ;;  %v472_v5 = vshll.u32 %v7085_v46, 16  ;;  %v468_v54 = vshrl.u32 %v7059_v62, 16  ;;  %v1846_v10 = vshrl.u32 %v7075_v29, 16  ;;  %v1849_v14 = vshll.u32 %v7075_v29, 16  ;;  %9121 = vst [vmem:[#allocation4_spill] sm:$0xff] %v7113_v39 }
  0x3a   : > { %v459_v21 = vsel %vm359_vm1, %v454_v48, %v458_v40  ;;  %v1834_v25 = vor.u32 %v1833_v55, %v1830_v53  ;;  %v480_v26 = vshll.u32 %v7094_v60, 16  ;;  %v467_v28 = vsel %vm359_vm1, %v462_v58, %v466_v63  ;;  %v7122_v58 = vld [vmem:[%s6878_s6 + $0x88] sm:$0xff]  }
  0x3b   : > { %v1843_v30 = vor.u32 %v1842_v4, %v1839_v3  ;;  %v1855_v32 = vshrl.u32 %v7089_v50, 16  ;;  %v1858_v35 = vshll.u32 %v7089_v50, 16  ;;  %v470_v40 = vor.u32 %v468_v54, %v466_v63 }
  0x3c   : > { %v1848_v45 = vrot.slane %v1846_v10, 1  ;;  %v1851_v48 = vrot.slane %v1849_v14, 2  ;;  %v482_v55 = vrot.slane %v480_v26, 1  ;;  %v484_v10 = vshrl.u32 %v7094_v60, 16 }
  0x3d   : > { %v1857_v3 = vrot.slane %v1855_v32, 1  ;;  %v1860_v4 = vrot.slane %v1858_v35, 2  ;;  %v1864_v14 = vshrl.u32 %v7103_v16, 16  ;;  %v1873_v32 = vshrl.u32 %v7116_v44, 16 }
  0x3e   : > { %5818 = vmatmul.mubr.msk.bf16.gmra.mrb[16].mxu1 %vm508_vm3, %v443_v24  ;;  %v476_v24 = vshrl.u32 %v7085_v46, 16  ;;  %v1852_v54 = vor.u32 %v1851_v48, %v1848_v45  ;;  %v1876_v35 = vshll.u32 %v7116_v44, 16  ;;  %v486_v45 = vor.u32 %v484_v10, %v482_v55 }
  0x3f   : > { %5821 = vmatprep.mubr.msk.bf16.mxu1 %vm508_vm3, %v451_v36  ;;  %v474_v36 = vrot.slane %v472_v5, 1  ;;  %v488_v5 = vshll.u32 %v7113_v39, 16  ;;  %v1866_v48 = vrot.slane %v1864_v14, 1 }
  0x40   : > { %5970 = vmatmul.mubr.msk.bf16.gmra.mrb[16].mxu0 %vm508_vm3, %v1817_v52  ;;  %v1835_v52 = vsel %vm1719_vm2, %v1825_v37, %v1834_v25  ;;  %v1713_v37 = vld [vmem:[%s6878_s6 + $0x98] sm:$0x3]  ;;  %v1878_v60 = vrot.slane %v1876_v35, 2 }
  0x41   : > { %5973 = vmatprep.mubr.msk.bf16.mxu0 %vm508_vm3, %v1826_v61  ;;  %v478_v53 = vor.u32 %v476_v24, %v474_v36  ;;  %v1844_v61 = vsel %vm1719_vm2, %v1834_v25, %v1843_v30  ;;  %v475_v63 = vsel %vm359_vm1, %v470_v40, %v474_v36  ;;  %v492_v25 = vshrl.u32 %v7113_v39, 16 }
  0x42   : > { %v496_v24 = vshll.u32 %v7122_v58, 16  ;;  %v490_v36 = vrot.slane %v488_v5, 1  ;;  %v1853_v40 = vsel %vm1719_vm2, %v1843_v30, %v1852_v54  ;;  %v1875_v39 = vrot.slane %v1873_v32, 1 }
  0x43   : > { %v483_v26 = vsel %vm359_vm1, %v478_v53, %v482_v55  ;;  %v5467_v53 = vcombine.low %v1713_v37, %v1713_v37  ;;  %v500_v30 = vshrl.u32 %v7122_v58, 16 }
  0x44   : > { %v491_v5 = vsel %vm359_vm1, %v486_v45, %v490_v36 }
  0x45   : > { %v1882_v10 = vshrl.u32 %v5467_v53, 16  ;;  %v1885_v14 = vshll.u32 %v5467_v53, 16 }
  0x46   : > { %5822 = vmatmul.mubr.msk.bf16.gmra.mrb[20].mxu1 %vm508_vm3, %v459_v21  ;;  %v1867_v21 = vshll.u32 %v7103_v16, 16 }
  0x47   : > { %5825 = vmatprep.mubr.msk.bf16.mxu1 %vm508_vm3, %v467_v28  ;;  %v1861_v28 = vor.u32 %v1860_v4, %v1857_v3  ;;  %v498_v4 = vrot.slane %v496_v24, 1 }
  0x48   : > { %5974 = vmatmul.mubr.msk.bf16.gmra.mrb[20].mxu0 %vm508_vm3, %v1835_v52  ;;  %v1869_v52 = vrot.slane %v1867_v21, 2  ;;  %v1879_v21 = vor.u32 %v1878_v60, %v1875_v39 }
  0x49   : > { %5977 = vmatprep.mubr.msk.bf16.mxu0 %vm508_vm3, %v1844_v61  ;;  %v494_v61 = vor.u32 %v492_v25, %v490_v36  ;;  %v1862_v3 = vsel %vm1719_vm2, %v1852_v54, %v1861_v28  ;;  %v2160_v54 = vld [vmem:[%s6878_s6 + $0x8] sm:$0xc]  ;;  %v2200_v25 = vrot.slane %v7116_v44, 2  ;;  %v502_v24 = vor.u32 %v500_v30, %v498_v4 }
  0x4a   : > { %v1870_v55 = vor.u32 %v1869_v52, %v1866_v48  ;;  %v1884_v36 = vrot.slane %v1882_v10, 1  ;;  %v5487_v48 = vcombine.low %v2160_v54, %v6892_v11  ;;  %v2176_v10 = vrot.slane %v6954_v0, 2 }
  0x4b   : > { %v499_v37 = vsel %vm359_vm1, %v494_v61, %v498_v4  ;;  %v2168_v61 = vrot.slane %v6895_v12, 2  ;;  %v2172_v4 = vrot.slane %v6922_v33, 2  ;;  %v2180_v54 = vrot.slane %v6981_v31, 2 }
  0x4c   : > { %v1871_v32 = vsel %vm1719_vm2, %v1861_v28, %v1870_v55  ;;  %v1880_v45 = vsel %vm1719_vm2, %v1870_v55, %v1879_v21  ;;  %v2167_v52 = vrot.slane %v5487_v48, 2  ;;  %v2188_v48 = vrot.slane %v7037_v41, 2 }
  0x4e   : > { %5826 = vmatmul.mubr.msk.bf16.gmra.mrb[24].mxu1 %vm508_vm3, %v475_v63  ;;  %v504_v63 = vshll.u32 %v7142_v17, 16  ;;  %v2169_v11 = vsel %vm2166_vm4, %v2167_v52, %v2168_v61  ;;  %v2190_v52 = vrot.slane %v7047_v49, 2 }
  0x4f   : > { %5829 = vmatprep.mubr.msk.bf16.mxu1 %vm508_vm3, %v483_v26  ;;  %v2202_v26 = vrot.slane %v5467_v53, 2 }
  0x50   : > { %5978 = vmatmul.mubr.msk.bf16.gmra.mrb[24].mxu0 %vm508_vm3, %v1853_v40  ;;  %v506_v35 = vrot.slane %v504_v63, 1  ;;  %v1887_v40 = vrot.slane %v1885_v14, 2  ;;  %v7189_v63 = vld [vmem:[%s9107_s1 + $0xe] sm:$0x3] }
  0x51   : > { %5981 = vmatprep.mubr.msk.bf16.mxu0 %vm508_vm3, %v1862_v3  ;;  %v7161_v60 = vsel %vm2166_vm4, %v2200_v25, %v2202_v26  ;;  %v2170_v3 = vrot.slane %v6908_v19, 2 }
  0x52   : > { %v507_v39 = vsel %vm359_vm1, %v502_v24, %v506_v35  ;;  %v1888_v28 = vor.u32 %v1887_v40, %v1884_v36  ;;  %v2184_v35 = vrot.slane %v7011_v2, 2 }
  0x53   : > { %v2171_v30 = vsel %vm2166_vm4, %v2168_v61, %v2170_v3  ;;  %v2173_v55 = vsel %vm2166_vm4, %v2170_v3, %v2172_v4  ;;  %v2192_v61 = vrot.slane %v7067_v15, 2  ;;  %v2194_v3 = vrot.slane %v7075_v29, 2 }
  0x54   : > { %v1889_v53 = vsel %vm1719_vm2, %v1879_v21, %v1888_v28  ;;  %v2178_v21 = vrot.slane %v6963_v6, 2 }
  0x56   : > { %5830 = vmatmul.mubr.msk.bf16.gmra.mrb[28].mxu1 %vm508_vm3, %v491_v5  ;;  %v1059_v5 = vsel %vm563_vm0, %v7042_v42, 0  ;;  %v2174_v42 = vrot.slane %v6933_v47, 2  ;;  %v2179_v24 = vsel %vm2166_vm4, %v2176_v10, %v2178_v21  ;;  %v2181_v26 = vsel %vm2166_vm4, %v2178_v21, %v2180_v54 }
  0x57   : > { %5833 = vmatprep.mubr.msk.bf16.mxu1 %vm508_vm3, %v499_v37  ;;  %v7207_v37 = vld [vmem:[%s9107_s1 + $0x6] sm:$0x3] }
  0x58   : > { %5982 = vmatmul.mubr.msk.bf16.gmra.mrb[28].mxu0 %vm508_vm3, %v1871_v32  ;;  %v2177_v14 = vsel %vm2166_vm4, %v2174_v42, %v2176_v10  ;;  %v2182_v32 = vrot.slane %v6993_v43, 2  ;;  %v2474_v10 = vld [vmem:[%s6878_s6 + $0x10] sm:$0xc] }
  0x59   : > { %5985 = vmatprep.mubr.msk.bf16.mxu0 %vm508_vm3, %v1880_v45  ;;  %v2186_v45 = vrot.slane %v7015_v13, 2 }
  0x5a   : > { %v2183_v36 = vsel %vm2166_vm4, %v2180_v54, %v2182_v32  ;;  %v2185_v40 = vsel %vm2166_vm4, %v2182_v32, %v2184_v35  ;;  %v9123_v54 = vld [vmem:[#allocation4_spill] sm:$0xff] }
  0x5b   : > { %v2189_v28 = vsel %vm2166_vm4, %v2186_v45, %v2188_v48 }
  0x5e   : > { %5834 = vmatmul.mubr.msk.bf16.gmra.mrb[32].mxu1 %vm508_vm3, %v507_v39  ;;  %v2187_v39 = vsel %vm2166_vm4, %v2184_v35, %v2186_v45  ;;  %v7282_v35 = vld [vmem:[%s6878_s6 + $0x18] sm:$0xff]   ;;  %v7294_v45 = vld [vmem:[%s6878_s6 + $0x20] sm:$0xff]  }
  0x5f   : > { %5839 = vmatprep.mubr.msk.bf16.mxu1 %vm508_vm3, %v6885_v8  ;;  %v2698_v8 = vsel %vm563_vm0, %v6949_v59, 0  ;;  %v2175_v59 = vsel %vm2166_vm4, %v2172_v4, %v2174_v42  ;;  %v2196_v4 = vrot.slane %v7089_v50, 2 }
  0x60   : > { %5986 = vmatmul.mubr.msk.bf16.gmra.mrb[32].mxu0 %vm508_vm3, %v1889_v53  ;;  %v2191_v53 = vsel %vm2166_vm4, %v2188_v48, %v2190_v52 }
  0x61   : > { %5991 = vmatprep.mubr.msk.bf16.mxu0 %vm508_vm3, %v2169_v11  ;;  %v2193_v11 = vsel %vm2166_vm4, %v2190_v52, %v2192_v61 }
  0x66   : > { %5840 = vmatmul.mubr.msk.bf16.vlgmr.msra.gmra.mrb[0].mxu1 %vm508_vm3, %v6888_v9 }
  0x67   : > { %5843 = vmatprep.mubr.msk.bf16.mxu1 %vm508_vm3, %v6905_v18  ;;  %5876 = vmatpush3.bf16.msra.mxu1 %v1059_v5  ;;  %v2195_v5 = vsel %vm2166_vm4, %v2192_v61, %v2194_v3  ;;  %v2609_v61 = vrot.slane %v7294_v45, 2 }
  0x68   : > { %5992 = vmatmul.mubr.msk.bf16.vlgmr.msra.gmra.mrb[0].mxu0 %vm508_vm3, %v2171_v30  ;;  %6472 = vmatprep.subr.msk.bf16.mxu1 %vm563_vm0, %v7207_v37  ;;  %v2197_v30 = vsel %vm2166_vm4, %v2194_v3, %v2196_v4  ;;  %v7315_v3 = vld [vmem:[%s6878_s6 + $0x30] sm:$0xff]  }
  0x69   : > { %6028 = vmatpush3.bf16.msra.mxu0 %v2698_v8  ;;  %5995 = vmatprep.mubr.msk.bf16.mxu0 %vm508_vm3, %v2173_v55  ;;  %v960_v8 = vld [vmem:[%s6878_s6] sm:$0xe]  ;;  %v2198_v55 = vrot.slane %v7103_v16, 2 }
  0x6a   : > { %6476 = vmatprep.subr.msk.bf16.mxu0 %vm563_vm0, %v7189_v63  ;;  %v5409_v42 = vcombine.low %v960_v8, %v6882_v7  ;;  %v968_v7 = vrot.slane %v6888_v9, 1  ;;  %v970_v9 = vrot.slane %v6905_v18, 1  ;;  %v7327_v8 = vld [vmem:[%s9107_s1 + $0x10] sm:$0x3] }
  0x6b   : > { %v2199_v21 = vsel %vm2166_vm4, %v2196_v4, %v2198_v55  ;;  %v3145_v4 = vsel %vm563_vm0, %v7189_v63, 0  ;;  %v2613_v63 = vrot.slane %v7315_v3, 2 }
  0x6c   : > { %v971_v52 = vsel %vm966_vm5, %v968_v7, %v970_v9 }
  0x6e   : > { %5844 = vmatmul.mubr.msk.bf16.gmra.mrb[4].mxu1 %vm508_vm3, %v6912_v23 }
  0x6f   : > { %5847 = vmatprep.mubr.msk.bf16.mxu1 %vm508_vm3, %v6925_v34 }
  0x70   : > { %5996 = vmatmul.mubr.msk.bf16.gmra.mrb[4].mxu0 %vm508_vm3, %v2175_v59  ;;  %v7267_v59 = vld [vmem:[%s6878_s6 + $0x14] sm:$0xf] }
  0x71   : > { %5999 = vmatprep.mubr.msk.bf16.mxu0 %vm508_vm3, %v2177_v14  ;;  %v9122_v14 = vld [vmem:[#allocation3_spill] sm:$0xff]  ;;  %v7279_v32 = vcombine.low %v2474_v10, %v7267_v59  ;;  %v978_v10 = vrot.slane %v6957_v1, 1 }
  0x76   : > { %5848 = vmatmul.mubr.msk.bf16.gmra.mrb[8].mxu1 %vm508_vm3, %v6938_v51 }
  0x77   : > { %5851 = vmatprep.mubr.msk.bf16.mxu1 %vm508_vm3, %v6957_v1 }
  0x78   : > { %6000 = vmatmul.mubr.msk.bf16.gmra.mrb[8].mxu0 %vm508_vm3, %v2179_v24  ;;  %v2201_v24 = vsel %vm2166_vm4, %v2198_v55, %v2200_v25  ;;  %v2607_v25 = vrot.slane %v7282_v35, 2 }
  0x79   : > { %6003 = vmatprep.mubr.msk.bf16.mxu0 %vm508_vm3, %v2181_v26  ;;  %v967_v26 = vrot.slane %v5409_v42, 1 }
  0x7e   : > { %5852 = vmatmul.mubr.msk.bf16.gmra.mrb[12].mxu1 %vm508_vm3, %v6972_v27 }
  0x7f   : > { %5855 = vmatprep.mubr.msk.bf16.mxu1 %vm508_vm3, %v6987_v38 }
  0x80   : > { %6004 = vmatmul.mubr.msk.bf16.gmra.mrb[12].mxu0 %vm508_vm3, %v2183_v36  ;;  %v969_v36 = vsel %vm966_vm5, %v967_v26, %v968_v7  ;;  %v980_v26 = vrot.slane %v6972_v27, 1  ;;  %v7347_v7 = vld [vmem:[%s6878_s6 + $0x48] sm:$0xff]   ;;  %v982_v27 = vrot.slane %v6987_v38, 1 }
  0x81   : > { %6007 = vmatprep.mubr.msk.bf16.mxu0 %vm508_vm3, %v2185_v40  ;;  %v2606_v40 = vrot.slane %v7279_v32, 2  ;;  %v2619_v1 = vrot.slane %v7347_v7, 2 }
  0x83   : > { %v2608_v48 = vsel %vm2166_vm4, %v2606_v40, %v2607_v25 }
  0x86   : > { %5856 = vmatmul.mubr.msk.bf16.gmra.mrb[16].mxu1 %vm508_vm3, %v7002_v56 }
  0x87   : > { %5859 = vmatprep.mubr.msk.bf16.mxu1 %vm508_vm3, %v7022_v22 }
  0x88   : > { %6008 = vmatmul.mubr.msk.bf16.gmra.mrb[16].mxu0 %vm508_vm3, %v2187_v39  ;;  %v972_v39 = vrot.slane %v6912_v23, 1  ;;  %v2610_v23 = vsel %vm2166_vm4, %v2607_v25, %v2609_v61  ;;  %v981_v25 = vsel %vm966_vm5, %v978_v10, %v980_v26 }
  0x89   : > { %6011 = vmatprep.mubr.msk.bf16.mxu0 %vm508_vm3, %v2189_v28  ;;  %v7299_v28 = vld [vmem:[%s6878_s6 + $0x28] sm:$0xff]  }
  0x8a   : > { %v973_v18 = vsel %vm966_vm5, %v970_v9, %v972_v39 }
  0x8e   : > { %5860 = vmatmul.mubr.msk.bf16.gmra.mrb[20].mxu1 %vm508_vm3, %v7026_v20 }
  0x8f   : > { %5863 = vmatprep.mubr.msk.bf16.mxu1 %vm508_vm3, %v7055_v57 }
  0x90   : > { %6012 = vmatmul.mubr.msk.bf16.gmra.mrb[20].mxu0 %vm508_vm3, %v2191_v53  ;;  %v2611_v53 = vrot.slane %v7299_v28, 2 }
  0x91   : > { %6015 = vmatprep.mubr.msk.bf16.mxu0 %vm508_vm3, %v2193_v11  ;;  %v1498_v11 = vsel %vm563_vm0, %v7207_v37, 0  ;;  %v7322_v37 = vld [vmem:[%s6878_s6 + $0x38] sm:$0xff]  }
  0x92   : > { %v2614_v42 = vsel %vm2166_vm4, %v2611_v53, %v2613_v63 }
  0x96   : > { %5864 = vmatmul.mubr.msk.bf16.gmra.mrb[24].mxu1 %vm508_vm3, %v7059_v62 }
  0x97   : > { %5867 = vmatprep.mubr.msk.bf16.mxu1 %vm508_vm3, %v7085_v46 }
  0x98   : > { %6016 = vmatmul.mubr.msk.bf16.gmra.mrb[24].mxu0 %vm508_vm3, %v2195_v5  ;;  %v2612_v5 = vsel %vm2166_vm4, %v2609_v61, %v2611_v53  ;;  %v7365_v61 = vld [vmem:[%s6878_s6 + $0x58] sm:$0xff]  }
  0x99   : > { %6019 = vmatprep.mubr.msk.bf16.mxu0 %vm508_vm3, %v2197_v30  ;;  %v976_v30 = vrot.slane %v6938_v51, 1  ;;  %v2615_v51 = vrot.slane %v7322_v37, 2  ;;  %v2623_v38 = vrot.slane %v7365_v61, 2 }
  0x9e   : > { %5868 = vmatmul.mubr.msk.bf16.gmra.mrb[28].mxu1 %vm508_vm3, %v9122_v14 }
  0x9f   : > { %5871 = vmatprep.mubr.msk.bf16.mxu1 %vm508_vm3, %v9123_v54 }
  0xa0   : > { %6020 = vmatmul.mubr.msk.bf16.gmra.mrb[28].mxu0 %vm508_vm3, %v2199_v21  ;;  %v7342_v21 = vld [vmem:[%s6878_s6 + $0x40] sm:$0xff]  }
  0xa1   : > { %6023 = vmatprep.mubr.msk.bf16.mxu0 %vm508_vm3, %v2201_v24  ;;  %v2616_v24 = vsel %vm2166_vm4, %v2613_v63, %v2615_v51  ;;  %v2617_v40 = vrot.slane %v7342_v21, 2 }
  0xa3   : > { %v2618_v9 = vsel %vm2166_vm4, %v2615_v51, %v2617_v40 }
  0xa6   : > { %5872 = vmatmul.mubr.msk.bf16.gmra.mrb[32].mxu1 %vm508_vm3, %v7122_v58 }
  0xa7   : > { %5877 = vmatprep.mubr.msk.bf16.mxu1 %vm508_vm3, %v969_v36  ;;  %v979_v36 = vsel %vm966_vm5, %v976_v30, %v978_v10 }
  0xa8   : > { %6024 = vmatmul.mubr.msk.bf16.gmra.mrb[32].mxu0 %vm508_vm3, %v7161_v60  ;;  %v974_v60 = vrot.slane %v6925_v34, 1 }
  0xa9   : > { %6029 = vmatprep.mubr.msk.bf16.mxu0 %vm508_vm3, %v2608_v48  ;;  %v7360_v48 = vld [vmem:[%s6878_s6 + $0x50] sm:$0xff]  }
  0xaa   : > { %v975_v34 = vsel %vm966_vm5, %v972_v39, %v974_v60  ;;  %v977_v55 = vsel %vm966_vm5, %v974_v60, %v976_v30  ;;  %v2620_v39 = vsel %vm2166_vm4, %v2617_v40, %v2619_v1  ;;  %v2621_v53 = vrot.slane %v7360_v48, 2  ;;  %v7378_v60 = vld [vmem:[%s6878_s6 + $0x60] sm:$0xff]   ;;  %v7383_v30 = vld [vmem:[%s6878_s6 + $0x68] sm:$0xff]  }
  0xab   : > { %v2625_v63 = vrot.slane %v7378_v60, 2 }
  0xad   : > { %v2626_v51 = vsel %vm2166_vm4, %v2623_v38, %v2625_v63 }
  0xae   : > { %5878 = vmatmul.mubr.msk.bf16.vlgmr.msra.gmra.mrb[0].mxu1 %vm508_vm3, %v971_v52  ;;  %v984_v52 = vrot.slane %v7002_v56, 1  ;;  %v986_v56 = vrot.slane %v7022_v22, 1  ;;  %v2627_v22 = vrot.slane %v7383_v30, 2 }
  0xaf   : > { %5881 = vmatprep.mubr.msk.bf16.mxu1 %vm508_vm3, %v973_v18  ;;  %5914 = vmatpush3.bf16.msra.mxu1 %v1498_v11  ;;  %v983_v18 = vsel %vm966_vm5, %v980_v26, %v982_v27  ;;  %v7401_v26 = vld [vmem:[%s6878_s6 + $0x78] sm:$0xff]  }
  0xb0   : > { %6030 = vmatmul.mubr.msk.bf16.vlgmr.msra.gmra.mrb[0].mxu0 %vm508_vm3, %v2610_v23  ;;  %v985_v11 = vsel %vm966_vm5, %v982_v27, %v984_v52  ;;  %v2622_v23 = vsel %vm2166_vm4, %v2619_v1, %v2621_v53  ;;  %v2628_v10 = vsel %vm2166_vm4, %v2625_v63, %v2627_v22 }
  0xb1   : > { %6066 = vmatpush3.bf16.msra.mxu0 %v3145_v4  ;;  %6033 = vmatprep.mubr.msk.bf16.mxu0 %vm508_vm3, %v2612_v5  ;;  %v2624_v4 = vsel %vm2166_vm4, %v2621_v53, %v2623_v38  ;;  %v988_v5 = vrot.slane %v7026_v20, 1  ;;  %v990_v20 = vrot.slane %v7055_v57, 1  ;;  %v2631_v57 = vrot.slane %v7401_v26, 2 }
  0xb2   : > { %6477 = vmatprep.subr.msk.bf16.mxu0 %vm563_vm0, %v7327_v8 }
  0xb6   : > { %5882 = vmatmul.mubr.msk.bf16.gmra.mrb[4].mxu1 %vm508_vm3, %v975_v34  ;;  %v987_v34 = vsel %vm966_vm5, %v984_v52, %v986_v56  ;;  %v7419_v52 = vld [vmem:[%s6878_s6 + $0x88] sm:$0xff]  }
  0xb7   : > { %5885 = vmatprep.mubr.msk.bf16.mxu1 %vm508_vm3, %v977_v55  ;;  %v989_v55 = vsel %vm966_vm5, %v986_v56, %v988_v5  ;;  %v1000_v56 = vrot.slane %v7122_v58, 1  ;;  %v2924_v58 = vshll.u32 %v7279_v32, 16 }
  0xb8   : > { %6034 = vmatmul.mubr.msk.bf16.gmra.mrb[4].mxu0 %vm508_vm3, %v2614_v42  ;;  %v7396_v42 = vld [vmem:[%s6878_s6 + $0x70] sm:$0xff]  }
  0xb9   : > { %6037 = vmatprep.mubr.msk.bf16.mxu0 %vm508_vm3, %v2616_v24  ;;  %v992_v24 = vrot.slane %v7059_v62, 1  ;;  %v2629_v40 = vrot.slane %v7396_v42, 2  ;;  %v994_v62 = vrot.slane %v7085_v46, 1  ;;  %v2635_v46 = vrot.slane %v7419_v52, 2 }
  0xbb   : > { %v2630_v1 = vsel %vm2166_vm4, %v2627_v22, %v2629_v40  ;;  %v2632_v27 = vsel %vm2166_vm4, %v2629_v40, %v2631_v57  ;;  %v2921_v22 = vshrl.u32 %v7279_v32, 16  ;;  %v6547_v40 = vld [vmem:[%s6878_s6 + $0xa0] ss:$0 sps:$4 sm:$0x33]  }
  0xbd   : > { %v2923_v32 = vrot.slane %v2921_v22, 2 }
  0xbe   : > { %5886 = vmatmul.mubr.msk.bf16.gmra.mrb[8].mxu1 %vm508_vm3, %v979_v36  ;;  %v991_v36 = vsel %vm966_vm5, %v988_v5, %v990_v20 }
  0xbf   : > { %5889 = vmatprep.mubr.msk.bf16.mxu1 %vm508_vm3, %v981_v25  ;;  %v993_v25 = vsel %vm966_vm5, %v990_v20, %v992_v24  ;;  %v2932_v20 = vshll.u32 %v7282_v35, 16 }
  0xc0   : > { %6038 = vmatmul.mubr.msk.bf16.gmra.mrb[8].mxu0 %vm508_vm3, %v2618_v9  ;;  %v7414_v9 = vld [vmem:[%s6878_s6 + $0x80] sm:$0xff]  }
  0xc1   : > { %6041 = vmatprep.mubr.msk.bf16.mxu0 %vm508_vm3, %v2620_v39  ;;  %v996_v39 = vrot.slane %v9122_v14, 1  ;;  %v2633_v53 = vrot.slane %v7414_v9, 2  ;;  %v998_v14 = vrot.slane %v9123_v54, 1 }
  0xc3   : > { %v2634_v38 = vsel %vm2166_vm4, %v2631_v57, %v2633_v53  ;;  %v2636_v5 = vsel %vm2166_vm4, %v2633_v53, %v2635_v46 }
  0xc6   : > { %5890 = vmatmul.mubr.msk.bf16.gmra.mrb[12].mxu1 %vm508_vm3, %v983_v18  ;;  %v995_v18 = vsel %vm966_vm5, %v992_v24, %v994_v62 }
  0xc7   : > { %5893 = vmatprep.mubr.msk.bf16.mxu1 %vm508_vm3, %v985_v11  ;;  %v997_v11 = vsel %vm966_vm5, %v994_v62, %v996_v39  ;;  %v2926_v62 = vrot.slane %v2924_v58, 3  ;;  %v1411_v58 = vrot.slane %v6922_v33, 1  ;;  %v2968_v33 = vshll.u32 %v7322_v37, 16 }
  0xc8   : > { %6042 = vmatmul.mubr.msk.bf16.gmra.mrb[12].mxu0 %vm508_vm3, %v2622_v23  ;;  %v7432_v23 = vld [vmem:[%s6878_s6 + $0x90] sm:$0xff]  }
  0xc9   : > { %6045 = vmatprep.mubr.msk.bf16.mxu0 %vm508_vm3, %v2624_v4  ;;  %v7436_v4 = vld [vmem:[%s6878_s6 + $0x98] sm:$0xff]   ;;  %v2637_v63 = vrot.slane %v7432_v23, 2 }
  0xca   : > { %v2639_v54 = vrot.slane %v7436_v4, 2 }
  0xcb   : > { %v2638_v24 = vsel %vm2166_vm4, %v2635_v46, %v2637_v63  ;;  %v2941_v46 = vshll.u32 %v7294_v45, 16 }
  0xce   : > { %5894 = vmatmul.mubr.msk.bf16.gmra.mrb[16].mxu1 %vm508_vm3, %v987_v34  ;;  %v999_v34 = vsel %vm966_vm5, %v996_v39, %v998_v14  ;;  %v2934_v39 = vrot.slane %v2932_v20, 3 }
  0xcf   : > { %5897 = vmatprep.mubr.msk.bf16.mxu1 %vm508_vm3, %v989_v55  ;;  %v1001_v55 = vsel %vm966_vm5, %v998_v14, %v1000_v56 }
  0xd0   : > { %6046 = vmatmul.mubr.msk.bf16.gmra.mrb[16].mxu0 %vm508_vm3, %v2626_v51  ;;  %v2929_v51 = vshrl.u32 %v7282_v35, 16 }
  0xd1   : > { %6049 = vmatprep.mubr.msk.bf16.mxu0 %vm508_vm3, %v2628_v10  ;;  %v1002_v10 = vrot.slane %v7142_v17, 1  ;;  %v2641_v17 = vrot.slane %v6547_v40, 2 }
  0xd6   : > { %5898 = vmatmul.mubr.msk.bf16.gmra.mrb[20].mxu1 %vm508_vm3, %v991_v36  ;;  %v2640_v36 = vsel %vm2166_vm4, %v2637_v63, %v2639_v54 }
  0xd7   : > { %5901 = vmatprep.mubr.msk.bf16.mxu1 %vm508_vm3, %v993_v25  ;;  %v9124_v25 = vld [vmem:[#allocation2_spill] sm:$0xff] }
  0xd8   : > { %6050 = vmatmul.mubr.msk.bf16.gmra.mrb[20].mxu0 %vm508_vm3, %v2630_v1  ;;  %v1406_v57 = vrot.slane %v9124_v25, 1  ;;  %v1407_v1 = vrot.slane %v6895_v12, 1  ;;  %v2947_v12 = vshrl.u32 %v7299_v28, 16  ;;  %v2965_v25 = vshrl.u32 %v7322_v37, 16 }
  0xd9   : > { %6053 = vmatprep.mubr.msk.bf16.mxu0 %vm508_vm3, %v2632_v27  ;;  %v2931_v27 = vrot.slane %v2929_v51, 2 }
  0xda   : > { %v1408_v53 = vsel %vm966_vm5, %v1406_v57, %v1407_v1  ;;  %v2949_v51 = vrot.slane %v2947_v12, 2  ;;  %v3459_v57 = vsel %vm563_vm0, %v7327_v8, 0  ;;  %v2983_v12 = vshrl.u32 %v7347_v7, 16 }
  0xdb   : > { %v2935_v14 = vor.u32 %v2934_v39, %v2931_v27 }
  0xde   : > { %5902 = vmatmul.mubr.msk.bf16.gmra.mrb[24].mxu1 %vm508_vm3, %v995_v18  ;;  %v1003_v18 = vsel %vm966_vm5, %v1000_v56, %v1002_v10  ;;  %v2642_v56 = vsel %vm2166_vm4, %v2639_v54, %v2641_v17  ;;  %v2956_v54 = vshrl.u32 %v7315_v3, 16  ;;  %v2967_v17 = vrot.slane %v2965_v25, 2 }
  0xdf   : > { %5905 = vmatprep.mubr.msk.bf16.mxu1 %vm508_vm3, %v997_v11  ;;  %v2938_v11 = vshrl.u32 %v7294_v45, 16  ;;  %v1421_v25 = vrot.slane %v6993_v43, 1 }
  0xe0   : > { %6054 = vmatmul.mubr.msk.bf16.gmra.mrb[24].mxu0 %vm508_vm3, %v2634_v38  ;;  %v2927_v38 = vor.u32 %v2926_v62, %v2923_v32  ;;  %v2958_v62 = vrot.slane %v2956_v54, 2  ;;  %v2995_v54 = vshll.u32 %v7360_v48, 16 }
  0xe1   : > { %6057 = vmatprep.mubr.msk.bf16.mxu0 %vm508_vm3, %v2636_v5  ;;  %v2950_v5 = vshll.u32 %v7299_v28, 16  ;;  %v2940_v63 = vrot.slane %v2938_v11, 2 }
  0xe2   : > { %v2936_v22 = vsel %vm2919_vm6, %v2927_v38, %v2935_v14 }
  0xe3   : > { %v2952_v20 = vrot.slane %v2950_v5, 3 }
  0xe5   : > { %v2953_v40 = vor.u32 %v2952_v20, %v2949_v51 }
  0xe6   : > { %5906 = vmatmul.mubr.msk.bf16.gmra.mrb[28].mxu1 %vm508_vm3, %v999_v34  ;;  %v1409_v34 = vrot.slane %v6908_v19, 1 }
  0xe7   : > { %5909 = vmatprep.mubr.msk.bf16.mxu1 %vm508_vm3, %v1001_v55  ;;  %v2943_v55 = vrot.slane %v2941_v46, 3  ;;  %v2974_v46 = vshrl.u32 %v7342_v21, 16 }
  0xe8   : > { %6058 = vmatmul.mubr.msk.bf16.gmra.mrb[28].mxu0 %vm508_vm3, %v2638_v24  ;;  %v1410_v10 = vsel %vm966_vm5, %v1407_v1, %v1409_v34  ;;  %v1412_v19 = vsel %vm966_vm5, %v1409_v34, %v1411_v58  ;;  %v1413_v1 = vrot.slane %v6933_v47, 1  ;;  %v2977_v47 = vshll.u32 %v7342_v21, 16 }
  0xe9   : > { %6061 = vmatprep.mubr.msk.bf16.mxu0 %vm508_vm3, %v2640_v36  ;;  %v2944_v24 = vor.u32 %v2943_v55, %v2940_v63  ;;  %v2959_v36 = vshll.u32 %v7315_v3, 16  ;;  %v2976_v34 = vrot.slane %v2974_v46, 2 }
  0xea   : > { %v1414_v8 = vsel %vm966_vm5, %v1411_v58, %v1413_v1  ;;  %v2979_v63 = vrot.slane %v2977_v47, 3  ;;  %v2985_v58 = vrot.slane %v2983_v12, 2  ;;  %v1425_v47 = vrot.slane %v7015_v13, 1 }
  0xeb   : > { %v2945_v32 = vsel %vm2919_vm6, %v2935_v14, %v2944_v24  ;;  %v2961_v27 = vrot.slane %v2959_v36, 3  ;;  %v2954_v39 = vsel %vm2919_vm6, %v2944_v24, %v2953_v40  ;;  %v2992_v24 = vshrl.u32 %v7360_v48, 16 }
  0xed   : > { %v2962_v11 = vor.u32 %v2961_v27, %v2958_v62 }
  0xee   : > { %5910 = vmatmul.mubr.msk.bf16.gmra.mrb[32].mxu1 %vm508_vm3, %v1003_v18  ;;  %v1415_v18 = vrot.slane %v6954_v0, 1  ;;  %v2986_v0 = vshll.u32 %v7347_v7, 16 }
  0xef   : > { %5915 = vmatprep.mubr.msk.bf16.mxu1 %vm508_vm3, %v1408_v53  ;;  %v2970_v53 = vrot.slane %v2968_v33, 3  ;;  %v2963_v5 = vsel %vm2919_vm6, %v2953_v40, %v2962_v11  ;;  %v2994_v33 = vrot.slane %v2992_v24, 2 }
  0xf0   : > { %6062 = vmatmul.mubr.msk.bf16.gmra.mrb[32].mxu0 %vm508_vm3, %v2642_v56  ;;  %v1416_v38 = vsel %vm966_vm5, %v1413_v1, %v1415_v18  ;;  %v1417_v56 = vrot.slane %v6963_v6, 1  ;;  %v2988_v51 = vrot.slane %v2986_v0, 3  ;;  %v1423_v1 = vrot.slane %v7011_v2, 1 }
  0xf1   : > { %6067 = vmatprep.mubr.msk.bf16.mxu0 %vm508_vm3, %v2936_v22  ;;  %v2971_v14 = vor.u32 %v2970_v53, %v2967_v17  ;;  %v1419_v22 = vrot.slane %v6981_v31, 1  ;;  %v3004_v31 = vshll.u32 %v7365_v61, 16  ;;  %v3010_v17 = vshrl.u32 %v7378_v60, 16 }
  0xf2   : > { %v1418_v20 = vsel %vm966_vm5, %v1415_v18, %v1417_v56  ;;  %v2989_v36 = vor.u32 %v2988_v51, %v2985_v58  ;;  %v3013_v53 = vshll.u32 %v7378_v60, 16  ;;  %v1424_v43 = vsel %vm966_vm5, %v1421_v25, %v1423_v1 }
  0xf3   : > { %v2972_v55 = vsel %vm2919_vm6, %v2962_v11, %v2971_v14  ;;  %v1420_v6 = vsel %vm966_vm5, %v1417_v56, %v1419_v22  ;;  %v3006_v27 = vrot.slane %v3004_v31, 3  ;;  %v3019_v11 = vshrl.u32 %v7383_v30, 16 }
  0xf4   : > { %v3022_v2 = vshll.u32 %v7383_v30, 16  ;;  %v1427_v0 = vrot.slane %v7037_v41, 1  ;;  %v3037_v51 = vshrl.u32 %v7401_v26, 16  ;;  %v3040_v41 = vshll.u32 %v7401_v26, 16 }
  0xf6   : > { %5916 = vmatmul.mubr.msk.bf16.vlgmr.msra.gmra.mrb[0].mxu1 %vm508_vm3, %v1410_v10  ;;  %v2980_v10 = vor.u32 %v2979_v63, %v2976_v34  ;;  %v3024_v56 = vrot.slane %v3022_v2, 3  ;;  %v1426_v34 = vsel %vm966_vm5, %v1423_v1, %v1425_v47  ;;  %v1428_v13 = vsel %vm966_vm5, %v1425_v47, %v1427_v0 }
  0xf7   : > { %5919 = vmatprep.mubr.msk.bf16.mxu1 %vm508_vm3, %v1412_v19  ;;  %v3001_v19 = vshrl.u32 %v7365_v61, 16  ;;  %v3042_v31 = vrot.slane %v3040_v41, 3  ;;  %v3055_v1 = vshrl.u32 %v7419_v52, 16  ;;  %v6548_v41 = vld [vmem:[%s6878_s6 + $0x98] ss:$0 sps:$4 sm:$0x11]  }
  0xf8   : > { %6068 = vmatmul.mubr.msk.bf16.vlgmr.msra.gmra.mrb[0].mxu0 %vm508_vm3, %v2945_v32  ;;  %v2981_v40 = vsel %vm2919_vm6, %v2971_v14, %v2980_v10  ;;  %v2990_v32 = vsel %vm2919_vm6, %v2980_v10, %v2989_v36  ;;  %v3015_v14 = vrot.slane %v3013_v53, 3  ;;  %v1429_v10 = vrot.slane %v7047_v49, 1 }
  0xf9   : > { %6104 = vmatpush3.bf16.msra.mxu0 %v3459_v57  ;;  %6071 = vmatprep.mubr.msk.bf16.mxu0 %vm508_vm3, %v2954_v39  ;;  %v2997_v57 = vrot.slane %v2995_v54, 3  ;;  %v3003_v62 = vrot.slane %v3001_v19, 2  ;;  %v1422_v39 = vsel %vm966_vm5, %v1419_v22, %v1421_v25  ;;  %v3031_v22 = vshll.u32 %v7396_v42, 16 }
  0xfa   : > { %v3039_v19 = vrot.slane %v3037_v51, 2  ;;  %v1435_v53 = vrot.slane %v7089_v50, 1  ;;  %v3076_v50 = vshll.u32 %v7436_v4, 16 }
  0xfb   : > { %v2998_v18 = vor.u32 %v2997_v57, %v2994_v33  ;;  %v3033_v54 = vrot.slane %v3031_v22, 3  ;;  %v3046_v33 = vshrl.u32 %v7414_v9, 16  ;;  %v3049_v57 = vshll.u32 %v7414_v9, 16 }
  0xfd   : > { %v2999_v46 = vsel %vm2919_vm6, %v2989_v36, %v2998_v18  ;;  %v1431_v36 = vrot.slane %v7067_v15, 1  ;;  %v3058_v15 = vshll.u32 %v7419_v52, 16 }
  0xfe   : > { %5920 = vmatmul.mubr.msk.bf16.gmra.mrb[4].mxu1 %vm508_vm3, %v1414_v8  ;;  %v3007_v8 = vor.u32 %v3006_v27, %v3003_v62  ;;  %v1433_v27 = vrot.slane %v7075_v29, 1  ;;  %v3067_v29 = vshll.u32 %v7432_v23, 16 }
  0xff   : > { %5923 = vmatprep.mubr.msk.bf16.mxu1 %vm508_vm3, %v1416_v38  ;;  %v3012_v38 = vrot.slane %v3010_v17, 2  ;;  %v1432_v49 = vsel %vm966_vm5, %v1429_v10, %v1431_v36 }
 0x100   : > { %6072 = vmatmul.mubr.msk.bf16.gmra.mrb[4].mxu0 %vm508_vm3, %v2963_v5  ;;  %v3008_v12 = vsel %vm2919_vm6, %v2998_v18, %v3007_v8  ;;  %v3021_v5 = vrot.slane %v3019_v11, 2  ;;  %v3051_v18 = vrot.slane %v3049_v57, 3  ;;  %v1434_v11 = vsel %vm966_vm5, %v1431_v36, %v1433_v27 }
 0x101   : > { %6075 = vmatprep.mubr.msk.bf16.mxu0 %vm508_vm3, %v2972_v55  ;;  %v3016_v63 = vor.u32 %v3015_v14, %v3012_v38  ;;  %v3028_v55 = vshrl.u32 %v7396_v42, 16  ;;  %v1436_v47 = vsel %vm966_vm5, %v1433_v27, %v1435_v53  ;;  %v3073_v14 = vshrl.u32 %v7436_v4, 16 }
 0x102   : > { %v3025_v58 = vor.u32 %v3024_v56, %v3021_v5  ;;  %v3069_v56 = vrot.slane %v3067_v29, 3 }
 0x103   : > { %v3030_v24 = vrot.slane %v3028_v55, 2  ;;  %v1439_v55 = vrot.slane %v7116_v44, 1  ;;  %v3075_v22 = vrot.slane %v3073_v14, 2 }
 0x105   : > { %v3034_v25 = vor.u32 %v3033_v54, %v3030_v24  ;;  %v3360_v54 = vld [vmem:[%s6878_s6 + $0x10] sm:$0x8] }
 0x106   : > { %5924 = vmatmul.mubr.msk.bf16.gmra.mrb[8].mxu1 %vm508_vm3, %v1418_v20  ;;  %v3017_v20 = vsel %vm2919_vm6, %v3007_v8, %v3016_v63  ;;  %v3060_v8 = vrot.slane %v3058_v15, 3  ;;  %v3372_v15 = vrot.slane %v7299_v28, 3  ;;  %v3380_v28 = vrot.slane %v7347_v7, 3 }
 0x107   : > { %5927 = vmatprep.mubr.msk.bf16.mxu1 %vm508_vm3, %v1420_v6  ;;  %v3026_v6 = vsel %vm2919_vm6, %v3016_v63, %v3025_v58  ;;  %v3035_v62 = vsel %vm2919_vm6, %v3025_v58, %v3034_v25  ;;  %v3388_v7 = vrot.slane %v7383_v30, 3  ;;  %v3396_v30 = vrot.slane %v7419_v52, 3 }
 0x108   : > { %6076 = vmatmul.mubr.msk.bf16.gmra.mrb[8].mxu0 %vm508_vm3, %v2981_v40  ;;  %v1430_v40 = vsel %vm966_vm5, %v1427_v0, %v1429_v10  ;;  %v1437_v0 = vrot.slane %v7103_v16, 1 }
 0x109   : > { %6079 = vmatprep.mubr.msk.bf16.mxu0 %vm508_vm3, %v2990_v32  ;;  %v3043_v32 = vor.u32 %v3042_v31, %v3039_v19 }
 0x10a   : > { %v1438_v58 = vsel %vm966_vm5, %v1435_v53, %v1437_v0  ;;  %v1440_v10 = vsel %vm966_vm5, %v1437_v0, %v1439_v55 }
 0x10b   : > { %v3044_v17 = vsel %vm2919_vm6, %v3034_v25, %v3043_v32 }
 0x10e   : > { %5928 = vmatmul.mubr.msk.bf16.gmra.mrb[12].mxu1 %vm508_vm3, %v1422_v39  ;;  %v3048_v39 = vrot.slane %v3046_v33, 2 }
 0x10f   : > { %5931 = vmatprep.mubr.msk.bf16.mxu1 %vm508_vm3, %v1424_v43  ;;  %v3057_v43 = vrot.slane %v3055_v1, 2 }
 0x110   : > { %6080 = vmatmul.mubr.msk.bf16.gmra.mrb[12].mxu0 %vm508_vm3, %v2999_v46  ;;  %v3052_v2 = vor.u32 %v3051_v18, %v3048_v39  ;;  %v3064_v46 = vshrl.u32 %v7432_v23, 16  ;;  %v3376_v39 = vrot.slane %v7322_v37, 3  ;;  %v3384_v37 = vrot.slane %v7365_v61, 3 }
 0x111   : > { %6083 = vmatprep.mubr.msk.bf16.mxu0 %vm508_vm3, %v3008_v12  ;;  %v3061_v38 = vor.u32 %v3060_v8, %v3057_v43  ;;  %v3392_v61 = vrot.slane %v7401_v26, 3  ;;  %v3400_v26 = vrot.slane %v7436_v4, 3 }
 0x112   : > { %v3053_v12 = vsel %vm2919_vm6, %v3043_v32, %v3052_v2  ;;  %v3066_v5 = vrot.slane %v3064_v46, 2 }
 0x113   : > { %v3062_v63 = vsel %vm2919_vm6, %v3052_v2, %v3061_v38 }
 0x114   : > { %v3070_v51 = vor.u32 %v3069_v56, %v3066_v5 }
 0x116   : > { %5932 = vmatmul.mubr.msk.bf16.gmra.mrb[16].mxu1 %vm508_vm3, %v1426_v34  ;;  %v7570_v34 = vld [vmem:[%s6878_s6 + $0xa0] ss:$0 sps:$4 sm:$0x77]   ;;  %v3071_v44 = vsel %vm2919_vm6, %v3061_v38, %v3070_v51 }
 0x117   : > { %5935 = vmatprep.mubr.msk.bf16.mxu1 %vm508_vm3, %v1428_v13  ;;  %v3078_v13 = vrot.slane %v3076_v50, 3  ;;  %v3082_v16 = vshrl.u32 %v7570_v34, 16 }
 0x118   : > { %6084 = vmatmul.mubr.msk.bf16.gmra.mrb[16].mxu0 %vm508_vm3, %v3017_v20  ;;  %v3085_v20 = vshll.u32 %v7570_v34, 16 }
 0x119   : > { %6087 = vmatprep.mubr.msk.bf16.mxu0 %vm508_vm3, %v3026_v6  ;;  %v3079_v24 = vor.u32 %v3078_v13, %v3075_v22  ;;  %v1441_v6 = vrot.slane %v6548_v41, 1  ;;  %v3084_v36 = vrot.slane %v3082_v16, 2 }
 0x11a   : > { %v3087_v19 = vrot.slane %v3085_v20, 3 }
 0x11b   : > { %v3080_v31 = vsel %vm2919_vm6, %v3070_v51, %v3079_v24  ;;  %v1442_v25 = vsel %vm966_vm5, %v1439_v55, %v1441_v6 }
 0x11c   : > { %v3088_v33 = vor.u32 %v3087_v19, %v3084_v36 }
 0x11e   : > { %5936 = vmatmul.mubr.msk.bf16.gmra.mrb[20].mxu1 %vm508_vm3, %v1430_v40  ;;  %v5565_v40 = vcombine.low %v3360_v54, %v7267_v59  ;;  %v3089_v32 = vsel %vm2919_vm6, %v3079_v24, %v3088_v33  ;;  %v3370_v59 = vrot.slane %v7294_v45, 3  ;;  %v3378_v45 = vrot.slane %v7342_v21, 3  ;;  %v6552_v33 = vld [vmem:[%s9109_s3 + $0x8] sm:$0xff]  }
 0x11f   : > { %5939 = vmatprep.mubr.msk.bf16.mxu1 %vm508_vm3, %v1432_v49  ;;  %v3368_v49 = vrot.slane %v7282_v35, 3  ;;  %v3374_v35 = vrot.slane %v7315_v3, 3  ;;  %v3382_v3 = vrot.slane %v7360_v48, 3  ;;  %v3386_v21 = vrot.slane %v7378_v60, 3 }
 0x120   : > { %6088 = vmatmul.mubr.msk.bf16.gmra.mrb[20].mxu0 %vm508_vm3, %v3035_v62  ;;  %v3367_v57 = vrot.slane %v5565_v40, 3  ;;  %v3373_v27 = vsel %vm3366_vm7, %v3370_v59, %v3372_v15  ;;  %v3379_v53 = vsel %vm3366_vm7, %v3376_v39, %v3378_v45  ;;  %v3381_v43 = vsel %vm3366_vm7, %v3378_v45, %v3380_v28 }
 0x121   : > { %6091 = vmatprep.mubr.msk.bf16.mxu0 %vm508_vm3, %v3044_v17  ;;  %v3371_v62 = vsel %vm3366_vm7, %v3368_v49, %v3370_v59  ;;  %v3375_v18 = vsel %vm3366_vm7, %v3372_v15, %v3374_v35  ;;  %v3377_v17 = vsel %vm3366_vm7, %v3374_v35, %v3376_v39  ;;  %v3383_v8 = vsel %vm3366_vm7, %v3380_v28, %v3382_v3  ;;  %v7718_v28 = vld [vmem:[%s9108_s2] ss:$0 sm:$0xff] }
 0x122   : > { %v3369_v1 = vsel %vm3366_vm7, %v3367_v57, %v3368_v49  ;;  %v3387_v2 = vsel %vm3366_vm7, %v3384_v37, %v3386_v21  ;;  %v3389_v46 = vsel %vm3366_vm7, %v3386_v21, %v3388_v7  ;;  %v3390_v48 = vrot.slane %v7396_v42, 3 }
 0x123   : > { %v3394_v60 = vrot.slane %v7414_v9, 3  ;;  %v3398_v42 = vrot.slane %v7432_v23, 3  ;;  %v3402_v9 = vrot.slane %v7570_v34, 3  ;;  %v6551_v23 = vld [vmem:[%s9109_s3] sm:$0xff]  }
 0x124   : > { %v3391_v29 = vsel %vm3366_vm7, %v3388_v7, %v3390_v48  ;;  %6141 = vmatprep.subr.bf16.mxu1 %v6551_v23 }
 0x125   : > { %v3395_v38 = vsel %vm3366_vm7, %v3392_v61, %v3394_v60  ;;  %v3397_v14 = vsel %vm3366_vm7, %v3394_v60, %v3396_v30  ;;  %v3399_v50 = vsel %vm3366_vm7, %v3396_v30, %v3398_v42  ;;  %v3403_v52 = vsel %vm3366_vm7, %v3400_v26, %v3402_v9  ;;  %6142 = vmatpush3.bf16.msra.mxu1 %v6551_v23 }
 0x126   : > { %5940 = vmatmul.mubr.msk.bf16.gmra.mrb[24].mxu1 %vm508_vm3, %v1434_v11  ;;  %v3385_v11 = vsel %vm3366_vm7, %v3382_v3, %v3384_v37  ;;  %6143 = vmatprep.subr.bf16.mxu1 %v6552_v33 }
 0x127   : > { %5943 = vmatprep.mubr.msk.bf16.mxu1 %vm508_vm3, %v1436_v47  ;;  %v3393_v47 = vsel %vm3366_vm7, %v3390_v48, %v3392_v61 }
 0x128   : > { %6092 = vmatmul.mubr.msk.bf16.gmra.mrb[24].mxu0 %vm508_vm3, %v3053_v12  ;;  %v3401_v12 = vsel %vm3366_vm7, %v3398_v42, %v3400_v26 }
 0x129   : > { %6095 = vmatprep.mubr.msk.bf16.mxu0 %vm508_vm3, %v3062_v63  ;;  %6144 = vmatpush3.bf16.msra.mxu1 %v6552_v33 }
 0x12e   : > { %5944 = vmatmul.mubr.msk.bf16.gmra.mrb[28].mxu1 %vm508_vm3, %v1438_v58 }
 0x12f   : > { %5947 = vmatprep.mubr.msk.bf16.mxu1 %vm508_vm3, %v1440_v10 }
 0x130   : > { %6096 = vmatmul.mubr.msk.bf16.gmra.mrb[28].mxu0 %vm508_vm3, %v3071_v44 }
 0x131   : > { %6099 = vmatprep.mubr.msk.bf16.mxu0 %vm508_vm3, %v3080_v31 }
 0x136   : > { %5948 = vmatmul.mubr.msk.bf16.gmra.mrb[32].mxu1 %vm508_vm3, %v1442_v25 }
 0x138   : > { %6100 = vmatmul.mubr.msk.bf16.gmra.mrb[32].mxu0 %vm508_vm3, %v3089_v32 }
 0x139   : > { %6105 = vmatprep.mubr.msk.bf16.mxu0 %vm508_vm3, %v3369_v1 }
 0x140   : > { %6106 = vmatmul.mubr.msk.bf16.vlgmr.msra.gmra.mrb[0].mxu0 %vm508_vm3, %v3371_v62 }
 0x141   : > { %6109 = vmatprep.mubr.msk.bf16.mxu0 %vm508_vm3, %v3373_v27 }
 0x148   : > { %6110 = vmatmul.mubr.msk.bf16.gmra.mrb[4].mxu0 %vm508_vm3, %v3375_v18 }
 0x149   : > { %6113 = vmatprep.mubr.msk.bf16.mxu0 %vm508_vm3, %v3377_v17 }
 0x150   : > { %6114 = vmatmul.mubr.msk.bf16.gmra.mrb[8].mxu0 %vm508_vm3, %v3379_v53 }
 0x151   : > { %6117 = vmatprep.mubr.msk.bf16.mxu0 %vm508_vm3, %v3381_v43 }
 0x158   : > { %6118 = vmatmul.mubr.msk.bf16.gmra.mrb[12].mxu0 %vm508_vm3, %v3383_v8 }
 0x159   : > { %6121 = vmatprep.mubr.msk.bf16.mxu0 %vm508_vm3, %v3385_v11 }
 0x160   : > { %6122 = vmatmul.mubr.msk.bf16.gmra.mrb[16].mxu0 %vm508_vm3, %v3387_v2 }
 0x161   : > { %6125 = vmatprep.mubr.msk.bf16.mxu0 %vm508_vm3, %v3389_v46 }
 0x168   : > { %6126 = vmatmul.mubr.msk.bf16.gmra.mrb[20].mxu0 %vm508_vm3, %v3391_v29 }
 0x169   : > { %6129 = vmatprep.mubr.msk.bf16.mxu0 %vm508_vm3, %v3393_v47 }
 0x170   : > { %6130 = vmatmul.mubr.msk.bf16.gmra.mrb[24].mxu0 %vm508_vm3, %v3395_v38 }
 0x171   : > { %6133 = vmatprep.mubr.msk.bf16.mxu0 %vm508_vm3, %v3397_v14 }
 0x178   : > { %6134 = vmatmul.mubr.msk.bf16.gmra.mrb[28].mxu0 %vm508_vm3, %v3399_v50 }
 0x179   : > { %6137 = vmatprep.mubr.msk.bf16.mxu0 %vm508_vm3, %v3401_v12 }
 0x180   : > { %6138 = vmatmul.mubr.msk.bf16.gmra.mrb[32].mxu0 %vm508_vm3, %v3403_v52 }
 0x1c9   : > { %v5917_v4 = vpop.f32.mrb[0].mxu1 }
 0x1ca   : > { %v1534_v0 = vpop.f32.mrb[1].mxu1 }
 0x1cb   : > { %v5918_v5 = vpop.f32.mrb[2].mxu1 }
 0x1cc   : > { %v1537_v56 = vpop.f32.mrb[3].mxu1 }
 0x1d1   : > { %v5921_v63 = vpop.f32.mrb[4].mxu1 }
 0x1d2   : > { %v7650_v55 = vpop.f32.mrb[5].mxu1 }
 0x1d3   : > { %v7652_v22 = vpop.f32.mrb[6].mxu1 }
 0x1d4   : > { %v7654_v34 = vpop.f32.mrb[7].mxu1 }
 0x1d9   : > { %v7656_v13 = vpop.f32.mrb[8].mxu1 }
 0x1da   : > { %v7658_v58 = vpop.f32.mrb[9].mxu1 }
 0x1db   : > { %v7660_v51 = vpop.f32.mrb[10].mxu1 }
 0x1dc   : > { %v7662_v41 = vpop.f32.mrb[11].mxu1 }
 0x1e1   : > { %v7664_v16 = vpop.f32.mrb[12].mxu1 }
 0x1e2   : > { %v7666_v20 = vpop.f32.mrb[13].mxu1 }
 0x1e3   : > { %v7668_v10 = vpop.f32.mrb[14].mxu1 }
 0x1e4   : > { %v7670_v24 = vpop.f32.mrb[15].mxu1 }
 0x1e5   : > { %9125 = vst [vmem:[#allocation3_spill] sm:$0xff] %v7670_v24 }
 0x1e9   : > { %v7672_v54 = vpop.f32.mrb[16].mxu1 }
 0x1ea   : > { %9126 = vst [vmem:[#allocation4_spill] sm:$0xff] %v7672_v54  ;;  %v7674_v44 = vpop.f32.mrb[17].mxu1 }
 0x1eb   : > { %9127 = vst [vmem:[#allocation2_spill] sm:$0xff] %v7674_v44  ;;  %v7676_v6 = vpop.f32.mrb[18].mxu1 }
 0x1ec   : > { %9128 = vst [vmem:[#allocation5_spill] sm:$0xff] %v7676_v6  ;;  %v7678_v36 = vpop.f32.mrb[19].mxu1 }
 0x1ed   : > { %9129 = vst [vmem:[#allocation6_spill] sm:$0xff] %v7678_v36 }
 0x1f1   : > { %v7680_v19 = vpop.f32.mrb[20].mxu1 }
 0x1f2   : > { %9130 = vst [vmem:[#allocation7_spill] sm:$0xff] %v7680_v19  ;;  %v7682_v31 = vpop.f32.mrb[21].mxu1 }
 0x1f3   : > { %9131 = vst [vmem:[#allocation8_spill] sm:$0xff] %v7682_v31  ;;  %v7684_v40 = vpop.f32.mrb[22].mxu1 }
 0x1f4   : > { %9132 = vst [vmem:[#allocation9_spill] sm:$0xff] %v7684_v40  ;;  %v7686_v25 = vpop.f32.mrb[23].mxu1 }
 0x1f5   : > { %9133 = vst [vmem:[#allocation10_spill] sm:$0xff] %v7686_v25 }
 0x1f9   : > { %v7691_v57 = vpop.f32.mrb[24].mxu1 }
 0x1fa   : > { %9134 = vst [vmem:[#allocation11_spill] sm:$0xff] %v7691_v57  ;;  %v7693_v49 = vpop.f32.mrb[25].mxu1 }
 0x1fb   : > { %9135 = vst [vmem:[#allocation12_spill] sm:$0xff] %v7693_v49  ;;  %v7695_v32 = vpop.f32.mrb[26].mxu1 }
 0x1fc   : > { %9136 = vst [vmem:[#allocation13_spill] sm:$0xff] %v7695_v32  ;;  %v7697_v1 = vpop.f32.mrb[27].mxu1 }
 0x1fd   : > { %9137 = vst [vmem:[#allocation14_spill] sm:$0xff] %v7697_v1 }
 0x201   : > { %v7699_v59 = vpop.f32.mrb[28].mxu1 }
 0x202   : > { %9138 = vst [vmem:[#allocation15_spill] sm:$0xff] %v7699_v59  ;;  %v7701_v15 = vpop.f32.mrb[29].mxu1 }
 0x203   : > { %9139 = vst [vmem:[#allocation16_spill] sm:$0xff] %v7701_v15  ;;  %v7703_v62 = vpop.f32.mrb[30].mxu1 }
 0x204   : > { %9140 = vst [vmem:[#allocation17_spill] sm:$0xff] %v7703_v62  ;;  %v7705_v27 = vpop.f32.mrb[31].mxu1 }
 0x205   : > { %9141 = vst [vmem:[#allocation18_spill] sm:$0xff] %v7705_v27 }
 0x209   : > { %v7707_v35 = vpop.f32.mrb[32].mxu1 }
 0x20a   : > { %9142 = vst [vmem:[#allocation19_spill] sm:$0xff] %v7707_v35  ;;  %v7709_v39 = vpop.f32.mrb[33].mxu1 }
 0x20b   : > { %9143 = vst [vmem:[#allocation20_spill] sm:$0xff] %v7709_v39  ;;  %v7711_v18 = vpop.f32.mrb[34].mxu1 }
 0x20c   : > { %9144 = vst [vmem:[#allocation21_spill] sm:$0xff] %v7711_v18  ;;  %v7713_v17 = vpop.f32.mrb[35].mxu1 }
 0x20d   : > { %9145 = vst [vmem:[#allocation22_spill] sm:$0xff] %v7713_v17  ;;  %v9146_v17 = vmov -1.0  }
 0x213   : > { %v6107_v45 = vpop.f32.mrb[0].mxu0 }
 0x214   : > { %v6181_v53 = vadd.f32 %v6107_v45, %v5917_v4  ;;  %v3495_v43 = vpop.f32.mrb[1].mxu0 }
 0x215   : > { %v6182_v3 = vadd.f32 %v3495_v43, %v1534_v0  ;;  %v6108_v37 = vpop.f32.mrb[2].mxu0 }
 0x216   : > { %v3683_v8 = vadd.f32 %v6181_v53, %v7718_v28  ;;  %v6183_v11 = vadd.f32 %v6108_v37, %v5918_v5  ;;  %v3498_v21 = vpop.f32.mrb[3].mxu0 }
 0x217   : > { %v3681_v7 = vadd.f32 %v6182_v3, %v7718_v28  ;;  %v6184_v2 = vadd.f32 %v3498_v21, %v1537_v56 }
 0x218   : > { %v3755_v46 = vmul.f32 0.70710677, %v3683_v8  ;;  %v3684_v48 = vadd.f32 %v6183_v11, %v7718_v28 }
 0x219   : > { %v7723_v61 = vmul.f32 0.70710677, %v3681_v7  ;;  %v3682_v60 = vadd.f32 %v6184_v2, %v7718_v28 }
 0x21a   : > { %v3863_v29 = vand.u32 2147483647, %v3755_v46  ;;  %v7725_v47 = vmul.f32 0.70710677, %v3684_v48  ;;  %vm3791_vm8 = vcmp.ge.f32.partialorder %v3755_v46, 0.0  ;;  %v7764_v46 = vmul.f32 0.5, %v3681_v7 }
 0x21b   : > { %v7729_v30 = vand.u32 2147483647, %v7723_v61  ;;  %v6111_v38 = vpop.f32.mrb[4].mxu0  ;;  %v7733_v9 = vmul.f32 0.70710677, %v3682_v60  ;;  %vm3789_vm9 = vcmp.ge.f32.partialorder %v7723_v61, 0.0 }
 0x21c   : > { %v3899_v14 = vmul.f32 0.3275911, %v3863_v29  ;;  %v3511_v42 = vpop.f32.mrb[5].mxu0  ;;  %v3864_v50 = vand.u32 2147483647, %v7725_v47  ;;  %v6185_v52 = vadd.f32 %v6111_v38, %v5921_v63  ;;  %v4367_v45 = vsub.f32 0.0, %v3863_v29 }
 0x21d   : > { %v3897_v26 = vmul.f32 0.3275911, %v7729_v30  ;;  %v6112_v23 = vpop.f32.mrb[6].mxu0  ;;  %v7736_v56 = vand.u32 2147483647, %v7733_v9  ;;  %v6186_v3 = vadd.f32 %v3511_v42, %v7650_v55  ;;  %vm3792_vm10 = vcmp.ge.f32.partialorder %v7725_v47, 0.0 }
 0x21e   : > { %v3935_v12 = vadd.f32 1.0, %v3899_v14  ;;  %v3900_v0 = vmul.f32 0.3275911, %v3864_v50  ;;  %v3514_v5 = vpop.f32.mrb[7].mxu0  ;;  %v7740_v43 = vadd.f32 %v6185_v52, %v7718_v28  ;;  %v6187_v11 = vadd.f32 %v6112_v23, %v7652_v22 }
 0x21f   : > { %v3933_v4 = vadd.f32 1.0, %v3897_v26  ;;  %v3898_v53 = vmul.f32 0.3275911, %v7736_v56  ;;  %v7752_v38 = vadd.f32 %v6186_v3, %v7718_v28  ;;  %v4403_v26 = vmul.f32 %v4367_v45, %v3863_v29 }
 0x220   : > { %6570 = vrcp.f32 %v3935_v12  ;;  %v3936_v33 = vadd.f32 1.0, %v3900_v0  ;;  %v7749_v2 = vmul.f32 0.70710677, %v7740_v43  ;;  %v7757_v55 = vadd.f32 %v6187_v11, %v7718_v28 }
 0x221   : > { %6572 = vrcp.f32 %v3933_v4  ;;  %v3934_v63 = vadd.f32 1.0, %v3898_v53  ;;  %v6188_v42 = vadd.f32 %v3514_v5, %v7654_v34  ;;  %v7762_v22 = vmul.f32 0.5, %v3683_v8 }
 0x222   : > { %6574 = vrcp.f32 %v3936_v33  ;;  %v7767_v52 = vand.u32 2147483647, %v7749_v2  ;;  %v7770_v23 = vmul.f32 0.70710677, %v7752_v38  ;;  %v9117_v4 = vmov -1.0  }
 0x223   : > { %v7743_v37 = vpop.f32.mrb[8].mxu0  ;;  %6576 = vrcp.f32 %v3934_v63  ;;  %v7773_v29 = vsel %vm3791_vm8, 1.0, %v9117_v4  ;;  %v7775_v0 = vmul.f32 0.5, %v3684_v48  ;;  %v4368_v33 = vsub.f32 0.0, %v3864_v50 }
 0x224   : > { %v7746_v21 = vpop.f32.mrb[9].mxu0  ;;  %v7778_v34 = vmul.f32 0.70710677, %v7757_v55  ;;  %v7781_v8 = vmul.f32 0.5, %v3682_v60  ;;  %v3903_v7 = vmul.f32 0.3275911, %v7767_v52  ;;  %v7814_v49 = vadd.f32 %v6188_v42, %v7718_v28 }
 0x225   : > { %v7754_v14 = vpop.f32.mrb[10].mxu0  ;;  %v7785_v5 = vand.u32 2147483647, %v7770_v23  ;;  %v4441_v53 = vmul.f32 1.442695, %v4403_v26  ;;  %v4365_v3 = vsub.f32 0.0, %v7729_v30  ;;  %v4404_v39 = vmul.f32 %v4368_v33, %v3864_v50 }
 0x226   : > { %v7760_v12 = vpop.f32.mrb[11].mxu0  ;;  %v7792_v48 = vand.u32 2147483647, %v7778_v34  ;;  %v3939_v60 = vadd.f32 1.0, %v3903_v7  ;;  %v7801_v18 = vsel %vm3789_vm9, 1.0, %v9146_v17  ;;  %v7806_v27 = vsel %vm3792_vm10, 1.0, %v9146_v17 }
 0x227   : > { %v3901_v11 = vmul.f32 0.3275911, %v7785_v5  ;;  %v4366_v1 = vsub.f32 0.0, %v7736_v56  ;;  %v4443_v25 = vmul.f32 1.442695, %v4404_v39  ;;  %vm3790_vm11 = vcmp.ge.f32.partialorder %v7733_v9, 0.0 }
 0x228   : > { %v3904_v47 = vmul.f32 0.3275911, %v7792_v48  ;;  %6578 = vrcp.f32 %v3939_v60  ;;  %vm3795_vm12 = vcmp.ge.f32.partialorder %v7749_v2, 0.0  ;;  %vm3793_vm13 = vcmp.ge.f32.partialorder %v7770_v23, 0.0 }
 0x229   : > { %v3937_v62 = vadd.f32 1.0, %v3901_v11  ;;  %6580 = vpow2.f32 %v4441_v53  ;;  %v4371_v53 = vsub.f32 0.0, %v7767_v52  ;;  %vm3796_vm14 = vcmp.ge.f32.partialorder %v7778_v34, 0.0 }
 0x22a   : > { %v7787_v45 = vpop.eup %6570  ;;  %v3940_v32 = vadd.f32 1.0, %v3904_v47 }
 0x22b   : > { %v7794_v63 = vpop.eup %6572  ;;  %v4043_v61 = vmul.f32 1.0614054, %v7787_v45  ;;  %v7798_v4 = vpop.f32.mrb[12].mxu0  ;;  %6582 = vrcp.f32 %v3937_v62  ;;  %v6189_v62 = vadd.f32 %v7743_v37, %v7656_v13  ;;  %v4407_v9 = vmul.f32 %v4371_v53, %v7767_v52 }
 0x22c   : > { %v4041_v26 = vmul.f32 1.0614054, %v7794_v63  ;;  %v7808_v15 = vpop.f32.mrb[13].mxu0  ;;  %v7810_v7 = vpop.eup %6574  ;;  %6584 = vrcp.f32 %v3940_v32  ;;  %v7842_v32 = vsel %vm3790_vm11, 1.0, %v9146_v17  ;;  %v7871_v52 = vmul.f32 0.5, %v7752_v38 }
 0x22d   : > { %v4079_v35 = vadd.f32 -1.4531521, %v4043_v61  ;;  %v7816_v50 = vpop.f32.mrb[14].mxu0  ;;  %v4401_v61 = vmul.f32 %v4365_v3, %v7729_v30  ;;  %v4044_v60 = vmul.f32 1.0614054, %v7810_v7  ;;  %v7823_v57 = vpop.eup %6576  ;;  %v4402_v30 = vmul.f32 %v4366_v1, %v7736_v56 }
 0x22e   : > { %v4077_v59 = vadd.f32 -1.4531521, %v4041_v26  ;;  %9147 = vst [vmem:[#allocation23_spill] sm:$0xff] %v7816_v50  ;;  %v7821_v11 = vpop.f32.mrb[15].mxu0  ;;  %v4042_v40 = vmul.f32 1.0614054, %v7823_v57  ;;  %6586 = vpow2.f32 %v4443_v25 }
 0x22f   : > { %v4115_v33 = vmul.f32 %v7787_v45, %v4079_v35  ;;  %9148 = vst [vmem:[#allocation24_spill] sm:$0xff] %v7821_v11  ;;  %v4080_v47 = vadd.f32 -1.4531521, %v4044_v60  ;;  %v7831_v3 = vmul.f32 0.70710677, %v7814_v49  ;;  %v7854_v25 = vmul.f32 0.5, %v7740_v43 }
 0x230   : > { %v4113_v26 = vmul.f32 %v7794_v63, %v4077_v59  ;;  %v4078_v39 = vadd.f32 -1.4531521, %v4042_v40  ;;  %v4437_v60 = vmul.f32 1.442695, %v4401_v61  ;;  %v4439_v61 = vmul.f32 1.442695, %v4402_v30 }
 0x231   : > { %v4151_v42 = vadd.f32 1.4214138, %v4115_v33  ;;  %v4116_v59 = vmul.f32 %v7810_v7, %v4080_v47  ;;  %v7845_v1 = vand.u32 2147483647, %v7831_v3  ;;  %vm3794_vm15 = vcmp.ge.f32.partialorder %v7831_v3, 0.0 }
 0x232   : > { %v4149_v35 = vadd.f32 1.4214138, %v4113_v26  ;;  %v4114_v13 = vmul.f32 %v7823_v57, %v4078_v39  ;;  %v7860_v36 = vpop.eup %6578  ;;  %v7866_v39 = vadd.f32 %v7746_v21, %v7658_v58  ;;  %6588 = vpow2.f32 %v4437_v60 }
 0x233   : > { %v4187_v31 = vmul.f32 %v7787_v45, %v4151_v42  ;;  %v7837_v33 = vpop.f32.mrb[16].mxu0  ;;  %v4152_v42 = vadd.f32 1.4214138, %v4116_v59  ;;  %v3902_v47 = vmul.f32 0.3275911, %v7845_v1  ;;  %v6581_v53 = vpop.eup %6580  ;;  %v4369_v58 = vsub.f32 0.0, %v7785_v5 }
 0x234   : > { %9149 = vst [vmem:[#allocation25_spill] sm:$0xff] %v7837_v33  ;;  %v7847_v56 = vpop.f32.mrb[17].mxu0  ;;  %v4185_v40 = vmul.f32 %v7794_v63, %v4149_v35  ;;  %v4150_v59 = vadd.f32 1.4214138, %v4114_v13  ;;  %v4047_v43 = vmul.f32 1.0614054, %v7860_v36 }
 0x235   : > { %9150 = vst [vmem:[#allocation26_spill] sm:$0xff] %v7847_v56  ;;  %v4223_v26 = vadd.f32 -0.28449672, %v4187_v31  ;;  %v7851_v37 = vpop.f32.mrb[18].mxu0  ;;  %v4188_v35 = vmul.f32 %v7810_v7, %v4152_v42  ;;  %v3938_v30 = vadd.f32 1.0, %v3902_v47  ;;  %v7873_v6 = vpop.eup %6582  ;;  %v4405_v50 = vmul.f32 %v4369_v58, %v7785_v5 }
 0x236   : > { %9151 = vst [vmem:[#allocation27_spill] sm:$0xff] %v7851_v37  ;;  %v7858_v19 = vpop.f32.mrb[19].mxu0  ;;  %v4221_v37 = vadd.f32 -0.28449672, %v4185_v40  ;;  %v4186_v42 = vmul.f32 %v7823_v57, %v4150_v59  ;;  %v4083_v13 = vadd.f32 -1.4531521, %v4047_v43  ;;  %v7877_v21 = vpop.eup %6584  ;;  %v7888_v43 = vadd.f32 %v6189_v62, %v7718_v28 }
 0x237   : > { %9152 = vst [vmem:[#allocation28_spill] sm:$0xff] %v7858_v19  ;;  %v4259_v31 = vmul.f32 %v7787_v45, %v4223_v26  ;;  %v4224_v26 = vadd.f32 -0.28449672, %v4188_v35  ;;  %6590 = vrcp.f32 %v3938_v30  ;;  %v4449_v47 = vmul.f32 1.442695, %v4407_v9 }
 0x238   : > { %v4119_v60 = vmul.f32 %v7860_v36, %v4083_v13  ;;  %v4048_v35 = vmul.f32 1.0614054, %v7877_v21  ;;  %v4372_v59 = vsub.f32 0.0, %v7792_v48  ;;  %v6587_v33 = vpop.eup %6586  ;;  %6592 = vpow2.f32 %v4439_v61 }
 0x239   : > { %v4295_v19 = vadd.f32 0.2548296, %v4259_v31  ;;  %v4260_v38 = vmul.f32 %v7810_v7, %v4224_v26  ;;  %v4045_v31 = vmul.f32 1.0614054, %v7873_v6  ;;  %v7911_v5 = vsel %vm3795_vm12, 1.0, %v9146_v17 }
 0x23a   : > { %v4155_v13 = vadd.f32 1.4214138, %v4119_v60  ;;  %v4084_v54 = vadd.f32 -1.4531521, %v4048_v35  ;;  %6594 = vpow2.f32 %v4449_v47 }
 0x23b   : > { %v4331_v56 = vmul.f32 %v7787_v45, %v4295_v19  ;;  %v7882_v40 = vpop.f32.mrb[20].mxu0  ;;  %v4257_v19 = vmul.f32 %v7794_v63, %v4221_v37  ;;  %v4296_v45 = vadd.f32 0.2548296, %v4260_v38  ;;  %v4081_v9 = vadd.f32 -1.4531521, %v4045_v31 }
 0x23c   : > { %9153 = vst [vmem:[#allocation29_spill] sm:$0xff] %v7882_v40  ;;  %v7890_v30 = vpop.f32.mrb[21].mxu0  ;;  %v4222_v40 = vadd.f32 -0.28449672, %v4186_v42  ;;  %v4120_v37 = vmul.f32 %v7877_v21, %v4084_v54  ;;  %v7904_v42 = vmul.f32 0.70710677, %v7888_v43  ;;  %v6589_v54 = vpop.eup %6588 }
 0x23d   : > { %9154 = vst [vmem:[#allocation30_spill] sm:$0xff] %v7890_v30  ;;  %v4511_v44 = vmul.f32 %v6581_v53, %v4331_v56  ;;  %v7893_v26 = vpop.f32.mrb[22].mxu0  ;;  %v4332_v24 = vmul.f32 %v7810_v7, %v4296_v45  ;;  %v4117_v62 = vmul.f32 %v7873_v6, %v4081_v9  ;;  %v4191_v56 = vmul.f32 %v7860_v36, %v4155_v13 }
 0x23e   : > { %v7898_v30 = vpop.f32.mrb[23].mxu0  ;;  %v4408_v53 = vmul.f32 %v4372_v59, %v7792_v48  ;;  %v4258_v31 = vmul.f32 %v7823_v57, %v4222_v40  ;;  %v4156_v60 = vadd.f32 1.4214138, %v4120_v37  ;;  %v4445_v59 = vmul.f32 1.442695, %v4405_v50 }
 0x23f   : > { %v4547_v11 = vsub.f32 1.0, %v4511_v44  ;;  %v4293_v44 = vadd.f32 0.2548296, %v4257_v19  ;;  %v4512_v38 = vmul.f32 %v6587_v33, %v4332_v24  ;;  %v4153_v7 = vadd.f32 1.4214138, %v4117_v62 }
 0x240   : > { %v4227_v58 = vadd.f32 -0.28449672, %v4191_v56  ;;  %v4451_v33 = vmul.f32 1.442695, %v4408_v53  ;;  %v7921_v2 = vand.u32 2147483647, %v7904_v42  ;;  %6596 = vpow2.f32 %v4445_v59 }
 0x241   : > { %v4583_v61 = vmul.f32 %v4547_v11, %v7773_v29  ;;  %v4548_v35 = vsub.f32 1.0, %v4512_v38  ;;  %v4189_v48 = vmul.f32 %v7873_v6, %v4153_v7  ;;  %v7916_v29 = vpop.eup %6590  ;;  %v4192_v11 = vmul.f32 %v7877_v21, %v4156_v60 }
 0x242   : > { %v4263_v24 = vmul.f32 %v7860_v36, %v4227_v58  ;;  %v4329_v47 = vmul.f32 %v7794_v63, %v4293_v44  ;;  %v4294_v62 = vadd.f32 0.2548296, %v4258_v31  ;;  %v4046_v37 = vmul.f32 1.0614054, %v7916_v29 }
 0x243   : > { %v7914_v45 = vpop.f32.mrb[24].mxu0  ;;  %v4619_v19 = vadd.f32 1.0, %v4583_v61  ;;  %v4584_v9 = vmul.f32 %v4548_v35, %v7806_v27  ;;  %v4225_v50 = vadd.f32 -0.28449672, %v4189_v48  ;;  %v4228_v56 = vadd.f32 -0.28449672, %v4192_v11  ;;  %v6593_v61 = vpop.eup %6592 }
 0x244   : > { %v7923_v40 = vpop.f32.mrb[25].mxu0  ;;  %v3907_v7 = vmul.f32 0.3275911, %v7921_v2  ;;  %v4299_v60 = vadd.f32 0.2548296, %v4263_v24  ;;  %6598 = vpow2.f32 %v4451_v33  ;;  %v4509_v31 = vmul.f32 %v6589_v54, %v4329_v47  ;;  %v6595_v47 = vpop.eup %6594 }
 0x245   : > { %v7927_v13 = vpop.f32.mrb[26].mxu0  ;;  %v4620_v38 = vadd.f32 1.0, %v4584_v9  ;;  %v4261_v53 = vmul.f32 %v7873_v6, %v4225_v50  ;;  %v4264_v63 = vmul.f32 %v7877_v21, %v4228_v56  ;;  %v4082_v27 = vadd.f32 -1.4531521, %v4046_v37 }
 0x246   : > { %v7932_v58 = vpop.f32.mrb[27].mxu0  ;;  %v7936_v44 = vmul.f32 %v4619_v19, %v7762_v22  ;;  %v3943_v48 = vadd.f32 1.0, %v3907_v7  ;;  %v4330_v59 = vmul.f32 %v7823_v57, %v4294_v62  ;;  %v4370_v50 = vsub.f32 0.0, %v7845_v1 }
 0x247   : > { %v7939_v35 = vmul.f32 %v4620_v38, %v7775_v0  ;;  %v4297_v11 = vadd.f32 0.2548296, %v4261_v53  ;;  %v4118_v9 = vmul.f32 %v7916_v29, %v4082_v27  ;;  %v7948_v22 = vmul.f32 0.5, %v7757_v55 }
 0x248   : > { %6600 = vrcp.f32 %v3943_v48  ;;  %v4335_v0 = vmul.f32 %v7860_v36, %v4299_v60  ;;  %v4300_v57 = vadd.f32 0.2548296, %v4264_v63  ;;  %v4545_v62 = vsub.f32 1.0, %v4509_v31 }
 0x249   : > { %v4154_v33 = vadd.f32 1.4214138, %v4118_v9  ;;  %v7958_v56 = vadd.f32 %v7866_v39, %v7718_v28  ;;  %v6191_v55 = vadd.f32 %v7754_v14, %v7660_v51  ;;  %v6192_v37 = vadd.f32 %v7760_v12, %v7662_v41 }
 0x24a   : > { %v4510_v38 = vmul.f32 %v6593_v61, %v4330_v59  ;;  %v4333_v36 = vmul.f32 %v7873_v6, %v4297_v11  ;;  %v4406_v7 = vmul.f32 %v4370_v50, %v7845_v1  ;;  %v3829_v60 = vsel %vm3793_vm13, 1.0, %v9146_v17  ;;  %v6597_v12 = vpop.eup %6596 }
 0x24b   : > { %v7950_v54 = vpop.f32.mrb[28].mxu0  ;;  %v4190_v53 = vmul.f32 %v7916_v29, %v4154_v33  ;;  %v4375_v39 = vsub.f32 0.0, %v7921_v2  ;;  %v7972_v63 = vmul.f32 0.70710677, %v7958_v56  ;;  %v7975_v51 = vadd.f32 %v6191_v55, %v7718_v28 }
 0x24c   : > { %v7954_v19 = vpop.f32.mrb[29].mxu0  ;;  %v4515_v41 = vmul.f32 %v6595_v47, %v4335_v0  ;;  %v4336_v14 = vmul.f32 %v7877_v21, %v4300_v57  ;;  %v7980_v6 = vadd.f32 %v6192_v37, %v7718_v28  ;;  %v4581_v23 = vmul.f32 %v4545_v62, %v7801_v18 }
 0x24d   : > { %v3832_v1 = vsel %vm3796_vm14, 1.0, %v9146_v17  ;;  %v4226_v61 = vadd.f32 -0.28449672, %v4190_v53  ;;  %v7987_v27 = vand.u32 2147483647, %v7972_v63  ;;  %v4546_v48 = vsub.f32 1.0, %v4510_v38 }
 0x24e   : > { %v6599_v31 = vpop.eup %6598  ;;  %v4513_v59 = vmul.f32 %v6597_v12, %v4333_v36  ;;  %v7990_v21 = vmul.f32 0.5, %v7814_v49  ;;  %v4447_v3 = vmul.f32 1.442695, %v4406_v7  ;;  %v7993_v11 = vsel %vm3794_vm15, 1.0, %v9146_v17 }
 0x24f   : > { %v4411_v18 = vmul.f32 %v4375_v39, %v7921_v2  ;;  %v3905_v9 = vmul.f32 0.3275911, %v7987_v27  ;;  %v7998_v34 = vmul.f32 0.70710677, %v7975_v51  ;;  %v4551_v50 = vsub.f32 1.0, %v4515_v41 }
 0x250   : > { %v4516_v0 = vmul.f32 %v6599_v31, %v4336_v14  ;;  %vm3799_vm0 = vcmp.ge.f32.partialorder %v7904_v42, 0.0  ;;  %v8002_v57 = vmul.f32 0.70710677, %v7980_v6  ;;  %v4617_v33 = vadd.f32 1.0, %v4581_v23 }
 0x251   : > { %v4262_v47 = vmul.f32 %v7916_v29, %v4226_v61  ;;  %v8008_v62 = vmul.f32 0.5, %v7888_v43  ;;  %v3941_v2 = vadd.f32 1.0, %v3905_v9  ;;  %v4582_v55 = vmul.f32 %v4546_v48, %v7842_v32  ;;  %v8028_v61 = vpop.f32.mrb[30].mxu0 }
 0x252   : > { %v8004_v49 = vpop.eup %6600  ;;  %v4549_v37 = vsub.f32 1.0, %v4513_v59  ;;  %6602 = vpow2.f32 %v4447_v3  ;;  %v8013_v42 = vsel %vm3799_vm0, 1.0, %v9146_v17  ;;  %v4457_v36 = vmul.f32 1.442695, %v4411_v18  ;;  %9155 = vst [vmem:[#allocation31_spill] sm:$0xff] %v8028_v61  ;;  %v8037_v9 = vpop.f32.mrb[31].mxu0 }
 0x253   : > { %v4051_v38 = vmul.f32 1.0614054, %v8004_v49  ;;  %6604 = vrcp.f32 %v3941_v2  ;;  %v8016_v53 = vand.u32 2147483647, %v7998_v34  ;;  %v4587_v7 = vmul.f32 %v4551_v50, %v7911_v5  ;;  %9156 = vst [vmem:[#allocation32_spill] sm:$0xff] %v8037_v9  ;;  %v9169_v9 = vld [vmem:[#allocation26_spill] sm:$0xff] }
 0x254   : > { %v4552_v39 = vsub.f32 1.0, %v4516_v0  ;;  %v8020_v41 = vand.u32 2147483647, %v8002_v57  ;;  %v8023_v32 = vmul.f32 %v4617_v33, %v7764_v46  ;;  %v4298_v14 = vadd.f32 0.2548296, %v4262_v47 }
 0x255   : > { %v4087_v43 = vadd.f32 -1.4531521, %v4051_v38  ;;  %v3908_v12 = vmul.f32 0.3275911, %v8016_v53  ;;  %v6193_v23 = vadd.f32 %v7798_v4, %v7664_v16  ;;  %v4618_v31 = vadd.f32 1.0, %v4582_v55 }
 0x256   : > { %v4585_v48 = vmul.f32 %v4549_v37, %v3829_v60  ;;  %v3906_v59 = vmul.f32 0.3275911, %v8020_v41  ;;  %6606 = vpow2.f32 %v4457_v36  ;;  %v6194_v46 = vadd.f32 %v7808_v15, %v7666_v20 }
 0x257   : > { %v4123_v5 = vmul.f32 %v8004_v49, %v4087_v43  ;;  %v3944_v3 = vadd.f32 1.0, %v3908_v12  ;;  %v8033_v18 = vadd.f32 %v6193_v23, %v7718_v28  ;;  %v4623_v50 = vadd.f32 1.0, %v4587_v7  ;;  %v9159_v12 = vld [vmem:[#allocation23_spill] sm:$0xff] }
 0x258   : > { %v4588_v16 = vmul.f32 %v4552_v39, %v3832_v1  ;;  %v3942_v0 = vadd.f32 1.0, %v3906_v59  ;;  %v4334_v60 = vmul.f32 %v7916_v29, %v4298_v14  ;;  %vm3797_vm1 = vcmp.ge.f32.partialorder %v7972_v63, 0.0  ;;  %v8084_v59 = vpop.f32.mrb[32].mxu0 }
 0x259   : > { %v4159_v4 = vadd.f32 1.4214138, %v4123_v5  ;;  %6608 = vrcp.f32 %v3944_v3  ;;  %v8042_v33 = vmul.f32 0.70710677, %v8033_v18  ;;  %v8045_v47 = vmul.f32 %v4618_v31, %v7781_v8  ;;  %v9160_v31 = vld [vmem:[#allocation3_spill] sm:$0xff]  ;;  %9162 = vst [vmem:[#allocation23_spill] sm:$0xff] %v8084_v59 }
 0x25a   : > { %v4621_v2 = vadd.f32 1.0, %v4585_v48  ;;  %v8048_v20 = vmul.f32 0.5, %v7958_v56  ;;  %6610 = vrcp.f32 %v3942_v0  ;;  %v4373_v15 = vsub.f32 0.0, %v7987_v27  ;;  %v9161_v48 = vld [vmem:[#allocation24_spill] sm:$0xff] }
 0x25b   : > { %v8052_v1 = vmul.f32 0.5, %v7975_v51  ;;  %v8055_v29 = vand.u32 2147483647, %v8042_v33  ;;  %v8058_v63 = vadd.f32 %v6194_v46, %v7718_v28  ;;  %v8061_v8 = vmul.f32 %v4623_v50, %v7854_v25 }
 0x25c   : > { %v6603_v55 = vpop.eup %6602  ;;  %v4624_v37 = vadd.f32 1.0, %v4588_v16  ;;  %v4195_v56 = vmul.f32 %v8004_v49, %v4159_v4  ;;  %v8065_v38 = vsel %vm3797_vm1, 1.0, %v9146_v17  ;;  %v8070_v7 = vmul.f32 0.5, %v7980_v6 }
 0x25d   : > { %9157 = vst [vmem:[#allocation33_spill] sm:$0xff] %v8061_v8  ;;  %v8067_v36 = vpop.eup %6604  ;;  %v4514_v51 = vmul.f32 %v6603_v55, %v4334_v60  ;;  %v3911_v39 = vmul.f32 0.3275911, %v8055_v29  ;;  %v8074_v43 = vmul.f32 0.70710677, %v8058_v63  ;;  %v8077_v25 = vmul.f32 %v4621_v2, %v7871_v52  ;;  %v8101_v2 = vpop.f32.mrb[33].mxu0 }
 0x25e   : > { %v4049_v14 = vmul.f32 1.0614054, %v8067_v36  ;;  %v6195_v23 = vadd.f32 %v9159_v12, %v7668_v10  ;;  %v6196_v5 = vadd.f32 %v9161_v48, %v9160_v31  ;;  %v4409_v6 = vmul.f32 %v4373_v15, %v7987_v27  ;;  %9164 = vst [vmem:[#allocation24_spill] sm:$0xff] %v8101_v2 }
 0x25f   : > { %9158 = vst [vmem:[#allocation34_spill] sm:$0xff] %v8077_v25  ;;  %v4376_v3 = vsub.f32 0.0, %v8016_v53  ;;  %v3947_v46 = vadd.f32 1.0, %v3911_v39  ;;  %v8089_v50 = vand.u32 2147483647, %v8074_v43  ;;  %vm3800_vm2 = vcmp.ge.f32.partialorder %v7998_v34, 0.0 }
 0x260   : > { %v4231_v52 = vadd.f32 -0.28449672, %v4195_v56  ;;  %v4085_v16 = vadd.f32 -1.4531521, %v4049_v14  ;;  %v8093_v4 = vadd.f32 %v6195_v23, %v7718_v28  ;;  %v8095_v10 = vpop.eup %6606  ;;  %v8098_v0 = vmul.f32 %v4624_v37, %v7948_v22 }
 0x261   : > { %v4550_v60 = vsub.f32 1.0, %v4514_v51  ;;  %6612 = vrcp.f32 %v3947_v46  ;;  %v3909_v27 = vmul.f32 0.3275911, %v8089_v50  ;;  %vm3798_vm4 = vcmp.ge.f32.partialorder %v8002_v57, 0.0 }
 0x262   : > { %9163 = vst [vmem:[#allocation3_spill] sm:$0xff] %v8098_v0  ;;  %v4121_v15 = vmul.f32 %v8067_v36, %v4085_v16  ;;  %v4374_v55 = vsub.f32 0.0, %v8020_v41  ;;  %v8107_v56 = vmul.f32 0.70710677, %v8093_v4  ;;  %v4453_v14 = vmul.f32 1.442695, %v4409_v6 }
 0x263   : > { %v8109_v39 = vpop.eup %6608  ;;  %v4412_v22 = vmul.f32 %v4376_v3, %v8016_v53  ;;  %v3945_v37 = vadd.f32 1.0, %v3909_v27  ;;  %v8113_v51 = vadd.f32 %v6196_v5, %v7718_v28  ;;  %v4267_v23 = vmul.f32 %v8004_v49, %v4231_v52 }
 0x264   : > { %v8115_v12 = vpop.eup %6610  ;;  %v4157_v31 = vadd.f32 1.4214138, %v4121_v15  ;;  %v8121_v57 = vsel %vm3800_vm2, 1.0, %v9146_v17  ;;  %v4052_v48 = vmul.f32 1.0614054, %v8109_v39  ;;  %v4586_v6 = vmul.f32 %v4550_v60, %v7993_v11 }
 0x265   : > { %v8126_v53 = vsel %vm3798_vm4, 1.0, %v9146_v17  ;;  %v4050_v5 = vmul.f32 1.0614054, %v8115_v12  ;;  %6614 = vrcp.f32 %v3945_v37  ;;  %v4410_v52 = vmul.f32 %v4374_v55, %v8020_v41 }
 0x266   : > { %v4193_v3 = vmul.f32 %v8067_v36, %v4157_v31  ;;  %v4088_v46 = vadd.f32 -1.4531521, %v4052_v48  ;;  %v8132_v16 = vand.u32 2147483647, %v8107_v56  ;;  %6616 = vpow2.f32 %v4453_v14 }
 0x267   : > { %v4459_v34 = vmul.f32 1.442695, %v4412_v22  ;;  %v4086_v27 = vadd.f32 -1.4531521, %v4050_v5  ;;  %v8135_v15 = vmul.f32 0.70710677, %v8113_v51 }
 0x268   : > { %v4303_v11 = vadd.f32 0.2548296, %v4267_v23  ;;  %v4229_v60 = vadd.f32 -0.28449672, %v4193_v3  ;;  %v4124_v24 = vmul.f32 %v8109_v39, %v4088_v46  ;;  %v3912_v37 = vmul.f32 0.3275911, %v8132_v16 }
 0x269   : > { %v4622_v0 = vadd.f32 1.0, %v4586_v6  ;;  %v4122_v31 = vmul.f32 %v8115_v12, %v4086_v27  ;;  %v8141_v41 = vmul.f32 0.5, %v8033_v18  ;;  %v8144_v55 = vand.u32 2147483647, %v8135_v15 }
 0x26a   : > { %v4160_v14 = vadd.f32 1.4214138, %v4124_v24  ;;  %v4455_v22 = vmul.f32 1.442695, %v4410_v52  ;;  %v4379_v48 = vsub.f32 0.0, %v8055_v29  ;;  %v3948_v5 = vadd.f32 1.0, %v3912_v37 }
 0x26b   : > { %v8147_v23 = vpop.eup %6612  ;;  %6618 = vpow2.f32 %v4459_v34  ;;  %v4158_v3 = vadd.f32 1.4214138, %v4122_v31  ;;  %vm3803_vm5 = vcmp.ge.f32.partialorder %v8042_v33, 0.0  ;;  %v3910_v6 = vmul.f32 0.3275911, %v8144_v55  ;;  %v8157_v34 = vpop.f32.mrb[34].mxu0 }
 0x26c   : > { %v4339_v46 = vmul.f32 %v8004_v49, %v4303_v11  ;;  %v4265_v18 = vmul.f32 %v8067_v36, %v4229_v60  ;;  %v4196_v27 = vmul.f32 %v8109_v39, %v4160_v14  ;;  %v4055_v24 = vmul.f32 1.0614054, %v8147_v23  ;;  %9165 = vst [vmem:[#allocation35_spill] sm:$0xff] %v8157_v34  ;;  %v9166_v60 = vld [vmem:[#allocation4_spill] sm:$0xff]  ;;  %v9167_v14 = vld [vmem:[#allocation25_spill] sm:$0xff] }
 0x26d   : > { %v4194_v52 = vmul.f32 %v8115_v12, %v4158_v3  ;;  %v4377_v37 = vsub.f32 0.0, %v8089_v50  ;;  %6620 = vrcp.f32 %v3948_v5  ;;  %v3946_v8 = vadd.f32 1.0, %v3910_v6  ;;  %v9168_v3 = vld [vmem:[#allocation2_spill] sm:$0xff] }
 0x26e   : > { %v4232_v31 = vadd.f32 -0.28449672, %v4196_v27  ;;  %6622 = vpow2.f32 %v4455_v22  ;;  %v4091_v25 = vadd.f32 -1.4531521, %v4055_v24  ;;  %v4415_v2 = vmul.f32 %v4379_v48, %v8055_v29 }
 0x26f   : > { %v8160_v49 = vpop.eup %6614  ;;  %v4230_v11 = vadd.f32 -0.28449672, %v4194_v52  ;;  %vm3801_vm6 = vcmp.ge.f32.partialorder %v8074_v43, 0.0  ;;  %v6197_v59 = vadd.f32 %v9167_v14, %v9166_v60  ;;  %v6198_v61 = vadd.f32 %v9169_v9, %v9168_v3 }
 0x270   : > { %v4519_v5 = vmul.f32 %v8095_v10, %v4339_v46  ;;  %v4301_v6 = vadd.f32 0.2548296, %v4265_v18  ;;  %v4127_v27 = vmul.f32 %v8147_v23, %v4091_v25  ;;  %v4053_v22 = vmul.f32 1.0614054, %v8160_v49  ;;  %v6617_v24 = vpop.eup %6616 }
 0x271   : > { %v8173_v29 = vsel %vm3803_vm5, 1.0, %v9146_v17  ;;  %v4413_v48 = vmul.f32 %v4377_v37, %v8089_v50  ;;  %6624 = vrcp.f32 %v3946_v8  ;;  %v8177_v52 = vadd.f32 %v6197_v59, %v7718_v28  ;;  %v9170_v50 = vld [vmem:[#allocation5_spill] sm:$0xff]  ;;  %v9171_v8 = vld [vmem:[#allocation27_spill] sm:$0xff] }
 0x272   : > { %v4268_v9 = vmul.f32 %v8109_v39, %v4232_v31  ;;  %v4266_v10 = vmul.f32 %v8115_v12, %v4230_v11  ;;  %v4163_v46 = vadd.f32 1.4214138, %v4127_v27  ;;  %v8182_v25 = vmul.f32 0.5, %v8058_v63 }
 0x273   : > { %v4465_v18 = vmul.f32 1.442695, %v4415_v2  ;;  %v8187_v33 = vsel %vm3801_vm6, 1.0, %v9146_v17  ;;  %v4089_v60 = vadd.f32 -1.4531521, %v4053_v22  ;;  %v6199_v37 = vadd.f32 %v9171_v8, %v9170_v50 }
 0x274   : > { %v4555_v59 = vsub.f32 1.0, %v4519_v5  ;;  %v4337_v14 = vmul.f32 %v8067_v36, %v4301_v6  ;;  %v4199_v31 = vmul.f32 %v8147_v23, %v4163_v46  ;;  %vm3804_vm8 = vcmp.ge.f32.partialorder %v8107_v56, 0.0 }
 0x275   : > { %v6619_v11 = vpop.eup %6618  ;;  %v4125_v63 = vmul.f32 %v8160_v49, %v4089_v60  ;;  %v4461_v2 = vmul.f32 1.442695, %v4413_v48  ;;  %v4380_v3 = vsub.f32 0.0, %v8132_v16  ;;  %v8197_v43 = vmul.f32 0.70710677, %v8177_v52  ;;  %v8210_v60 = vpop.f32.mrb[35].mxu0 }
 0x276   : > { %v8200_v27 = vmul.f32 %v4622_v0, %v7990_v21  ;;  %v4304_v22 = vadd.f32 0.2548296, %v4268_v9  ;;  %v4302_v5 = vadd.f32 0.2548296, %v4266_v10  ;;  %v4235_v50 = vadd.f32 -0.28449672, %v4199_v31 }
 0x277   : > { %v8202_v36 = vpop.eup %6620  ;;  %6626 = vpow2.f32 %v4465_v18  ;;  %v4161_v6 = vadd.f32 1.4214138, %v4125_v63  ;;  %v8205_v46 = vmul.f32 0.5, %v8093_v4  ;;  %v8208_v48 = vand.u32 2147483647, %v8197_v43  ;;  %9173 = vst [vmem:[#allocation25_spill] sm:$0xff] %v8210_v60 }
 0x278   : > { %9172 = vst [vmem:[#allocation4_spill] sm:$0xff] %v8200_v27  ;;  %v6623_v8 = vpop.eup %6622  ;;  %v4591_v34 = vmul.f32 %v4555_v59, %v8013_v42  ;;  %v4517_v21 = vmul.f32 %v6617_v24, %v4337_v14  ;;  %v8216_v0 = vsel %vm3804_vm8, 1.0, %v9146_v17  ;;  %v4056_v9 = vmul.f32 1.0614054, %v8202_v36 }
 0x279   : > { %v4271_v10 = vmul.f32 %v8147_v23, %v4235_v50  ;;  %v4197_v4 = vmul.f32 %v8160_v49, %v4161_v6  ;;  %v3915_v18 = vmul.f32 0.3275911, %v8208_v48  ;;  %v8223_v31 = vadd.f32 %v6198_v61, %v7718_v28 }
 0x27a   : > { %6628 = vpow2.f32 %v4461_v2  ;;  %v4092_v63 = vadd.f32 -1.4531521, %v4056_v9  ;;  %v4416_v42 = vmul.f32 %v4380_v3, %v8132_v16  ;;  %vm3802_vm9 = vcmp.ge.f32.partialorder %v8135_v15, 0.0 }
 0x27b   : > { %v8227_v56 = vpop.eup %6624  ;;  %v4340_v24 = vmul.f32 %v8109_v39, %v4304_v22  ;;  %v4338_v59 = vmul.f32 %v8115_v12, %v4302_v5  ;;  %v4233_v14 = vadd.f32 -0.28449672, %v4197_v4  ;;  %v3951_v50 = vadd.f32 1.0, %v3915_v18 }
 0x27c   : > { %v4627_v6 = vadd.f32 1.0, %v4591_v34  ;;  %v4128_v60 = vmul.f32 %v8202_v36, %v4092_v63  ;;  %v4054_v61 = vmul.f32 1.0614054, %v8227_v56  ;;  %v4378_v2 = vsub.f32 0.0, %v8144_v55 }
 0x27d   : > { %v4553_v9 = vsub.f32 1.0, %v4517_v21  ;;  %v4307_v27 = vadd.f32 0.2548296, %v4271_v10  ;;  %6630 = vrcp.f32 %v3951_v50  ;;  %v8235_v16 = vmul.f32 0.70710677, %v8223_v31  ;;  %v9175_v50 = vld [vmem:[#allocation28_spill] sm:$0xff] }
 0x27e   : > { %v4269_v3 = vmul.f32 %v8160_v49, %v4233_v14  ;;  %v4164_v39 = vadd.f32 1.4214138, %v4128_v60  ;;  %v8239_v12 = vmul.f32 0.5, %v8113_v51  ;;  %v4090_v22 = vadd.f32 -1.4531521, %v4054_v61 }
 0x27f   : > { %v4520_v34 = vmul.f32 %v6619_v11, %v4340_v24  ;;  %v4518_v5 = vmul.f32 %v6623_v8, %v4338_v59  ;;  %v4467_v4 = vmul.f32 1.442695, %v4416_v42  ;;  %v8244_v18 = vsel %vm3802_vm9, 1.0, %v9146_v17  ;;  %v9174_v59 = vld [vmem:[#allocation6_spill] sm:$0xff] }
 0x280   : > { %v8247_v21 = vmul.f32 %v4627_v6, %v8008_v62  ;;  %v4200_v10 = vmul.f32 %v8202_v36, %v4164_v39  ;;  %v4126_v63 = vmul.f32 %v8227_v56, %v4090_v22  ;;  %v4414_v60 = vmul.f32 %v4378_v2, %v8144_v55 }
 0x281   : > { %v6627_v51 = vpop.eup %6626  ;;  %v4589_v14 = vmul.f32 %v4553_v9, %v8065_v38  ;;  %v4343_v11 = vmul.f32 %v8147_v23, %v4307_v27  ;;  %v8255_v8 = vand.u32 2147483647, %v8235_v16  ;;  %v8258_v15 = vadd.f32 %v6199_v37, %v7718_v28 }
 0x282   : > { %v4305_v42 = vadd.f32 0.2548296, %v4269_v3  ;;  %v4236_v62 = vadd.f32 -0.28449672, %v4200_v10  ;;  %v4162_v24 = vadd.f32 1.4214138, %v4126_v63  ;;  %v6200_v6 = vadd.f32 %v9175_v50, %v9174_v59 }
 0x283   : > { %v4556_v61 = vsub.f32 1.0, %v4520_v34  ;;  %v4554_v39 = vsub.f32 1.0, %v4518_v5  ;;  %6632 = vpow2.f32 %v4467_v4  ;;  %v3913_v55 = vmul.f32 0.3275911, %v8255_v8 }
 0x284   : > { %v6629_v38 = vpop.eup %6628  ;;  %v4272_v23 = vmul.f32 %v8202_v36, %v4236_v62  ;;  %v4198_v27 = vmul.f32 %v8227_v56, %v4162_v24  ;;  %v4463_v2 = vmul.f32 1.442695, %v4414_v60  ;;  %v8266_v37 = vmul.f32 0.70710677, %v8258_v15 }
 0x285   : > { %v4625_v9 = vadd.f32 1.0, %v4589_v14  ;;  %v4523_v3 = vmul.f32 %v6627_v51, %v4343_v11  ;;  %v3949_v22 = vadd.f32 1.0, %v3913_v55  ;;  %v8269_v10 = vadd.f32 %v6200_v6, %v7718_v28 }
 0x286   : > { %v4341_v34 = vmul.f32 %v8160_v49, %v4305_v42  ;;  %v4234_v5 = vadd.f32 -0.28449672, %v4198_v27  ;;  %v8273_v4 = vmul.f32 0.5, %v8177_v52  ;;  %vm3807_vm10 = vcmp.ge.f32.partialorder %v8197_v43, 0.0 }
 0x287   : > { %v8276_v63 = vpop.eup %6630  ;;  %v4592_v60 = vmul.f32 %v4556_v61, %v8121_v57  ;;  %v4590_v62 = vmul.f32 %v4554_v39, %v8126_v53  ;;  %v4383_v51 = vsub.f32 0.0, %v8208_v48  ;;  %6634 = vrcp.f32 %v3949_v22 }
 0x288   : > { %v4308_v14 = vadd.f32 0.2548296, %v4272_v23  ;;  %6636 = vpow2.f32 %v4463_v2  ;;  %v4059_v28 = vmul.f32 1.0614054, %v8276_v63  ;;  %v8283_v49 = vand.u32 2147483647, %v8266_v37 }
 0x289   : > { %v8286_v52 = vmul.f32 %v4625_v9, %v8048_v20  ;;  %v4559_v11 = vsub.f32 1.0, %v4523_v3  ;;  %v8289_v42 = vmul.f32 0.5, %v8223_v31  ;;  %v8292_v57 = vmul.f32 0.70710677, %v8269_v10 }
 0x28a   : > { %v4521_v53 = vmul.f32 %v6629_v38, %v4341_v34  ;;  %v4270_v24 = vmul.f32 %v8227_v56, %v4234_v5  ;;  %v4095_v59 = vadd.f32 -1.4531521, %v4059_v28  ;;  %v3916_v50 = vmul.f32 0.3275911, %v8283_v49 }
 0x28b   : > { %v4628_v6 = vadd.f32 1.0, %v4592_v60  ;;  %v4626_v61 = vadd.f32 1.0, %v4590_v62  ;;  %v8299_v20 = vsel %vm3807_vm10, 1.0, %v9146_v17  ;;  %v8302_v39 = vand.u32 2147483647, %v8292_v57  ;;  %v9176_v60 = vld [vmem:[#allocation7_spill] sm:$0xff] }
 0x28c   : > { %v4344_v31 = vmul.f32 %v8202_v36, %v4308_v14  ;;  %v4131_v55 = vmul.f32 %v8276_v63, %v4095_v59  ;;  %v4419_v38 = vmul.f32 %v4383_v51, %v8208_v48  ;;  %v3952_v23 = vadd.f32 1.0, %v3916_v50  ;;  %v9177_v62 = vld [vmem:[#allocation29_spill] sm:$0xff]  ;;  %v9179_v59 = vld [vmem:[#allocation30_spill] sm:$0xff] }
 0x28d   : > { %v6633_v27 = vpop.eup %6632  ;;  %v4595_v2 = vmul.f32 %v4559_v11, %v8173_v29  ;;  %vm3805_vm11 = vcmp.ge.f32.partialorder %v8235_v16, 0.0  ;;  %v4381_v9 = vsub.f32 0.0, %v8255_v8  ;;  %v3914_v43 = vmul.f32 0.3275911, %v8302_v39  ;;  %v9178_v11 = vld [vmem:[#allocation8_spill] sm:$0xff] }
 0x28e   : > { %v4557_v3 = vsub.f32 1.0, %v4521_v53  ;;  %v4306_v22 = vadd.f32 0.2548296, %v4270_v24  ;;  %v4167_v34 = vadd.f32 1.4214138, %v4131_v55  ;;  %6638 = vrcp.f32 %v3952_v23 }
 0x28f   : > { %v8312_v36 = vmul.f32 %v4628_v6, %v8052_v1  ;;  %v8315_v5 = vmul.f32 %v4626_v61, %v8070_v7  ;;  %v3950_v48 = vadd.f32 1.0, %v3914_v43  ;;  %v6201_v29 = vadd.f32 %v9177_v62, %v9176_v60  ;;  %v8332_v7 = vld [vmem:[%s9108_s2] ss:$0 sm:$0xff]  ;;  %v9180_v61 = vld [vmem:[#allocation9_spill] sm:$0xff] }
 0x290   : > { %v4524_v51 = vmul.f32 %v6633_v27, %v4344_v31  ;;  %v4203_v14 = vmul.f32 %v8276_v63, %v4167_v34  ;;  %v4473_v28 = vmul.f32 1.442695, %v4419_v38  ;;  %v6202_v53 = vadd.f32 %v9179_v59, %v9178_v11 }
 0x291   : > { %v8322_v24 = vpop.eup %6634  ;;  %v4631_v50 = vadd.f32 1.0, %v4595_v2  ;;  %v8327_v1 = vsel %vm3805_vm11, 1.0, %v9146_v17  ;;  %v8335_v6 = vadd.f32 %v8332_v7, %v6201_v29  ;;  %v6203_v31 = vadd.f32 %v7893_v26, %v9180_v61 }
 0x292   : > { %v6637_v55 = vpop.eup %6636  ;;  %v4593_v38 = vmul.f32 %v4557_v3, %v8187_v33  ;;  %v4342_v23 = vmul.f32 %v8227_v56, %v4306_v22  ;;  %v4057_v16 = vmul.f32 1.0614054, %v8322_v24  ;;  %v4417_v27 = vmul.f32 %v4381_v9, %v8255_v8 }
 0x293   : > { %v4239_v2 = vadd.f32 -0.28449672, %v4203_v14  ;;  %6640 = vrcp.f32 %v3950_v48  ;;  %v8344_v43 = vmul.f32 0.70710677, %v8335_v6  ;;  %v8347_v34 = vadd.f32 %v8332_v7, %v6202_v53 }
 0x294   : > { %v4560_v60 = vsub.f32 1.0, %v4524_v51  ;;  %6642 = vpow2.f32 %v4473_v28  ;;  %v4093_v26 = vadd.f32 -1.4531521, %v4057_v16  ;;  %v4384_v62 = vsub.f32 0.0, %v8283_v49 }
 0x295   : > { %v8351_v33 = vmul.f32 %v4631_v50, %v8141_v41  ;;  %v8354_v56 = vmul.f32 0.5, %v8258_v15  ;;  %v8357_v8 = vand.u32 2147483647, %v8344_v43  ;;  %v8360_v9 = vmul.f32 0.70710677, %v8347_v34 }
 0x296   : > { %v4522_v3 = vmul.f32 %v6637_v55, %v4342_v23  ;;  %v4129_v22 = vmul.f32 %v8322_v24, %v4093_v26  ;;  %v4469_v48 = vmul.f32 1.442695, %v4417_v27  ;;  %vm3808_vm12 = vcmp.ge.f32.partialorder %v8266_v37, 0.0 }
 0x297   : > { %9181 = vst [vmem:[#allocation2_spill] sm:$0xff] %v8351_v33  ;;  %v4629_v29 = vadd.f32 1.0, %v4593_v38  ;;  %v4275_v51 = vmul.f32 %v8276_v63, %v4239_v2  ;;  %v3919_v41 = vmul.f32 0.3275911, %v8357_v8  ;;  %v8367_v15 = vand.u32 2147483647, %v8360_v9 }
 0x298   : > { %v8369_v14 = vpop.eup %6638  ;;  %v4596_v28 = vmul.f32 %v4560_v60, %v8216_v0  ;;  %v4165_v11 = vadd.f32 1.4214138, %v4129_v22  ;;  %v4420_v59 = vmul.f32 %v4384_v62, %v8283_v49  ;;  %v4382_v53 = vsub.f32 0.0, %v8302_v39 }
 0x299   : > { %v4060_v50 = vmul.f32 1.0614054, %v8369_v14  ;;  %v3955_v61 = vadd.f32 1.0, %v3919_v41  ;;  %v3917_v55 = vmul.f32 0.3275911, %v8367_v15  ;;  %v8377_v38 = vadd.f32 %v8332_v7, %v6203_v31  ;;  %v9182_v41 = vld [vmem:[#allocation10_spill] sm:$0xff] }
 0x29a   : > { %v4558_v23 = vsub.f32 1.0, %v4522_v3  ;;  %v4201_v16 = vmul.f32 %v8322_v24, %v4165_v11  ;;  %6644 = vpow2.f32 %v4469_v48  ;;  %vm3806_vm13 = vcmp.ge.f32.partialorder %v8292_v57, 0.0  ;;  %v9183_v11 = vld [vmem:[#allocation11_spill] sm:$0xff] }
 0x29b   : > { %v4311_v0 = vadd.f32 0.2548296, %v4275_v51  ;;  %v4096_v27 = vadd.f32 -1.4531521, %v4060_v50  ;;  %6646 = vrcp.f32 %v3955_v61  ;;  %v3953_v49 = vadd.f32 1.0, %v3917_v55 }
 0x29c   : > { %v4632_v2 = vadd.f32 1.0, %v4596_v28  ;;  %v4237_v60 = vadd.f32 -0.28449672, %v4201_v16  ;;  %v4475_v26 = vmul.f32 1.442695, %v4420_v59  ;;  %v4418_v62 = vmul.f32 %v4382_v53, %v8302_v39 }
 0x29d   : > { %v8382_v22 = vpop.eup %6640  ;;  %v4132_v31 = vmul.f32 %v8369_v14, %v4096_v27  ;;  %v8386_v3 = vmul.f32 0.70710677, %v8377_v38  ;;  %v6204_v48 = vadd.f32 %v7898_v30, %v9182_v41  ;;  %v6205_v51 = vadd.f32 %v7914_v45, %v9183_v11 }
 0x29e   : > { %v6643_v50 = vpop.eup %6642  ;;  %v8395_v28 = vsel %vm3808_vm12, 1.0, %v9146_v17  ;;  %v8398_v39 = vmul.f32 0.5, %v8269_v10  ;;  %v4058_v59 = vmul.f32 1.0614054, %v8382_v22  ;;  %6648 = vrcp.f32 %v3953_v49 }
 0x29f   : > { %v4594_v53 = vmul.f32 %v4558_v23, %v8244_v18  ;;  %v4347_v61 = vmul.f32 %v8276_v63, %v4311_v0  ;;  %v4168_v30 = vadd.f32 1.4214138, %v4132_v31  ;;  %v8404_v55 = vadd.f32 %v8332_v7, %v6204_v48 }
 0x2a0   : > { %v8407_v45 = vmul.f32 %v4629_v29, %v8182_v25  ;;  %v8412_v37 = vsel %vm3806_vm13, 1.0, %v9146_v17  ;;  %v4094_v10 = vadd.f32 -1.4531521, %v4058_v59  ;;  %v4471_v16 = vmul.f32 1.442695, %v4418_v62 }
 0x2a1   : > { %v8415_v27 = vmul.f32 %v4632_v2, %v8205_v46  ;;  %v4273_v18 = vmul.f32 %v8322_v24, %v4237_v60  ;;  %6650 = vpow2.f32 %v4475_v26  ;;  %v8419_v63 = vand.u32 2147483647, %v8386_v3 }
 0x2a2   : > { %v4130_v23 = vmul.f32 %v8382_v22, %v4094_v10  ;;  %v8423_v25 = vmul.f32 0.5, %v8335_v6  ;;  %v4387_v57 = vsub.f32 0.0, %v8357_v8  ;;  %v8427_v29 = vmul.f32 0.70710677, %v8404_v55 }
 0x2a3   : > { %9184 = vst [vmem:[#allocation26_spill] sm:$0xff] %v8415_v27  ;;  %v4630_v0 = vadd.f32 1.0, %v4594_v53  ;;  %v4527_v49 = vmul.f32 %v6643_v50, %v4347_v61  ;;  %v4204_v46 = vmul.f32 %v8369_v14, %v4168_v30  ;;  %v3920_v2 = vmul.f32 0.3275911, %v8419_v63 }
 0x2a4   : > { %v6645_v60 = vpop.eup %6644  ;;  %v4166_v26 = vadd.f32 1.4214138, %v4130_v23  ;;  %6652 = vpow2.f32 %v4471_v16  ;;  %vm3811_vm14 = vcmp.ge.f32.partialorder %v8344_v43, 0.0  ;;  %v8433_v62 = vand.u32 2147483647, %v8427_v29 }
 0x2a5   : > { %v8435_v6 = vpop.eup %6646  ;;  %v4309_v31 = vadd.f32 0.2548296, %v4273_v18  ;;  %v8438_v41 = vmul.f32 0.5, %v8347_v34  ;;  %vm3809_vm15 = vcmp.ge.f32.partialorder %v8360_v9, 0.0  ;;  %v3956_v48 = vadd.f32 1.0, %v3920_v2 }
 0x2a6   : > { %v4202_v11 = vmul.f32 %v8382_v22, %v4166_v26  ;;  %v4063_v50 = vmul.f32 1.0614054, %v8435_v6  ;;  %v4423_v59 = vmul.f32 %v4387_v57, %v8357_v8  ;;  %v3918_v53 = vmul.f32 0.3275911, %v8433_v62 }
 0x2a7   : > { %v4563_v61 = vsub.f32 1.0, %v4527_v49  ;;  %v4240_v30 = vadd.f32 -0.28449672, %v4204_v46  ;;  %v4385_v10 = vsub.f32 0.0, %v8367_v15  ;;  %6654 = vrcp.f32 %v3956_v48 }
 0x2a8   : > { %v8446_v16 = vpop.eup %6648  ;;  %v8449_v34 = vmul.f32 %v4630_v0, %v8239_v12  ;;  %v4099_v18 = vadd.f32 -1.4531521, %v4063_v50  ;;  %v3954_v23 = vadd.f32 1.0, %v3918_v53  ;;  %v8452_v2 = vadd.f32 %v8332_v7, %v6205_v51 }
 0x2a9   : > { %v4345_v26 = vmul.f32 %v8322_v24, %v4309_v31  ;;  %v4238_v8 = vadd.f32 -0.28449672, %v4202_v11  ;;  %v8458_v57 = vsel %vm3811_vm14, 1.0, %v9146_v17  ;;  %v4061_v49 = vmul.f32 1.0614054, %v8446_v16 }
 0x2aa   : > { %v4135_v46 = vmul.f32 %v8435_v6, %v4099_v18  ;;  %v4481_v48 = vmul.f32 1.442695, %v4423_v59  ;;  %v8465_v12 = vsel %vm3809_vm15, 1.0, %v9146_v17  ;;  %6656 = vrcp.f32 %v3954_v23  ;;  %v9185_v23 = vld [vmem:[#allocation12_spill] sm:$0xff] }
 0x2ab   : > { %v6651_v51 = vpop.eup %6650  ;;  %v4599_v24 = vmul.f32 %v4563_v61, %v8299_v20  ;;  %v4276_v0 = vmul.f32 %v8369_v14, %v4240_v30  ;;  %v4097_v31 = vadd.f32 -1.4531521, %v4061_v49  ;;  %v4421_v43 = vmul.f32 %v4385_v10, %v8367_v15 }
 0x2ac   : > { %v4171_v11 = vadd.f32 1.4214138, %v4135_v46  ;;  %vm3812_vm0 = vcmp.ge.f32.partialorder %v8386_v3, 0.0  ;;  %v4388_v50 = vsub.f32 0.0, %v8419_v63  ;;  %v8473_v59 = vmul.f32 0.70710677, %v8452_v2 }
 0x2ad   : > { %v4525_v9 = vmul.f32 %v6645_v60, %v4345_v26  ;;  %v4274_v53 = vmul.f32 %v8382_v22, %v4238_v8  ;;  %v4133_v18 = vmul.f32 %v8446_v16, %v4097_v31  ;;  %v6206_v20 = vadd.f32 %v7923_v40, %v9185_v23 }
 0x2ae   : > { %v6653_v61 = vpop.eup %6652  ;;  %v4207_v30 = vmul.f32 %v8435_v6, %v4171_v11  ;;  %6658 = vpow2.f32 %v4481_v48  ;;  %v8481_v15 = vmul.f32 0.5, %v8377_v38  ;;  %v8484_v10 = vand.u32 2147483647, %v8473_v59 }
 0x2af   : > { %v4312_v49 = vadd.f32 0.2548296, %v4276_v0  ;;  %v4169_v46 = vadd.f32 1.4214138, %v4133_v18  ;;  %v4477_v60 = vmul.f32 1.442695, %v4421_v43  ;;  %v8487_v26 = vadd.f32 %v8332_v7, %v6206_v20 }
 0x2b0   : > { %v4635_v8 = vadd.f32 1.0, %v4599_v24  ;;  %v4243_v31 = vadd.f32 -0.28449672, %v4207_v30  ;;  %v8492_v40 = vsel %vm3812_vm0, 1.0, %v9146_v17  ;;  %v3923_v48 = vmul.f32 0.3275911, %v8484_v10 }
 0x2b1   : > { %v8495_v38 = vpop.eup %6654  ;;  %v4561_v11 = vsub.f32 1.0, %v4525_v9  ;;  %v4310_v23 = vadd.f32 0.2548296, %v4274_v53  ;;  %v4205_v0 = vmul.f32 %v8446_v16, %v4169_v46  ;;  %v4424_v43 = vmul.f32 %v4388_v50, %v8419_v63 }
 0x2b2   : > { %v4279_v18 = vmul.f32 %v8435_v6, %v4243_v31  ;;  %v4064_v24 = vmul.f32 1.0614054, %v8495_v38  ;;  %v3959_v20 = vadd.f32 1.0, %v3923_v48  ;;  %v8502_v30 = vmul.f32 0.70710677, %v8487_v26 }
 0x2b3   : > { %v4348_v3 = vmul.f32 %v8369_v14, %v4312_v49  ;;  %6660 = vpow2.f32 %v4477_v60  ;;  %v8506_v27 = vmul.f32 0.5, %v8404_v55  ;;  %v4386_v9 = vsub.f32 0.0, %v8433_v62 }
 0x2b4   : > { %v8509_v53 = vpop.eup %6656  ;;  %v8512_v63 = vmul.f32 %v4635_v8, %v8273_v4  ;;  %v4241_v50 = vadd.f32 -0.28449672, %v4205_v0  ;;  %v4100_v46 = vadd.f32 -1.4531521, %v4064_v24  ;;  %6662 = vrcp.f32 %v3959_v20  ;;  %v9187_v24 = vld [vmem:[#allocation13_spill] sm:$0xff] }
 0x2b5   : > { %v4346_v31 = vmul.f32 %v8382_v22, %v4310_v23  ;;  %v4483_v48 = vmul.f32 1.442695, %v4424_v43  ;;  %vm3810_vm1 = vcmp.ge.f32.partialorder %v8427_v29, 0.0  ;;  %v4062_v14 = vmul.f32 1.0614054, %v8509_v53 }
 0x2b6   : > { %9186 = vst [vmem:[#allocation5_spill] sm:$0xff] %v8512_v63  ;;  %v4597_v55 = vmul.f32 %v4561_v11, %v8327_v1  ;;  %v4315_v49 = vadd.f32 0.2548296, %v4279_v18  ;;  %v4136_v60 = vmul.f32 %v8495_v38, %v4100_v46  ;;  %v8520_v33 = vand.u32 2147483647, %v8502_v30 }
 0x2b7   : > { %v4528_v4 = vmul.f32 %v6651_v51, %v4348_v3  ;;  %v4098_v8 = vadd.f32 -1.4531521, %v4062_v14  ;;  %v4422_v0 = vmul.f32 %v4386_v9, %v8433_v62  ;;  %v6207_v22 = vadd.f32 %v7927_v13, %v9187_v24  ;;  %v9188_v9 = vld [vmem:[#allocation14_spill] sm:$0xff] }
 0x2b8   : > { %v6659_v23 = vpop.eup %6658  ;;  %v4277_v29 = vmul.f32 %v8446_v16, %v4241_v50  ;;  %v4172_v43 = vadd.f32 1.4214138, %v4136_v60  ;;  %v8527_v20 = vsel %vm3810_vm1, 1.0, %v9146_v17  ;;  %v3921_v1 = vmul.f32 0.3275911, %v8520_v33 }
 0x2b9   : > { %v4526_v11 = vmul.f32 %v6653_v61, %v4346_v31  ;;  %6664 = vpow2.f32 %v4483_v48  ;;  %v4134_v18 = vmul.f32 %v8509_v53, %v4098_v8  ;;  %v8532_v51 = vadd.f32 %v8332_v7, %v6207_v22 }
 0x2ba   : > { %v4351_v62 = vmul.f32 %v8435_v6, %v4315_v49  ;;  %v4208_v13 = vmul.f32 %v8495_v38, %v4172_v43  ;;  %v3957_v3 = vadd.f32 1.0, %v3921_v1  ;;  %v6208_v50 = vadd.f32 %v7932_v58, %v9188_v9 }
 0x2bb   : > { %v4633_v46 = vadd.f32 1.0, %v4597_v55  ;;  %v4564_v14 = vsub.f32 1.0, %v4528_v4  ;;  %v4170_v60 = vadd.f32 1.4214138, %v4134_v18  ;;  %v4479_v24 = vmul.f32 1.442695, %v4422_v0 }
 0x2bc   : > { %v4313_v63 = vadd.f32 0.2548296, %v4277_v29  ;;  %v4391_v61 = vsub.f32 0.0, %v8484_v10  ;;  %6666 = vrcp.f32 %v3957_v3  ;;  %v8540_v31 = vmul.f32 0.70710677, %v8532_v51 }
 0x2bd   : > { %v6661_v48 = vpop.eup %6660  ;;  %v4562_v8 = vsub.f32 1.0, %v4526_v11  ;;  %v4206_v6 = vmul.f32 %v8509_v53, %v4170_v60  ;;  %v8544_v49 = vmul.f32 0.5, %v8452_v2  ;;  %vm3815_vm2 = vcmp.ge.f32.partialorder %v8473_v59, 0.0 }
 0x2be   : > { %v8547_v58 = vpop.eup %6662  ;;  %v4531_v55 = vmul.f32 %v6659_v23, %v4351_v62  ;;  %v4244_v4 = vadd.f32 -0.28449672, %v4208_v13  ;;  %v8550_v0 = vand.u32 2147483647, %v8540_v31  ;;  %v8553_v22 = vadd.f32 %v8332_v7, %v6208_v50 }
 0x2bf   : > { %v8556_v29 = vmul.f32 %v4633_v46, %v8289_v42  ;;  %v4600_v43 = vmul.f32 %v4564_v14, %v8395_v28  ;;  %6668 = vpow2.f32 %v4479_v24  ;;  %v4067_v2 = vmul.f32 1.0614054, %v8547_v58 }
 0x2c0   : > { %v4349_v59 = vmul.f32 %v8446_v16, %v4313_v63  ;;  %v8562_v1 = vsel %vm3815_vm2, 1.0, %v9146_v17  ;;  %v4427_v23 = vmul.f32 %v4391_v61, %v8484_v10  ;;  %v3924_v11 = vmul.f32 0.3275911, %v8550_v0 }
 0x2c1   : > { %v4598_v18 = vmul.f32 %v4562_v8, %v8412_v37  ;;  %v4242_v62 = vadd.f32 -0.28449672, %v4206_v6  ;;  %v4103_v13 = vadd.f32 -1.4531521, %v4067_v2  ;;  %v4389_v42 = vsub.f32 0.0, %v8520_v33  ;;  %v9189_v2 = vld [vmem:[#allocation15_spill] sm:$0xff] }
 0x2c2   : > { %v4567_v3 = vsub.f32 1.0, %v4531_v55  ;;  %v4280_v28 = vmul.f32 %v8495_v38, %v4244_v4  ;;  %v3960_v9 = vadd.f32 1.0, %v3924_v11  ;;  %v8570_v50 = vmul.f32 0.70710677, %v8553_v22 }
 0x2c3   : > { %v6665_v16 = vpop.eup %6664  ;;  %v4636_v63 = vadd.f32 1.0, %v4600_v43  ;;  %v4139_v46 = vmul.f32 %v8547_v58, %v4103_v13  ;;  %v8574_v10 = vmul.f32 0.5, %v8487_v26  ;;  %vm3813_vm4 = vcmp.ge.f32.partialorder %v8502_v30, 0.0 }
 0x2c4   : > { %v4529_v37 = vmul.f32 %v6661_v48, %v4349_v59  ;;  %v4489_v14 = vmul.f32 1.442695, %v4427_v23  ;;  %6670 = vrcp.f32 %v3960_v9  ;;  %v8578_v60 = vand.u32 2147483647, %v8570_v50 }
 0x2c5   : > { %v4634_v24 = vadd.f32 1.0, %v4598_v18  ;;  %v4278_v61 = vmul.f32 %v8509_v53, %v4242_v62  ;;  %v4175_v8 = vadd.f32 1.4214138, %v4139_v46  ;;  %v4425_v6 = vmul.f32 %v4389_v42, %v8520_v33 }
 0x2c6   : > { %v8582_v55 = vpop.eup %6666  ;;  %v4603_v4 = vmul.f32 %v4567_v3, %v8458_v57  ;;  %v4316_v26 = vadd.f32 0.2548296, %v4280_v28  ;;  %v3922_v43 = vmul.f32 0.3275911, %v8578_v60  ;;  %v6209_v48 = vadd.f32 %v7950_v54, %v9189_v2  ;;  %v9190_v3 = vld [vmem:[#allocation16_spill] sm:$0xff] }
 0x2c7   : > { %v8589_v59 = vmul.f32 %v4636_v63, %v8354_v56  ;;  %v4211_v23 = vmul.f32 %v8547_v58, %v4175_v8  ;;  %v8595_v11 = vsel %vm3813_vm4, 1.0, %v9146_v17  ;;  %v4065_v33 = vmul.f32 1.0614054, %v8582_v55 }
 0x2c8   : > { %v4565_v18 = vsub.f32 1.0, %v4529_v37  ;;  %6672 = vpow2.f32 %v4489_v14  ;;  %v3958_v57 = vadd.f32 1.0, %v3922_v43  ;;  %v8599_v62 = vadd.f32 %v8332_v7, %v6209_v48 }
 0x2c9   : > { %v6669_v13 = vpop.eup %6668  ;;  %v4314_v54 = vadd.f32 0.2548296, %v4278_v61  ;;  %v4101_v42 = vadd.f32 -1.4531521, %v4065_v33  ;;  %v4485_v56 = vmul.f32 1.442695, %v4425_v6  ;;  %v6210_v28 = vadd.f32 %v7954_v19, %v9190_v3 }
 0x2ca   : > { %v8604_v9 = vmul.f32 %v4634_v24, %v8398_v39  ;;  %v4639_v30 = vadd.f32 1.0, %v4603_v4  ;;  %v4352_v63 = vmul.f32 %v8495_v38, %v4316_v26  ;;  %6674 = vrcp.f32 %v3958_v57 }
 0x2cb   : > { %v4247_v46 = vadd.f32 -0.28449672, %v4211_v23  ;;  %v4137_v37 = vmul.f32 %v8582_v55, %v4101_v42  ;;  %vm3816_vm5 = vcmp.ge.f32.partialorder %v8540_v31, 0.0  ;;  %v8610_v14 = vmul.f32 0.70710677, %v8599_v62 }
 0x2cc   : > { %v4601_v61 = vmul.f32 %v4565_v18, %v8465_v12  ;;  %v4392_v8 = vsub.f32 0.0, %v8550_v0  ;;  %v8615_v19 = vadd.f32 %v8332_v7, %v6210_v28  ;;  %v4689_v39 = vpack.c.bf16 %v8045_v47, %v8023_v32 }
 0x2cd   : > { %v4350_v38 = vmul.f32 %v8509_v53, %v4314_v54  ;;  %v4173_v24 = vadd.f32 1.4214138, %v4137_v37  ;;  %6676 = vpow2.f32 %v4485_v56  ;;  %v8621_v6 = vmul.f32 0.5, %v8532_v51 }
 0x2ce   : > { %v8623_v4 = vpop.eup %6670  ;;  %v8626_v26 = vmul.f32 %v4639_v30, %v8423_v25  ;;  %v4532_v12 = vmul.f32 %v6665_v16, %v4352_v63  ;;  %v8629_v43 = vand.u32 2147483647, %v8610_v14  ;;  %v8632_v2 = vmul.f32 0.70710677, %v8615_v19 }
 0x2cf   : > { %v4283_v32 = vmul.f32 %v8547_v58, %v4247_v46  ;;  %v4209_v47 = vmul.f32 %v8582_v55, %v4173_v24  ;;  %v8639_v53 = vsel %vm3816_vm5, 1.0, %v9146_v17  ;;  %v4068_v51 = vmul.f32 1.0614054, %v8623_v4 }
 0x2d0   : > { %v4637_v25 = vadd.f32 1.0, %v4601_v61  ;;  %v4428_v16 = vmul.f32 %v4392_v8, %v8550_v0  ;;  %v3927_v48 = vmul.f32 0.3275911, %v8629_v43  ;;  %v8645_v23 = vand.u32 2147483647, %v8632_v2 }
 0x2d1   : > { %v4530_v33 = vmul.f32 %v6669_v13, %v4350_v38  ;;  %v4104_v18 = vadd.f32 -1.4531521, %v4068_v51  ;;  %v8648_v57 = vmul.f32 0.5, %v8553_v22  ;;  %v4390_v54 = vsub.f32 0.0, %v8578_v60  ;;  %v9194_v51 = vld [vmem:[#allocation18_spill] sm:$0xff] }
 0x2d2   : > { %v6673_v31 = vpop.eup %6672  ;;  %v4568_v42 = vsub.f32 1.0, %v4532_v12  ;;  %vm3814_vm6 = vcmp.ge.f32.partialorder %v8570_v50, 0.0  ;;  %v3963_v56 = vadd.f32 1.0, %v3927_v48  ;;  %v3925_v3 = vmul.f32 0.3275911, %v8645_v23 }
 0x2d3   : > { %v4319_v0 = vadd.f32 0.2548296, %v4283_v32  ;;  %v4245_v28 = vadd.f32 -0.28449672, %v4209_v47  ;;  %v4140_v30 = vmul.f32 %v8623_v4, %v4104_v18  ;;  %vm4730_vm8 = vcmask 261120   ;;  %v9192_v32 = vld [vmem:[#allocation17_spill] sm:$0xff] }
 0x2d4   : > { %v8654_v63 = vpop.eup %6674  ;;  %v8657_v13 = vmul.f32 %v4637_v25, %v8438_v41  ;;  %v4491_v22 = vmul.f32 1.442695, %v4428_v16  ;;  %6678 = vrcp.f32 %v3963_v56  ;;  %v3961_v46 = vadd.f32 1.0, %v3925_v3  ;;  %6145 = vmatprep.mubr.msk.bf16.mxu1 %vm4730_vm8, %v4689_v39  ;;  %v9193_v39 = vld [vmem:[#allocation31_spill] sm:$0xff]  ;;  %v9195_v25 = vld [vmem:[#allocation32_spill] sm:$0xff] }
 0x2d5   : > { %v4566_v37 = vsub.f32 1.0, %v4530_v33  ;;  %v4176_v61 = vadd.f32 1.4214138, %v4140_v30  ;;  %v4066_v8 = vmul.f32 1.0614054, %v8654_v63  ;;  %v4426_v38 = vmul.f32 %v4390_v54, %v8578_v60  ;;  %v9196_v18 = vld [vmem:[#allocation19_spill] sm:$0xff] }
 0x2d6   : > { %v9191_v24 = vpack.c.bf16 %v7939_v35, %v7936_v44  ;;  %v4604_v12 = vmul.f32 %v4568_v42, %v8492_v40  ;;  %v8670_v41 = vsel %vm3814_vm6, 1.0, %v9146_v17  ;;  %v6211_v47 = vadd.f32 %v9193_v39, %v9192_v32  ;;  %v9197_v54 = vld [vmem:[#allocation23_spill] sm:$0xff] }
 0x2d7   : > { %v6212_v16 = vadd.f32 %v9195_v25, %v9194_v51  ;;  %v6677_v48 = vpop.eup %6676  ;;  %v4355_v60 = vmul.f32 %v8547_v58, %v4319_v0  ;;  %v4281_v44 = vmul.f32 %v8582_v55, %v4245_v28  ;;  %v4212_v35 = vmul.f32 %v8623_v4, %v4176_v61 }
 0x2d8   : > { %6146 = vmatmul.mubr.msk.bf16.vlgmr.msra.gmra.mrb[36].mxu1 %vm4730_vm8, %v9191_v24  ;;  %v4102_v33 = vadd.f32 -1.4531521, %v4066_v8  ;;  %6680 = vrcp.f32 %v3961_v46  ;;  %v8680_v40 = vadd.f32 %v8332_v7, %v6211_v47  ;;  %v6213_v42 = vadd.f32 %v9197_v54, %v9196_v18 }
 0x2d9   : > { %v8683_v50 = vadd.f32 %v8332_v7, %v6212_v16  ;;  %v4602_v56 = vmul.f32 %v4566_v37, %v8527_v20  ;;  %6682 = vpow2.f32 %v4491_v22  ;;  %v4487_v3 = vmul.f32 1.442695, %v4426_v38  ;;  %v9198_v37 = vld [vmem:[#allocation20_spill] sm:$0xff] }
 0x2da   : > { %v4138_v58 = vmul.f32 %v8654_v63, %v4102_v33  ;;  %v4640_v0 = vadd.f32 1.0, %v4604_v12  ;;  %v4248_v28 = vadd.f32 -0.28449672, %v4212_v35  ;;  %v4395_v30 = vsub.f32 0.0, %v8629_v43  ;;  %v9199_v38 = vld [vmem:[#allocation24_spill] sm:$0xff] }
 0x2db   : > { %v8691_v46 = vmul.f32 0.70710677, %v8680_v40  ;;  %v4535_v61 = vmul.f32 %v6673_v31, %v4355_v60  ;;  %v4393_v24 = vsub.f32 0.0, %v8645_v23  ;;  %v8695_v32 = vmul.f32 0.70710677, %v8683_v50 }
 0x2dc   : > { %v4174_v8 = vadd.f32 1.4214138, %v4138_v58  ;;  %v4317_v39 = vadd.f32 0.2548296, %v4281_v44  ;;  %v8698_v20 = vmul.f32 0.5, %v8599_v62  ;;  %v6214_v12 = vadd.f32 %v9199_v38, %v9198_v37 }
 0x2dd   : > { %v3892_v22 = vand.u32 2147483647, %v8691_v46  ;;  %v4638_v47 = vadd.f32 1.0, %v4602_v56  ;;  %6684 = vpow2.f32 %v4487_v3  ;;  %vm3819_vm9 = vcmp.ge.f32.partialorder %v8610_v14, 0.0 }
 0x2de   : > { %v4210_v51 = vmul.f32 %v8654_v63, %v4174_v8  ;;  %v8705_v31 = vpop.eup %6678  ;;  %v4284_v25 = vmul.f32 %v8623_v4, %v4248_v28  ;;  %v4431_v16 = vmul.f32 %v4395_v30, %v8629_v43  ;;  %v8710_v62 = vand.u32 2147483647, %v8695_v32 }
 0x2df   : > { %v3928_v60 = vmul.f32 0.3275911, %v3892_v22  ;;  %v4571_v44 = vsub.f32 1.0, %v4535_v61  ;;  %v4071_v33 = vmul.f32 1.0614054, %v8705_v31  ;;  %v4429_v18 = vmul.f32 %v4393_v24, %v8645_v23 }
 0x2e0   : > { %v4246_v35 = vadd.f32 -0.28449672, %v4210_v51  ;;  %v4353_v54 = vmul.f32 %v8582_v55, %v4317_v39  ;;  %v3926_v14 = vmul.f32 0.3275911, %v8710_v62  ;;  %v8717_v58 = vadd.f32 %v8332_v7, %v6213_v42 }
 0x2e1   : > { %v3964_v56 = vadd.f32 1.0, %v3928_v60  ;;  %v8721_v3 = vsel %vm3819_vm9, 1.0, %v9146_v17  ;;  %v4107_v28 = vadd.f32 -1.4531521, %v4071_v33  ;;  %v8724_v30 = vmul.f32 0.5, %v8615_v19 }
 0x2e2   : > { %v4282_v43 = vmul.f32 %v8654_v63, %v4246_v35  ;;  %v8726_v61 = vpop.eup %6680  ;;  %v4320_v23 = vadd.f32 0.2548296, %v4284_v25  ;;  %vm3817_vm10 = vcmp.ge.f32.partialorder %v8632_v2, 0.0  ;;  %v3962_v55 = vadd.f32 1.0, %v3926_v14  ;;  %v9200_v2 = vld [vmem:[#allocation34_spill] sm:$0xff] }
 0x2e3   : > { %6686 = vrcp.f32 %v3964_v56  ;;  %v6683_v8 = vpop.eup %6682  ;;  %v4607_v42 = vmul.f32 %v4571_v44, %v8562_v1  ;;  %v4143_v24 = vmul.f32 %v8705_v31, %v4107_v28  ;;  %v4497_v39 = vmul.f32 1.442695, %v4431_v16 }
 0x2e4   : > { %v4069_v37 = vmul.f32 1.0614054, %v8726_v61  ;;  %v4533_v38 = vmul.f32 %v6677_v48, %v4353_v54  ;;  %v4493_v51 = vmul.f32 1.442695, %v4429_v18  ;;  %v4396_v60 = vsub.f32 0.0, %v3892_v22 }
 0x2e5   : > { %v8733_v19 = vmul.f32 0.70710677, %v8717_v58  ;;  %v8736_v25 = vmul.f32 %v4640_v0, %v8481_v15  ;;  %v4318_v35 = vadd.f32 0.2548296, %v4282_v43  ;;  %v4179_v33 = vadd.f32 1.4214138, %v4143_v24 }
 0x2e6   : > { %v4105_v56 = vadd.f32 -1.4531521, %v4069_v37  ;;  %v8739_v14 = vmul.f32 %v4638_v47, %v8506_v27  ;;  %v4356_v1 = vmul.f32 %v8623_v4, %v4320_v23  ;;  %6688 = vrcp.f32 %v3962_v55 }
 0x2e7   : > { %v8743_v16 = vand.u32 2147483647, %v8733_v19  ;;  %v6685_v48 = vpop.eup %6684  ;;  %v4215_v44 = vmul.f32 %v8705_v31, %v4179_v33  ;;  %6690 = vpow2.f32 %v4497_v39  ;;  %v8749_v15 = vsel %vm3817_vm10, 1.0, %v9146_v17  ;;  %v9201_v39 = vld [vmem:[#allocation4_spill] sm:$0xff] }
 0x2e8   : > { %v4141_v0 = vmul.f32 %v8726_v61, %v4105_v56  ;;  %v4643_v18 = vadd.f32 1.0, %v4607_v42  ;;  %v4569_v27 = vsub.f32 1.0, %v4533_v38  ;;  %6692 = vpow2.f32 %v4493_v51  ;;  %v9202_v51 = vld [vmem:[#allocation21_spill] sm:$0xff]  ;;  %v9203_v56 = vld [vmem:[#allocation35_spill] sm:$0xff] }
 0x2e9   : > { %v3931_v4 = vmul.f32 0.3275911, %v8743_v16  ;;  %v4354_v47 = vmul.f32 %v8654_v63, %v4318_v35  ;;  %v4251_v54 = vadd.f32 -0.28449672, %v4215_v44  ;;  %v4432_v28 = vmul.f32 %v4396_v60, %v3892_v22 }
 0x2ea   : > { %v4177_v43 = vadd.f32 1.4214138, %v4141_v0  ;;  %v4536_v23 = vmul.f32 %v6683_v8, %v4356_v1  ;;  %v8755_v24 = vadd.f32 %v8332_v7, %v6214_v12  ;;  %v4691_v37 = vpack.c.bf16 %v9201_v39, %v9200_v2 }
 0x2eb   : > { %v3967_v55 = vadd.f32 1.0, %v3931_v4  ;;  %v4287_v33 = vmul.f32 %v8705_v31, %v4251_v54  ;;  %v4394_v38 = vsub.f32 0.0, %v8710_v62  ;;  %v6215_v63 = vadd.f32 %v9203_v56, %v9202_v51  ;;  %v9204_v51 = vld [vmem:[#allocation33_spill] sm:$0xff] }
 0x2ec   : > { %v4213_v42 = vmul.f32 %v8726_v61, %v4177_v43  ;;  %v8767_v22 = vmul.f32 %v4643_v18, %v8544_v49  ;;  %v4605_v12 = vmul.f32 %v4569_v27, %v8595_v11  ;;  %v8771_v8 = vmul.f32 0.70710677, %v8755_v24  ;;  %6149 = vmatprep.mubr.msk.bf16.mxu1 %vm4730_vm8, %v4691_v37 }
 0x2ed   : > { %v8764_v35 = vpop.eup %6686  ;;  %6694 = vrcp.f32 %v3967_v55  ;;  %v4534_v60 = vmul.f32 %v6685_v48, %v4354_v47  ;;  %v4323_v1 = vadd.f32 0.2548296, %v4287_v33  ;;  %v8775_v0 = vadd.f32 %v8332_v7, %v6215_v63 }
 0x2ee   : > { %v4249_v44 = vadd.f32 -0.28449672, %v4213_v42  ;;  %v8778_v4 = vmul.f32 0.5, %v8680_v40  ;;  %vm3820_vm11 = vcmp.ge.f32.partialorder %v8691_v46, 0.0  ;;  %v4072_v49 = vmul.f32 1.0614054, %v8764_v35 }
 0x2ef   : > { %v8783_v11 = vand.u32 2147483647, %v8771_v8  ;;  %v4572_v18 = vsub.f32 1.0, %v4536_v23  ;;  %v4499_v54 = vmul.f32 1.442695, %v4432_v28  ;;  %v4430_v48 = vmul.f32 %v4394_v38, %v8710_v62 }
 0x2f0   : > { %v4285_v27 = vmul.f32 %v8726_v61, %v4249_v44  ;;  %v8787_v47 = vpop.eup %6688  ;;  %v4641_v43 = vadd.f32 1.0, %v4605_v12  ;;  %v4359_v55 = vmul.f32 %v8705_v31, %v4323_v1  ;;  %v4108_v40 = vadd.f32 -1.4531521, %v4072_v49  ;;  %v9205_v31 = vld [vmem:[#allocation3_spill] sm:$0xff] }
 0x2f1   : > { %v3929_v2 = vmul.f32 0.3275911, %v8783_v11  ;;  %v6691_v46 = vpop.eup %6690  ;;  %v4570_v39 = vsub.f32 1.0, %v4534_v60  ;;  %v8792_v37 = vsel %vm3820_vm11, 1.0, %v9146_v17  ;;  %v4070_v23 = vmul.f32 1.0614054, %v8787_v47 }
 0x2f2   : > { %v8796_v33 = vmul.f32 0.70710677, %v8775_v0  ;;  %v6693_v28 = vpop.eup %6692  ;;  %v4321_v62 = vadd.f32 0.2548296, %v4285_v27  ;;  %v4144_v42 = vmul.f32 %v8764_v35, %v4108_v40  ;;  %v4692_v56 = vpack.c.bf16 %v9205_v31, %v9204_v51 }
 0x2f3   : > { %v3965_v38 = vadd.f32 1.0, %v3929_v2  ;;  %v4608_v63 = vmul.f32 %v4572_v18, %v8639_v53  ;;  %6696 = vpow2.f32 %v4499_v54  ;;  %v4106_v12 = vadd.f32 -1.4531521, %v4070_v23  ;;  %v9206_v54 = vld [vmem:[#allocation22_spill] sm:$0xff] }
 0x2f4   : > { %v4495_v60 = vmul.f32 1.442695, %v4430_v48  ;;  %v8803_v1 = vmul.f32 %v4641_v43, %v8574_v10  ;;  %v4539_v44 = vmul.f32 %v6691_v46, %v4359_v55  ;;  %v4180_v49 = vadd.f32 1.4214138, %v4144_v42  ;;  %6150 = vmatmul.mubr.msk.bf16.gmra.mrb[40].mxu1 %vm4730_vm8, %v4692_v56  ;;  %v9207_v48 = vld [vmem:[#allocation25_spill] sm:$0xff] }
 0x2f5   : > { %6698 = vrcp.f32 %v3965_v38  ;;  %v4606_v27 = vmul.f32 %v4570_v39, %v8670_v41  ;;  %v4142_v40 = vmul.f32 %v8787_v47, %v4106_v12  ;;  %v4399_v2 = vsub.f32 0.0, %v8743_v16 }
 0x2f6   : > { %v8810_v51 = vand.u32 2147483647, %v8796_v33  ;;  %v4357_v18 = vmul.f32 %v8726_v61, %v4321_v62  ;;  %v4216_v10 = vmul.f32 %v8764_v35, %v4180_v49  ;;  %v6216_v43 = vadd.f32 %v9207_v48, %v9206_v54 }
 0x2f7   : > { %v8812_v53 = vpop.eup %6694  ;;  %v4693_v55 = vpack.c.bf16 %v8315_v5, %v8286_v52  ;;  %v4644_v41 = vadd.f32 1.0, %v4608_v63  ;;  %v4178_v46 = vadd.f32 1.4214138, %v4142_v40  ;;  %6700 = vpow2.f32 %v4495_v60 }
 0x2f8   : > { %v4075_v39 = vmul.f32 1.0614054, %v8812_v53  ;;  %v4575_v23 = vsub.f32 1.0, %v4539_v44  ;;  %v4252_v42 = vadd.f32 -0.28449672, %v4216_v10  ;;  %v8823_v31 = vadd.f32 %v8332_v7, %v6216_v43 }
 0x2f9   : > { %v3932_v38 = vmul.f32 0.3275911, %v8810_v51  ;;  %6153 = vmatprep.mubr.msk.bf16.mxu1 %vm4730_vm8, %v4693_v55  ;;  %v4642_v61 = vadd.f32 1.0, %v4606_v27  ;;  %v4214_v62 = vmul.f32 %v8787_v47, %v4178_v46  ;;  %v4435_v52 = vmul.f32 %v4399_v2, %v8743_v16 }
 0x2fa   : > { %v4111_v56 = vadd.f32 -1.4531521, %v4075_v39  ;;  %v4537_v5 = vmul.f32 %v6693_v28, %v4357_v18  ;;  %v4288_v63 = vmul.f32 %v8764_v35, %v4252_v42  ;;  %vm3818_vm12 = vcmp.ge.f32.partialorder %v8695_v32, 0.0 }
 0x2fb   : > { %v4397_v12 = vsub.f32 0.0, %v8783_v11  ;;  %v3968_v60 = vadd.f32 1.0, %v3932_v38  ;;  %v8832_v44 = vmul.f32 %v4644_v41, %v8621_v6  ;;  %v4250_v7 = vadd.f32 -0.28449672, %v4214_v62  ;;  %v9209_v38 = vld [vmem:[#allocation26_spill] sm:$0xff] }
 0x2fc   : > { %v4147_v49 = vmul.f32 %v8812_v53, %v4111_v56  ;;  %v8836_v27 = vmul.f32 0.70710677, %v8823_v31  ;;  %v4611_v40 = vmul.f32 %v4575_v23, %v8721_v3  ;;  %v4324_v16 = vadd.f32 0.2548296, %v4288_v63 }
 0x2fd   : > { %6702 = vrcp.f32 %v3968_v60  ;;  %v4694_v28 = vpack.c.bf16 %v8312_v36, %v8247_v21  ;;  %v6697_v2 = vpop.eup %6696  ;;  %v8842_v18 = vmul.f32 %v4642_v61, %v8648_v57  ;;  %v4286_v6 = vmul.f32 %v8787_v47, %v4250_v7 }
 0x2fe   : > { %v4183_v10 = vadd.f32 1.4214138, %v4147_v49  ;;  %v4505_v54 = vmul.f32 1.442695, %v4435_v52  ;;  %v4573_v43 = vsub.f32 1.0, %v4537_v5  ;;  %v4360_v55 = vmul.f32 %v8764_v35, %v4324_v16  ;;  %v9208_v35 = vld [vmem:[#allocation2_spill] sm:$0xff] }
 0x2ff   : > { %v8845_v48 = vpop.eup %6698  ;;  %v4433_v3 = vmul.f32 %v4397_v12, %v8783_v11  ;;  %v8850_v41 = vand.u32 2147483647, %v8836_v27  ;;  %6154 = vmatmul.mubr.msk.bf16.gmra.mrb[44].mxu1 %vm4730_vm8, %v4694_v28  ;;  %v4322_v21 = vadd.f32 0.2548296, %v4286_v6  ;;  %v4695_v46 = vpack.c.bf16 %v8449_v34, %v8407_v45  ;;  %v9210_v12 = vld [vmem:[#allocation5_spill] sm:$0xff] }
 0x300   : > { %v4219_v36 = vmul.f32 %v8812_v53, %v4183_v10  ;;  %v4073_v57 = vmul.f32 1.0614054, %v8845_v48  ;;  %v4647_v39 = vadd.f32 1.0, %v4611_v40  ;;  %v4540_v23 = vmul.f32 %v6697_v2, %v4360_v55 }
 0x301   : > { %v3930_v42 = vmul.f32 0.3275911, %v8850_v41  ;;  %v4696_v11 = vpack.c.bf16 %v9209_v38, %v9208_v35  ;;  %v6701_v61 = vpop.eup %6700  ;;  %v4358_v62 = vmul.f32 %v8787_v47, %v4322_v21  ;;  %6157 = vmatprep.mubr.msk.bf16.mxu1 %vm4730_vm8, %v4695_v46  ;;  %v4697_v5 = vpack.c.bf16 %v8604_v9, %v8556_v29 }
 0x302   : > { %v4255_v56 = vadd.f32 -0.28449672, %v4219_v36  ;;  %v4109_v52 = vadd.f32 -1.4531521, %v4073_v57  ;;  %v4576_v63 = vsub.f32 1.0, %v4540_v23  ;;  %v4400_v45 = vsub.f32 0.0, %v8810_v51 }
 0x303   : > { %v3966_v34 = vadd.f32 1.0, %v3930_v42  ;;  %v4698_v60 = vpack.c.bf16 %v8589_v59, %v9210_v12  ;;  %v4609_v7 = vmul.f32 %v4573_v43, %v8749_v15  ;;  %v4538_v49 = vmul.f32 %v6701_v61, %v4358_v62 }
 0x304   : > { %v4145_v40 = vmul.f32 %v8845_v48, %v4109_v52  ;;  %v4699_v47 = vpack.c.bf16 %v8739_v14, %v8657_v13  ;;  %v4612_v16 = vmul.f32 %v4576_v63, %v8792_v37  ;;  %v4291_v28 = vmul.f32 %v8812_v53, %v4255_v56 }
 0x305   : > { %6704 = vrcp.f32 %v3966_v34  ;;  %v4700_v29 = vpack.c.bf16 %v8736_v25, %v8626_v26  ;;  %v3854_v59 = vsel %vm3818_vm12, 1.0, %v9146_v17  ;;  %v4574_v9 = vsub.f32 1.0, %v4538_v49 }
 0x306   : > { %v4181_v15 = vadd.f32 1.4214138, %v4145_v40  ;;  %v4701_v2 = vpack.c.bf16 %v8842_v18, %v8803_v1  ;;  %v4648_v10 = vadd.f32 1.0, %v4612_v16  ;;  %6706 = vpow2.f32 %v4505_v54 }
 0x307   : > { %v6703_v6 = vpop.eup %6702  ;;  %v4436_v13 = vmul.f32 %v4400_v45, %v8810_v51  ;;  %6158 = vmatmul.mubr.msk.bf16.gmra.mrb[48].mxu1 %vm4730_vm8, %v4696_v11  ;;  %v4702_v14 = vpack.c.bf16 %v8832_v44, %v8767_v22  ;;  %v4645_v26 = vadd.f32 1.0, %v4609_v7  ;;  %v4610_v25 = vmul.f32 %v4574_v9, %v3854_v59 }
 0x308   : > { %v4217_v32 = vmul.f32 %v8845_v48, %v4181_v15  ;;  %v4076_v37 = vmul.f32 1.0614054, %v6703_v6  ;;  %6161 = vmatprep.mubr.msk.bf16.mxu1 %vm4730_vm8, %v4697_v5  ;;  %v8887_v43 = vmul.f32 %v4647_v39, %v8698_v20  ;;  %v8890_v1 = vmul.f32 %v4648_v10, %v8778_v4 }
 0x309   : > { %v4327_v18 = vadd.f32 0.2548296, %v4291_v28  ;;  %v4501_v51 = vmul.f32 1.442695, %v4433_v3  ;;  %v3746_v54 = vmul.f32 0.5, %v8683_v50  ;;  %v4646_v55 = vadd.f32 1.0, %v4610_v25 }
 0x30a   : > { %v4253_v21 = vadd.f32 -0.28449672, %v4217_v32  ;;  %v4112_v36 = vadd.f32 -1.4531521, %v4076_v37  ;;  %v4507_v57 = vmul.f32 1.442695, %v4436_v13  ;;  %v4704_v23 = vpack.c.bf16 %v8890_v1, %v8887_v43 }
 0x30b   : > { %v4398_v46 = vsub.f32 0.0, %v8850_v41  ;;  %v4681_v42 = vmul.f32 %v4645_v26, %v8724_v30  ;;  %v4682_v20 = vmul.f32 %v4646_v55, %v3746_v54  ;;  %6708 = vpow2.f32 %v4501_v51  ;;  %v6787_v1 = vld [vmem:[%s6878_s6 + $0x10] sm:$0xff]  }
 0x30c   : > { %v4148_v39 = vmul.f32 %v6703_v6, %v4112_v36  ;;  %v4363_v4 = vmul.f32 %v8812_v53, %v4327_v18  ;;  %v4289_v3 = vmul.f32 %v8845_v48, %v4253_v21  ;;  %6710 = vpow2.f32 %v4507_v57 }
 0x30d   : > { %v4703_v50 = vpack.c.bf16 %v4682_v20, %v4681_v42  ;;  %v4434_v11 = vmul.f32 %v4398_v46, %v8850_v41  ;;  %vm3823_vm13 = vcmp.ge.f32.partialorder %v8733_v19, 0.0  ;;  %vm3824_vm14 = vcmp.ge.f32.partialorder %v8796_v33, 0.0 }
 0x30e   : > { %v4184_v35 = vadd.f32 1.4214138, %v4148_v39  ;;  %v4325_v52 = vadd.f32 0.2548296, %v4289_v3  ;;  %v3859_v28 = vsel %vm3823_vm13, 1.0, %v9146_v17  ;;  %vm3821_vm15 = vcmp.ge.f32.partialorder %v8771_v8, 0.0 }
 0x30f   : > { %v6705_v38 = vpop.eup %6704  ;;  %6162 = vmatmul.mubr.msk.bf16.gmra.mrb[52].mxu1 %vm4730_vm8, %v4698_v60  ;;  %v4503_v53 = vmul.f32 1.442695, %v4434_v11  ;;  %v3860_v13 = vsel %vm3824_vm14, 1.0, %v9146_v17  ;;  %v3751_v33 = vmul.f32 0.5, %v8717_v58  ;;  %v3857_v18 = vsel %vm3821_vm15, 1.0, %v9146_v17 }
 0x310   : > { %v4220_v61 = vmul.f32 %v6703_v6, %v4184_v35  ;;  %v4074_v62 = vmul.f32 1.0614054, %v6705_v38  ;;  %6165 = vmatprep.mubr.msk.bf16.mxu1 %vm4730_vm8, %v4699_v47  ;;  %v6707_v30 = vpop.eup %6706  ;;  %v4361_v7 = vmul.f32 %v8845_v48, %v4325_v52  ;;  %vm3822_vm0 = vcmp.ge.f32.partialorder %v8836_v27, 0.0  ;;  %v6788_v3 = vld [vmem:[%s6878_s6 + $0x8] sm:$0xe] }
 0x311   : > { %v4543_v56 = vmul.f32 %v6707_v30, %v4363_v4  ;;  %6712 = vpow2.f32 %v4503_v53  ;;  %v3858_v58 = vsel %vm3822_vm0, 1.0, %v9146_v17  ;;  %v3749_v36 = vmul.f32 0.5, %v8755_v24  ;;  %v8931_v17 = vld [vmem:[%s9110_s4] ss:$0 sm:$0xff] }
 0x312   : > { %v4256_v5 = vadd.f32 -0.28449672, %v4220_v61  ;;  %v4110_v63 = vadd.f32 -1.4531521, %v4074_v62  ;;  %v3750_v27 = vmul.f32 0.5, %v8823_v31  ;;  %v4964_v31 = vunpack.c.l.bf16 %v6787_v1  ;;  %v6790_v62 = vld [vmem:[%s6878_s6 + $0x18] sm:$0xff]  }
 0x313   : > { %v4579_v12 = vsub.f32 1.0, %v4543_v56  ;;  %v4962_v35 = vunpack.c.l.bf16 %v6788_v3  ;;  %v4966_v30 = vunpack.c.l.bf16 %v6790_v62 }
 0x314   : > { %v4292_v45 = vmul.f32 %v6703_v6, %v4256_v5  ;;  %v4146_v34 = vmul.f32 %v6705_v38, %v4110_v63  ;;  %v5040_v5 = vrot.slane %v4964_v31, 3 }
 0x315   : > { %v6709_v60 = vpop.eup %6708  ;;  %v4615_v59 = vmul.f32 %v4579_v12, %v3859_v28  ;;  %v5037_v53 = vrot.slane %v4962_v35, 3  ;;  %v6794_v35 = vld [vmem:[%s6878_s6 + $0x38] sm:$0xff]  }
 0x316   : > { %v4328_v41 = vadd.f32 0.2548296, %v4292_v45  ;;  %v4182_v49 = vadd.f32 1.4214138, %v4146_v34  ;;  %v6711_v16 = vpop.eup %6710  ;;  %v4541_v19 = vmul.f32 %v6709_v60, %v4361_v7  ;;  %v5044_v34 = vrot.slane %v4966_v30, 3 }
 0x317   : > { %6166 = vmatmul.mubr.msk.bf16.gmra.mrb[56].mxu1 %vm4730_vm8, %v4700_v29  ;;  %v4651_v29 = vadd.f32 1.0, %v4615_v59 }
 0x318   : > { %v4364_v40 = vmul.f32 %v6703_v6, %v4328_v41  ;;  %v4218_v47 = vmul.f32 %v6705_v38, %v4182_v49  ;;  %6169 = vmatprep.mubr.msk.bf16.mxu1 %vm4730_vm8, %v4701_v2  ;;  %v4577_v6 = vsub.f32 1.0, %v4541_v19  ;;  %v3752_v2 = vmul.f32 0.5, %v8775_v0 }
 0x319   : > { %v4687_v51 = vmul.f32 %v4651_v29, %v3751_v33 }
 0x31a   : > { %v4544_v9 = vmul.f32 %v6711_v16, %v4364_v40  ;;  %v4254_v15 = vadd.f32 -0.28449672, %v4218_v47  ;;  %v4613_v54 = vmul.f32 %v4577_v6, %v3857_v18 }
 0x31b   : > { %v6713_v8 = vpop.eup %6712 }
 0x31c   : > { %v4580_v48 = vsub.f32 1.0, %v4544_v9  ;;  %v4290_v10 = vmul.f32 %v6705_v38, %v4254_v15 }
 0x31e   : > { %v4616_v26 = vmul.f32 %v4580_v48, %v3860_v13  ;;  %v4326_v25 = vadd.f32 0.2548296, %v4290_v10 }
 0x31f   : > { %6170 = vmatmul.mubr.msk.bf16.gmra.mrb[60].mxu1 %vm4730_vm8, %v4702_v14  ;;  %v4649_v14 = vadd.f32 1.0, %v4613_v54 }
 0x320   : > { %v4652_v32 = vadd.f32 1.0, %v4616_v26  ;;  %v4362_v37 = vmul.f32 %v6705_v38, %v4326_v25  ;;  %6173 = vmatprep.mubr.msk.bf16.mxu1 %vm4730_vm8, %v4703_v50  ;;  %v6789_v50 = vld [vmem:[%s6878_s6 + $0xc] sm:$0xf]  ;;  %v6791_v26 = vld [vmem:[%s6878_s6 + $0x20] sm:$0xff]  }
 0x321   : > { %v4685_v46 = vmul.f32 %v4649_v14, %v3749_v36  ;;  %v4963_v38 = vunpack.c.l.bf16 %v6789_v50  ;;  %v4968_v25 = vunpack.c.l.bf16 %v6791_v26  ;;  %v4969_v33 = vunpack.c.h.bf16 %v6791_v26 }
 0x322   : > { %v4688_v55 = vmul.f32 %v4652_v32, %v3752_v2  ;;  %v4542_v21 = vmul.f32 %v6713_v8, %v4362_v37  ;;  %v4967_v37 = vunpack.c.h.bf16 %v6790_v62  ;;  %v4974_v50 = vunpack.c.l.bf16 %v6794_v35 }
 0x323   : > { %v5038_v45 = vrot.slane %v4963_v38, 3 }
 0x324   : > { %v4578_v22 = vsub.f32 1.0, %v4542_v21  ;;  %v4706_v44 = vpack.c.bf16 %v4688_v55, %v4687_v51  ;;  %v6792_v51 = vld [vmem:[%s6878_s6 + $0x28] sm:$0xff]  }
 0x325   : > { %v5039_v7 = vsel %vm3366_vm7, %v5037_v53, %v5038_v45  ;;  %v5041_v60 = vsel %vm3366_vm7, %v5038_v45, %v5040_v5  ;;  %v4970_v54 = vunpack.c.l.bf16 %v6792_v51  ;;  %v4971_v31 = vunpack.c.h.bf16 %v6792_v51 }
 0x326   : > { %v4614_v0 = vmul.f32 %v4578_v22, %v3858_v58  ;;  %v5048_v22 = vrot.slane %v4968_v25, 3  ;;  %v5046_v58 = vrot.slane %v4967_v37, 3 }
 0x327   : > { %6174 = vmatmul.mubr.msk.bf16.gmra.mrb[64].mxu1 %vm4730_vm8, %v4704_v23  ;;  %v4965_v23 = vunpack.c.h.bf16 %v6787_v1  ;;  %v5052_v14 = vrot.slane %v4970_v54, 3 }
 0x328   : > { %v4650_v57 = vadd.f32 1.0, %v4614_v0  ;;  %v6793_v0 = vld [vmem:[%s6878_s6 + $0x30] sm:$0xff]  }
 0x329   : > { %v5042_v63 = vrot.slane %v4965_v23, 3  ;;  %v4972_v36 = vunpack.c.l.bf16 %v6793_v0 }
 0x32a   : > { %v4686_v42 = vmul.f32 %v4650_v57, %v3750_v27  ;;  %v4973_v57 = vunpack.c.h.bf16 %v6793_v0 }
 0x32b   : > { %v5043_v12 = vsel %vm3366_vm7, %v5040_v5, %v5042_v63  ;;  %v5045_v41 = vsel %vm3366_vm7, %v5042_v63, %v5044_v34 }
 0x32c   : > { %v4705_v20 = vpack.c.bf16 %v4686_v42, %v4685_v46  ;;  %v5047_v46 = vsel %vm3366_vm7, %v5044_v34, %v5046_v58 }
 0x32e   : > { %6177 = vmatprep.mubr.msk.bf16.mxu1 %vm4730_vm8, %v4705_v20 }
 0x32f   : > { %6178 = vmatmul.mubr.msk.bf16.gmra.mrb[68].mxu1 %vm4730_vm8, %v4706_v44  ;;  %v5050_v44 = vrot.slane %v4969_v33, 3  ;;  %v6796_v33 = vld [vmem:[%s6878_s6 + $0x48] sm:$0xff]  }
 0x331   : > { %v5051_v27 = vsel %vm3366_vm7, %v5048_v22, %v5050_v44  ;;  %v5053_v20 = vsel %vm3366_vm7, %v5050_v44, %v5052_v14 }
 0x3ab   : > { %v6147_v43 = vpop.f32.mrb[36].mxu1 }
 0x3ac   : > { %v4828_v24 = vadd.f32 %v6147_v43, %v8931_v17  ;;  %v4819_v39 = vpop.f32.mrb[37].mxu1  ;;  %v5049_v43 = vsel %vm3366_vm7, %v5046_v58, %v5048_v22 }
 0x3ad   : > { %v4820_v4 = vadd.f32 %v8931_v17, %v4819_v39  ;;  %v6148_v11 = vpop.f32.mrb[38].mxu1  ;;  %v5056_v39 = vrot.slane %v4972_v36, 3 }
 0x3ae   : > { %6714 = vtanh.f32 %v4828_v24  ;;  %v4831_v61 = vadd.f32 %v6148_v11, %v8931_v17  ;;  %v4822_v56 = vpop.f32.mrb[39].mxu1  ;;  %v5148_v49 = vadd.f32 %v5043_v12, %v4828_v24  ;;  %v5054_v12 = vrot.slane %v4971_v31, 3 }
 0x3af   : > { %6716 = vtanh.f32 %v4820_v4  ;;  %v4823_v52 = vadd.f32 %v8931_v17, %v4822_v56  ;;  %v5146_v47 = vadd.f32 %v5039_v7, %v4820_v4 }
 0x3b0   : > { %6718 = vtanh.f32 %v4831_v61  ;;  %v5149_v59 = vadd.f32 %v5045_v41, %v4831_v61  ;;  %v5058_v61 = vrot.slane %v4973_v57, 3 }
 0x3b1   : > { %6720 = vtanh.f32 %v4823_v52  ;;  %v5147_v15 = vadd.f32 %v5041_v60, %v4823_v52 }
 0x3b8   : > { %v6715_v40 = vpop.eup %6714 }
 0x3b9   : > { %v6717_v16 = vpop.eup %6716  ;;  %v5220_v28 = vmul.f32 %v6715_v40, %v5148_v49  ;;  %v5060_v49 = vrot.slane %v4974_v50, 3  ;;  %v6795_v40 = vld [vmem:[%s6878_s6 + $0x40] sm:$0xff]   ;;  %v6798_v50 = vld [vmem:[%s6878_s6 + $0x58] sm:$0xff]  }
 0x3ba   : > { %v6719_v19 = vpop.eup %6718  ;;  %v5218_v9 = vmul.f32 %v6717_v16, %v5146_v47  ;;  %v4976_v47 = vunpack.c.l.bf16 %v6795_v40 }
 0x3bb   : > { %v6721_v48 = vpop.eup %6720  ;;  %5256 = vst.msk [vmem:[%s8949_s8 + $0x10] sm:$0xff] %vm508_vm3, %v5220_v28  ;;  %v5221_v10 = vmul.f32 %v6719_v19, %v5149_v59  ;;  %v4977_v28 = vunpack.c.h.bf16 %v6795_v40  ;;  %v5059_v59 = vsel %vm3366_vm7, %v5056_v39, %v5058_v61  ;;  %v5055_v19 = vsel %vm3366_vm7, %v5052_v14, %v5054_v12 }
 0x3bc   : > { %5254 = vst.msk [vmem:[%s8949_s8] sm:$0xff] %vm508_vm3, %v5218_v9  ;;  %v5219_v13 = vmul.f32 %v6721_v48, %v5147_v15  ;;  %v5061_v48 = vsel %vm3366_vm7, %v5058_v61, %v5060_v49  ;;  %v5064_v26 = vrot.slane %v4976_v47, 3 }
 0x3bd   : > { %5257 = vst.msk [vmem:[%s8949_s8 + $0x18] sm:$0xff] %vm508_vm3, %v5221_v10  ;;  %v5057_v10 = vsel %vm3366_vm7, %v5054_v12, %v5056_v39  ;;  %v4979_v39 = vunpack.c.h.bf16 %v6796_v33 }
 0x3be   : > { %5255 = vst.msk [vmem:[%s8949_s8 + $0x8] sm:$0xff] %vm508_vm3, %v5219_v13 }
 0x3c7   : > { %v6151_v29 = vpop.f32.mrb[40].mxu1 }
 0x3c8   : > { %v4844_v6 = vadd.f32 %v6151_v29, %v8931_v17  ;;  %v4835_v2 = vpop.f32.mrb[41].mxu1  ;;  %v4975_v29 = vunpack.c.h.bf16 %v6794_v35 }
 0x3c9   : > { %v4836_v32 = vadd.f32 %v8931_v17, %v4835_v2  ;;  %v6152_v8 = vpop.f32.mrb[42].mxu1  ;;  %v4978_v2 = vunpack.c.l.bf16 %v6796_v33 }
 0x3ca   : > { %6722 = vtanh.f32 %v4844_v6  ;;  %v4847_v18 = vadd.f32 %v6152_v8, %v8931_v17  ;;  %v4838_v55 = vpop.f32.mrb[43].mxu1  ;;  %v5152_v23 = vadd.f32 %v5051_v27, %v4844_v6  ;;  %v5066_v8 = vrot.slane %v4977_v28, 3 }
 0x3cb   : > { %6724 = vtanh.f32 %v4836_v32  ;;  %v4839_v21 = vadd.f32 %v8931_v17, %v4838_v55  ;;  %v5150_v11 = vadd.f32 %v5047_v46, %v4836_v32  ;;  %v5062_v44 = vrot.slane %v4975_v29, 3 }
 0x3cc   : > { %6726 = vtanh.f32 %v4847_v18  ;;  %v5153_v5 = vadd.f32 %v5053_v20, %v4847_v18  ;;  %v5068_v36 = vrot.slane %v4978_v2, 3  ;;  %v5067_v46 = vsel %vm3366_vm7, %v5064_v26, %v5066_v8  ;;  %v6797_v20 = vld [vmem:[%s6878_s6 + $0x50] sm:$0xff]  }
 0x3cd   : > { %6728 = vtanh.f32 %v4839_v21  ;;  %v5151_v34 = vadd.f32 %v5049_v43, %v4839_v21  ;;  %v4980_v43 = vunpack.c.l.bf16 %v6797_v20  ;;  %v4981_v31 = vunpack.c.h.bf16 %v6797_v20 }
 0x3ce   : > { %v5065_v61 = vsel %vm3366_vm7, %v5062_v44, %v5064_v26  ;;  %v4983_v2 = vunpack.c.h.bf16 %v6798_v50 }
 0x3d2   : > { %v6155_v42 = vpop.f32.mrb[44].mxu1 }
 0x3d3   : > { %v4860_v24 = vadd.f32 %v6155_v42, %v8931_v17  ;;  %v4851_v1 = vpop.f32.mrb[45].mxu1 }
 0x3d4   : > { %v4852_v4 = vadd.f32 %v8931_v17, %v4851_v1  ;;  %v6156_v3 = vpop.f32.mrb[46].mxu1  ;;  %v6723_v38 = vpop.eup %6722 }
 0x3d5   : > { %6730 = vtanh.f32 %v4860_v24  ;;  %v4863_v62 = vadd.f32 %v6156_v3, %v8931_v17  ;;  %v4854_v30 = vpop.f32.mrb[47].mxu1  ;;  %v6725_v56 = vpop.eup %6724  ;;  %v5224_v52 = vmul.f32 %v6723_v38, %v5152_v23  ;;  %v5156_v37 = vadd.f32 %v5059_v59, %v4860_v24 }
 0x3d6   : > { %6732 = vtanh.f32 %v4852_v4  ;;  %v4855_v63 = vadd.f32 %v8931_v17, %v4854_v30  ;;  %v6727_v53 = vpop.eup %6726  ;;  %v5222_v45 = vmul.f32 %v6725_v56, %v5150_v11  ;;  %v5154_v54 = vadd.f32 %v5055_v19, %v4852_v4 }
 0x3d7   : > { %6734 = vtanh.f32 %v4863_v62  ;;  %v6729_v7 = vpop.eup %6728  ;;  %5260 = vst.msk [vmem:[%s8949_s8 + $0x30] sm:$0xff] %vm508_vm3, %v5224_v52  ;;  %v5225_v41 = vmul.f32 %v6727_v53, %v5153_v5  ;;  %v5157_v22 = vadd.f32 %v5061_v48, %v4863_v62  ;;  %v5063_v4 = vsel %vm3366_vm7, %v5060_v49, %v5062_v44 }
 0x3d8   : > { %6736 = vtanh.f32 %v4855_v63  ;;  %5258 = vst.msk [vmem:[%s8949_s8 + $0x20] sm:$0xff] %vm508_vm3, %v5222_v45  ;;  %v5223_v60 = vmul.f32 %v6729_v7, %v5151_v34  ;;  %v5155_v0 = vadd.f32 %v5057_v10, %v4855_v63  ;;  %v4982_v38 = vunpack.c.l.bf16 %v6798_v50 }
 0x3d9   : > { %5261 = vst.msk [vmem:[%s8949_s8 + $0x38] sm:$0xff] %vm508_vm3, %v5225_v41  ;;  %v5069_v11 = vsel %vm3366_vm7, %v5066_v8, %v5068_v36  ;;  %v5072_v52 = vrot.slane %v4980_v43, 3  ;;  %v5074_v45 = vrot.slane %v4981_v31, 3  ;;  %v5070_v34 = vrot.slane %v4979_v39, 3 }
 0x3da   : > { %v6159_v16 = vpop.f32.mrb[48].mxu1  ;;  %5259 = vst.msk [vmem:[%s8949_s8 + $0x28] sm:$0xff] %vm508_vm3, %v5223_v60  ;;  %v5076_v49 = vrot.slane %v4982_v38, 3 }
 0x3db   : > { %v4876_v9 = vadd.f32 %v6159_v16, %v8931_v17  ;;  %v4867_v15 = vpop.f32.mrb[49].mxu1  ;;  %v6799_v16 = vld [vmem:[%s6878_s6 + $0x60] sm:$0xff]   ;;  %v5075_v10 = vsel %vm3366_vm7, %v5072_v52, %v5074_v45 }
 0x3dc   : > { %v4868_v13 = vadd.f32 %v8931_v17, %v4867_v15  ;;  %v6160_v6 = vpop.f32.mrb[50].mxu1  ;;  %v4984_v28 = vunpack.c.l.bf16 %v6799_v16  ;;  %v4985_v15 = vunpack.c.h.bf16 %v6799_v16  ;;  %v5077_v26 = vsel %vm3366_vm7, %v5074_v45, %v5076_v49 }
 0x3dd   : > { %6738 = vtanh.f32 %v4876_v9  ;;  %v4879_v25 = vadd.f32 %v6160_v6, %v8931_v17  ;;  %v4870_v32 = vpop.f32.mrb[51].mxu1  ;;  %v5160_v56 = vadd.f32 %v5067_v46, %v4876_v9 }
 0x3de   : > { %6740 = vtanh.f32 %v4868_v13  ;;  %v4871_v18 = vadd.f32 %v8931_v17, %v4870_v32  ;;  %v5158_v53 = vadd.f32 %v5063_v4, %v4868_v13  ;;  %v5071_v13 = vsel %vm3366_vm7, %v5068_v36, %v5070_v34 }
 0x3df   : > { %v6731_v51 = vpop.eup %6730  ;;  %6742 = vtanh.f32 %v4879_v25  ;;  %v5161_v41 = vadd.f32 %v5069_v11, %v4879_v25  ;;  %v5073_v25 = vsel %vm3366_vm7, %v5070_v34, %v5072_v52 }
 0x3e0   : > { %v6733_v55 = vpop.eup %6732  ;;  %v5228_v21 = vmul.f32 %v6731_v51, %v5156_v37  ;;  %6744 = vtanh.f32 %v4871_v18  ;;  %v5159_v47 = vadd.f32 %v5065_v61, %v4871_v18  ;;  %v5080_v37 = vrot.slane %v4984_v28, 3  ;;  %v6800_v18 = vld [vmem:[%s6878_s6 + $0x68] sm:$0xff]  }
 0x3e1   : > { %v6735_v58 = vpop.eup %6734  ;;  %v5226_v14 = vmul.f32 %v6733_v55, %v5154_v54  ;;  %v4986_v51 = vunpack.c.l.bf16 %v6800_v18  ;;  %v4987_v38 = vunpack.c.h.bf16 %v6800_v18 }
 0x3e2   : > { %v6737_v27 = vpop.eup %6736  ;;  %5264 = vst.msk [vmem:[%s8949_s8 + $0x50] sm:$0xff] %vm508_vm3, %v5228_v21  ;;  %v5229_v57 = vmul.f32 %v6735_v58, %v5157_v22  ;;  %v6163_v42 = vpop.f32.mrb[52].mxu1  ;;  %v5082_v21 = vrot.slane %v4985_v15, 3  ;;  %v6803_v15 = vld [vmem:[%s6878_s6 + $0x80] sm:$0xff]  }
 0x3e3   : > { %5262 = vst.msk [vmem:[%s8949_s8 + $0x40] sm:$0xff] %vm508_vm3, %v5226_v14  ;;  %v5227_v24 = vmul.f32 %v6737_v27, %v5155_v0  ;;  %v4892_v1 = vadd.f32 %v6163_v42, %v8931_v17  ;;  %v4883_v23 = vpop.f32.mrb[53].mxu1  ;;  %v5078_v27 = vrot.slane %v4983_v2, 3  ;;  %v5084_v20 = vrot.slane %v4986_v51, 3 }
 0x3e4   : > { %5265 = vst.msk [vmem:[%s8949_s8 + $0x58] sm:$0xff] %vm508_vm3, %v5229_v57  ;;  %v4884_v3 = vadd.f32 %v8931_v17, %v4883_v23  ;;  %v6164_v35 = vpop.f32.mrb[54].mxu1  ;;  %v6801_v23 = vld [vmem:[%s6878_s6 + $0x70] sm:$0xff]  }
 0x3e5   : > { %5263 = vst.msk [vmem:[%s8949_s8 + $0x48] sm:$0xff] %vm508_vm3, %v5227_v24  ;;  %6746 = vtanh.f32 %v4892_v1  ;;  %v4895_v62 = vadd.f32 %v6164_v35, %v8931_v17  ;;  %v4886_v30 = vpop.f32.mrb[55].mxu1  ;;  %v5164_v55 = vadd.f32 %v5075_v10, %v4892_v1  ;;  %v5083_v1 = vsel %vm3366_vm7, %v5080_v37, %v5082_v21 }
 0x3e6   : > { %6748 = vtanh.f32 %v4884_v3  ;;  %v4887_v5 = vadd.f32 %v8931_v17, %v4886_v30  ;;  %v5162_v58 = vadd.f32 %v5071_v13, %v4884_v3  ;;  %v4988_v39 = vunpack.c.l.bf16 %v6801_v23  ;;  %v6802_v30 = vld [vmem:[%s6878_s6 + $0x78] sm:$0xff]  }
 0x3e7   : > { %v6739_v63 = vpop.eup %6738  ;;  %6750 = vtanh.f32 %v4895_v62  ;;  %v5165_v36 = vadd.f32 %v5077_v26, %v4895_v62  ;;  %v4989_v35 = vunpack.c.h.bf16 %v6801_v23  ;;  %v5079_v11 = vsel %vm3366_vm7, %v5076_v49, %v5078_v27 }
 0x3e8   : > { %v6741_v12 = vpop.eup %6740  ;;  %v5232_v7 = vmul.f32 %v6739_v63, %v5160_v56  ;;  %6752 = vtanh.f32 %v4887_v5  ;;  %v5163_v42 = vadd.f32 %v5073_v25, %v4887_v5  ;;  %v4990_v56 = vunpack.c.l.bf16 %v6802_v30 }
 0x3e9   : > { %v6743_v60 = vpop.eup %6742  ;;  %v5230_v40 = vmul.f32 %v6741_v12, %v5158_v53  ;;  %v5085_v52 = vsel %vm3366_vm7, %v5082_v21, %v5084_v20  ;;  %v5081_v5 = vsel %vm3366_vm7, %v5078_v27, %v5080_v37  ;;  %v5088_v34 = vrot.slane %v4988_v39, 3 }
 0x3ea   : > { %v6745_v59 = vpop.eup %6744  ;;  %5268 = vst.msk [vmem:[%s8949_s8 + $0x70] sm:$0xff] %vm508_vm3, %v5232_v7  ;;  %v5233_v19 = vmul.f32 %v6743_v60, %v5161_v41  ;;  %v6167_v9 = vpop.f32.mrb[56].mxu1  ;;  %v5090_v49 = vrot.slane %v4989_v35, 3  ;;  %v5086_v60 = vrot.slane %v4987_v38, 3  ;;  %v5092_v28 = vrot.slane %v4990_v56, 3 }
 0x3eb   : > { %5266 = vst.msk [vmem:[%s8949_s8 + $0x60] sm:$0xff] %vm508_vm3, %v5230_v40  ;;  %v5231_v48 = vmul.f32 %v6745_v59, %v5159_v47  ;;  %v4908_v29 = vadd.f32 %v6167_v9, %v8931_v17  ;;  %v4899_v6 = vpop.f32.mrb[57].mxu1  ;;  %v4991_v51 = vunpack.c.h.bf16 %v6802_v30 }
 0x3ec   : > { %5269 = vst.msk [vmem:[%s8949_s8 + $0x78] sm:$0xff] %vm508_vm3, %v5233_v19  ;;  %v4900_v33 = vadd.f32 %v8931_v17, %v4899_v6  ;;  %v6168_v32 = vpop.f32.mrb[58].mxu1  ;;  %v4993_v6 = vunpack.c.h.bf16 %v6803_v15  ;;  %v5091_v25 = vsel %vm3366_vm7, %v5088_v34, %v5090_v49  ;;  %v5093_v37 = vsel %vm3366_vm7, %v5090_v49, %v5092_v28 }
 0x3ed   : > { %5267 = vst.msk [vmem:[%s8949_s8 + $0x68] sm:$0xff] %vm508_vm3, %v5231_v48  ;;  %6754 = vtanh.f32 %v4908_v29  ;;  %v4911_v8 = vadd.f32 %v6168_v32, %v8931_v17  ;;  %v4902_v54 = vpop.f32.mrb[59].mxu1  ;;  %v5168_v45 = vadd.f32 %v5083_v1, %v4908_v29  ;;  %v4992_v48 = vunpack.c.l.bf16 %v6803_v15 }
 0x3ee   : > { %6756 = vtanh.f32 %v4900_v33  ;;  %v4903_v22 = vadd.f32 %v8931_v17, %v4902_v54  ;;  %v5166_v41 = vadd.f32 %v5079_v11, %v4900_v33  ;;  %v5087_v33 = vsel %vm3366_vm7, %v5084_v20, %v5086_v60  ;;  %v6805_v11 = vld [vmem:[%s6878_s6 + $0x90] sm:$0xff]  }
 0x3ef   : > { %v6747_v44 = vpop.eup %6746  ;;  %6758 = vtanh.f32 %v4911_v8  ;;  %v5169_v16 = vadd.f32 %v5085_v52, %v4911_v8  ;;  %v5089_v8 = vsel %vm3366_vm7, %v5086_v60, %v5088_v34  ;;  %v6806_v34 = vld [vmem:[%s6878_s6 + $0x98] sm:$0x3] }
 0x3f0   : > { %v6749_v14 = vpop.eup %6748  ;;  %v5236_v0 = vmul.f32 %v6747_v44, %v5164_v55  ;;  %6760 = vtanh.f32 %v4903_v22  ;;  %v5167_v9 = vadd.f32 %v5081_v5, %v4903_v22  ;;  %v5096_v55 = vrot.slane %v4992_v48, 3  ;;  %v6804_v22 = vld [vmem:[%s6878_s6 + $0x88] sm:$0xff]  }
 0x3f1   : > { %v6751_v57 = vpop.eup %6750  ;;  %v5234_v46 = vmul.f32 %v6749_v14, %v5162_v58  ;;  %v4994_v44 = vunpack.c.l.bf16 %v6804_v22  ;;  %v4995_v5 = vunpack.c.h.bf16 %v6804_v22 }
 0x3f2   : > { %v6753_v43 = vpop.eup %6752  ;;  %5272 = vst.msk [vmem:[%s8949_s8 + $0x90] sm:$0xff] %vm508_vm3, %v5236_v0  ;;  %v5237_v24 = vmul.f32 %v6751_v57, %v5165_v36  ;;  %v6171_v31 = vpop.f32.mrb[60].mxu1  ;;  %v5098_v0 = vrot.slane %v4993_v6, 3 }
 0x3f3   : > { %5270 = vst.msk [vmem:[%s8949_s8 + $0x80] sm:$0xff] %vm508_vm3, %v5234_v46  ;;  %v5235_v4 = vmul.f32 %v6753_v43, %v5163_v42  ;;  %v4924_v3 = vadd.f32 %v6171_v31, %v8931_v17  ;;  %v4915_v50 = vpop.f32.mrb[61].mxu1  ;;  %v5094_v43 = vrot.slane %v4991_v51, 3  ;;  %v5100_v23 = vrot.slane %v4994_v44, 3 }
 0x3f4   : > { %5273 = vst.msk [vmem:[%s8949_s8 + $0x98] sm:$0xff] %vm508_vm3, %v5237_v24  ;;  %v4916_v61 = vadd.f32 %v8931_v17, %v4915_v50  ;;  %v6172_v62 = vpop.f32.mrb[62].mxu1  ;;  %v5102_v15 = vrot.slane %v4995_v5, 3 }
 0x3f5   : > { %5271 = vst.msk [vmem:[%s8949_s8 + $0x88] sm:$0xff] %vm508_vm3, %v5235_v4  ;;  %6762 = vtanh.f32 %v4924_v3  ;;  %v4927_v63 = vadd.f32 %v6172_v62, %v8931_v17  ;;  %v4918_v53 = vpop.f32.mrb[63].mxu1  ;;  %v5172_v14 = vadd.f32 %v5091_v25, %v4924_v3  ;;  %v5099_v3 = vsel %vm3366_vm7, %v5096_v55, %v5098_v0 }
 0x3f6   : > { %6764 = vtanh.f32 %v4916_v61  ;;  %v4919_v12 = vadd.f32 %v8931_v17, %v4918_v53  ;;  %v5170_v57 = vadd.f32 %v5087_v33, %v4916_v61  ;;  %v4996_v61 = vunpack.c.l.bf16 %v6805_v11 }
 0x3f7   : > { %v6755_v7 = vpop.eup %6754  ;;  %6766 = vtanh.f32 %v4927_v63  ;;  %v5173_v20 = vadd.f32 %v5093_v37, %v4927_v63  ;;  %v4997_v62 = vunpack.c.h.bf16 %v6805_v11  ;;  %v5095_v56 = vsel %vm3366_vm7, %v5092_v28, %v5094_v43 }
 0x3f8   : > { %v6757_v40 = vpop.eup %6756  ;;  %v5240_v47 = vmul.f32 %v6755_v7, %v5168_v45  ;;  %6768 = vtanh.f32 %v4919_v12  ;;  %v5171_v31 = vadd.f32 %v5089_v8, %v4919_v12  ;;  %v5101_v53 = vsel %vm3366_vm7, %v5098_v0, %v5100_v23 }
 0x3f9   : > { %v6759_v59 = vpop.eup %6758  ;;  %v5238_v19 = vmul.f32 %v6757_v40, %v5166_v41  ;;  %v4998_v12 = vunpack.c.l.bf16 %v6806_v34  ;;  %v5097_v49 = vsel %vm3366_vm7, %v5094_v43, %v5096_v55  ;;  %v5106_v28 = vrot.slane %v4997_v62, 3 }
 0x3fa   : > { %v6761_v10 = vpop.eup %6760  ;;  %5276 = vst.msk [vmem:[%s8949_s8 + $0xb0] sm:$0xff] %vm508_vm3, %v5240_v47  ;;  %v5241_v13 = vmul.f32 %v6759_v59, %v5169_v16  ;;  %v6175_v29 = vpop.f32.mrb[64].mxu1  ;;  %v5104_v16 = vrot.slane %v4996_v61, 3  ;;  %v5103_v33 = vsel %vm3366_vm7, %v5100_v23, %v5102_v15 }
 0x3fb   : > { %5274 = vst.msk [vmem:[%s8949_s8 + $0xa0] sm:$0xff] %vm508_vm3, %v5238_v19  ;;  %v5239_v26 = vmul.f32 %v6761_v10, %v5167_v9  ;;  %v4940_v2 = vadd.f32 %v6175_v29, %v8931_v17  ;;  %v4931_v32 = vpop.f32.mrb[65].mxu1  ;;  %v5108_v29 = vrot.slane %v4998_v12, 3 }
 0x3fc   : > { %5277 = vst.msk [vmem:[%s8949_s8 + $0xb8] sm:$0xff] %vm508_vm3, %v5241_v13  ;;  %v4932_v18 = vadd.f32 %v8931_v17, %v4931_v32  ;;  %v6176_v54 = vpop.f32.mrb[66].mxu1  ;;  %v5107_v25 = vsel %vm3366_vm7, %v5104_v16, %v5106_v28  ;;  %v5105_v37 = vsel %vm3366_vm7, %v5102_v15, %v5104_v16 }
 0x3fd   : > { %5275 = vst.msk [vmem:[%s8949_s8 + $0xa8] sm:$0xff] %vm508_vm3, %v5239_v26  ;;  %6770 = vtanh.f32 %v4940_v2  ;;  %v4943_v21 = vadd.f32 %v6176_v54, %v8931_v17  ;;  %v4934_v58 = vpop.f32.mrb[67].mxu1  ;;  %v5176_v41 = vadd.f32 %v5099_v3, %v4940_v2  ;;  %v5109_v2 = vsel %vm3366_vm7, %v5106_v28, %v5108_v29 }
 0x3fe   : > { %6772 = vtanh.f32 %v4932_v18  ;;  %v4935_v36 = vadd.f32 %v8931_v17, %v4934_v58  ;;  %v5174_v47 = vadd.f32 %v5095_v56, %v4932_v18 }
 0x3ff   : > { %v6763_v27 = vpop.eup %6762  ;;  %6774 = vtanh.f32 %v4943_v21  ;;  %v5177_v9 = vadd.f32 %v5101_v53, %v4943_v21 }
 0x400   : > { %v6765_v46 = vpop.eup %6764  ;;  %v5244_v42 = vmul.f32 %v6763_v27, %v5172_v14  ;;  %6776 = vtanh.f32 %v4935_v36  ;;  %v5175_v13 = vadd.f32 %v5097_v49, %v4935_v36 }
 0x401   : > { %v6767_v24 = vpop.eup %6766  ;;  %v5242_v1 = vmul.f32 %v6765_v46, %v5170_v57 }
 0x402   : > { %v6769_v39 = vpop.eup %6768  ;;  %5280 = vst.msk [vmem:[%s8949_s8 + $0xd0] sm:$0xff] %vm508_vm3, %v5244_v42  ;;  %v5245_v4 = vmul.f32 %v6767_v24, %v5173_v20  ;;  %v6179_v35 = vpop.f32.mrb[68].mxu1 }
 0x403   : > { %5278 = vst.msk [vmem:[%s8949_s8 + $0xc0] sm:$0xff] %vm508_vm3, %v5242_v1  ;;  %v5243_v50 = vmul.f32 %v6769_v39, %v5171_v31  ;;  %v4956_v38 = vadd.f32 %v6179_v35, %v8931_v17  ;;  %v4947_v30 = vpop.f32.mrb[69].mxu1 }
 0x404   : > { %5281 = vst.msk [vmem:[%s8949_s8 + $0xd8] sm:$0xff] %vm508_vm3, %v5245_v4  ;;  %v4948_v52 = vadd.f32 %v8931_v17, %v4947_v30  ;;  %v6180_v63 = vpop.f32.mrb[70].mxu1 }
 0x405   : > { %5279 = vst.msk [vmem:[%s8949_s8 + $0xc8] sm:$0xff] %vm508_vm3, %v5243_v50  ;;  %6778 = vtanh.f32 %v4956_v38  ;;  %v4959_v45 = vadd.f32 %v6180_v63, %v8931_v17  ;;  %v4950_v7 = vpop.f32.mrb[71].mxu1  ;;  %v5180_v32 = vadd.f32 %v5107_v25, %v4956_v38 }
 0x406   : > { %6780 = vtanh.f32 %v4948_v52  ;;  %v4951_v60 = vadd.f32 %v8931_v17, %v4950_v7  ;;  %v5178_v18 = vadd.f32 %v5103_v33, %v4948_v52 }
 0x407   : > { %v6771_v40 = vpop.eup %6770  ;;  %6782 = vtanh.f32 %v4959_v45  ;;  %v5181_v55 = vadd.f32 %v5109_v2, %v4959_v45 }
 0x408   : > { %v6773_v59 = vpop.eup %6772  ;;  %v5248_v19 = vmul.f32 %v6771_v40, %v5176_v41  ;;  %6784 = vtanh.f32 %v4951_v60  ;;  %v5179_v44 = vadd.f32 %v5105_v37, %v4951_v60 }
 0x409   : > { %v6775_v48 = vpop.eup %6774  ;;  %v5246_v10 = vmul.f32 %v6773_v59, %v5174_v47 }
 0x40a   : > { %v6777_v6 = vpop.eup %6776  ;;  %5284 = vst.msk [vmem:[%s8949_s8 + $0xf0] sm:$0xff] %vm508_vm3, %v5248_v19  ;;  %v5249_v17 = vmul.f32 %v6775_v48, %v5177_v9 }
 0x40b   : > { %5282 = vst.msk [vmem:[%s8949_s8 + $0xe0] sm:$0xff] %vm508_vm3, %v5246_v10  ;;  %v5247_v26 = vmul.f32 %v6777_v6, %v5175_v13 }
 0x40c   : > { %5285 = vst.msk [vmem:[%s8949_s8 + $0xf8] sm:$0xff] %vm508_vm3, %v5249_v17 }
 0x40d   : > { %5283 = vst.msk [vmem:[%s8949_s8 + $0xe8] sm:$0xff] %vm508_vm3, %v5247_v26 }
 0x40f   : > { %v6779_v8 = vpop.eup %6778 }
 0x410   : > { %v6781_v51 = vpop.eup %6780  ;;  %v5252_v54 = vmul.f32 %v6779_v8, %v5180_v32 }
 0x411   : > { %v6783_v21 = vpop.eup %6782  ;;  %v5250_v22 = vmul.f32 %v6781_v51, %v5178_v18 }
 0x412   : > { %v6785_v58 = vpop.eup %6784  ;;  %5288 = vst.msk [vmem:[%s8949_s8 + $0x110] sm:$0xff] %vm508_vm3, %v5252_v54  ;;  %v5253_v14 = vmul.f32 %v6783_v21, %v5181_v55 }
 0x413   : > { %5286 = vst.msk [vmem:[%s8949_s8 + $0x100] sm:$0xff] %vm508_vm3, %v5250_v22  ;;  %v5251_v0 = vmul.f32 %v6785_v58, %v5179_v44 }
 0x414   : > { %5289 = vst.msk [vmem:[%s8949_s8 + $0x118] sm:$0xff] %vm508_vm3, %v5253_v14 }
 0x415   : > { %5287 = vst.msk [vmem:[%s8949_s8 + $0x108] sm:$0xff] %vm508_vm3, %v5251_v0 }
 0x416 PF: > { %s15_s18 = sadd.s32 1, %s6813_s18  }
 0x417   : > { %p12_p4 = scmp.ge.s32.totalorder %s15_s18, 6  }
 0x419   :  { %14 = sbr.rel (!%p12_p4) target bundleno = 1 (0x1), region = 78 }

</bundles_post_ra>
